<compile_context>
chip_gen: v7x
topology: tpu7x:2x2x1
jax: 0.10.0
libtpu: 0.0.40
codegen_flags: <defaults>
</compile_context>

<pallas_src>
import functools

import jax
import jax.numpy as jnp
from jax.experimental import pallas as pl
from jax.experimental.pallas import tpu as pltpu

BN_EPS = 1e-5
SMALL_BATCH = 64     # below this, plain XLA beats kernel launch + batch padding
TB_CAP = 2048        # batch-tile cap (multiple of 16); ~11 MiB VMEM at 2048


def _round_up(x, m):
    return (x + m - 1) // m * m


# --------------------------------------------------------------------------- kernel
def ffnn_kernel(xcat_ref, xnum_ref, w1_ref, b1_ref, w2_ref, b2_ref,
                w3_ref, b3_ref, out_ref, *, cat_offsets, cont_start, kp):
    """One batch tile.

    Builds the layer-1 input in-kernel: categorical indices become one-hot lanes
    (selecting pre-folded table@W1 rows of w1), continuous features go into their
    dedicated lanes.  Then 3 MXU matmuls (bf16 in, f32 accumulate) with bias-add
    + ReLU epilogues in f32 (v5e has no bf16 VALU).  BatchNorms are pre-folded.
    """
    tb = out_ref.shape[0]
    lanes = jax.lax.broadcasted_iota(jnp.int32, (tb, kp), 1)

    idx = xcat_ref[...]                                    # (tb, n_cat) int32
    xn = xnum_ref[...]                                     # (tb, n_cont) f32
    x = jnp.zeros((tb, kp), jnp.float32)
    for j, off in enumerate(cat_offsets):                  # categorical -> one-hot lanes
        x = x + (lanes == (idx[:, j:j + 1] + off)).astype(jnp.float32)
    for c in range(xn.shape[1]):                           # continuous -> own lanes
        x = x + jnp.where(lanes == cont_start + c, xn[:, c:c + 1], 0.0)

    # Layer 1 (embedding tables + bn_cont already folded into w1/b1).
    h = jnp.dot(x.astype(jnp.bfloat16), w1_ref[...],
                preferred_element_type=jnp.float32)
    h = jnp.maximum(h + b1_ref[...], 0.0)
    # Layer 2 (bn1 folded into w2/b2).
    h = jnp.dot(h.astype(jnp.bfloat16), w2_ref[...],
                preferred_element_type=jnp.float32)
    h = jnp.maximum(h + b2_ref[...], 0.0)
    # Output layer (bn2 folded into w3/b3); narrow (tb, 8) store -> tiny writeback.
    out = jnp.dot(h.astype(jnp.bfloat16), w3_ref[...],
                  preferred_element_type=jnp.float32)
    out_ref[...] = (out + b3_ref[...]).astype(out_ref.dtype)


# --------------------------------------------------------- parameter fold / padding
def fold_and_pad_params(params, embedding_dimensions, n_cont, layers, out_sz):
    """Fold eval-mode BatchNorms into the adjacent Linears, fold each embedding
    table through its W1 rows (so the kernel can one-hot-select them), zero-pad to
    TPU-friendly widths, and cast weights to bf16 (biases stay f32).  All folding
    happens in f32; quantization to bf16 is only at the very end."""

    def bn_scale_shift(p):                         # rows: [gamma, beta, mean, var]
        s = p[0] * jax.lax.rsqrt(p[3] + BN_EPS)    # gamma / sqrt(var + eps)
        t = p[1] - p[2] * s                        # beta - mean * scale
        return s, t

    h1, h2 = layers

    # bn_cont folds into the continuous rows of W1 and into b1.
    s_c, t_c = bn_scale_shift(params["bn_cont"])

    # Each embedding table folded through its slice of W1's embedding rows:
    # one-hot(idx_j) @ (table_j @ W1_rows_j) == table_j[idx_j] @ W1_rows_j.
    w1_rows = []
    r = 0
    for (_, e_j), tbl in zip(embedding_dimensions, params["emb_tables"]):
        w1_rows.append(tbl @ params["w1_emb"][r:r + e_j])       # (n_j, h1)
        r += e_j
    w1_rows.append(params["w1_num"] * s_c[:, None])             # (n_cont, h1)
    w1 = jnp.concatenate(w1_rows, axis=0)
    b1 = params["b1"] + t_c @ params["w1_num"]

    # bn1 folds into w2/b2; bn2 folds into w3/b3.
    s1, t1 = bn_scale_shift(params["bn1"])
    w2 = params["w2"] * s1[:, None]
    b2 = params["b2"] + t1 @ params["w2"]
    s2, t2 = bn_scale_shift(params["bn2"])
    w3 = params["w3"] * s2[:, None]
    b3 = params["b3"] + t2 @ params["w3"]

    n_onehot = sum(inp for inp, _ in embedding_dimensions)
    kp = _round_up(n_onehot + n_cont, 32)
    h1p = _round_up(h1, 128)
    h2p = _round_up(h2, 128)
    outp = _round_up(max(out_sz, 8), 8)     # small full-width output slab (NOT 128)

    def pad2(a, rows, cols):
        return jnp.pad(a, ((0, rows - a.shape[0]), (0, cols - a.shape[1])))

    return {
        "w1": pad2(w1, kp, h1p).astype(jnp.bfloat16),
        "b1": pad2(b1, 1, h1p).astype(jnp.float32),
        "w2": pad2(w2, h1p, h2p).astype(jnp.bfloat16),
        "b2": pad2(b2, 1, h2p).astype(jnp.float32),
        "w3": pad2(w3, h2p, outp).astype(jnp.bfloat16),
        "b3": pad2(b3, 1, outp).astype(jnp.float32),
    }


# ------------------------------------------------------------------------- forward
def _small_batch_forward(x_cat, x_num, prep, out_sz, cat_offsets, cont_start):
    """Plain-XLA fast path: at tiny batches kernel launch + padding dominates."""
    kp = prep["w1"].shape[0]
    idx = x_cat + jnp.asarray(cat_offsets, jnp.int32)[None, :]
    oh = jax.nn.one_hot(idx, cont_start, dtype=jnp.float32).sum(axis=1)
    x = jnp.concatenate([oh, x_num.astype(jnp.float32)], axis=1)
    x = jnp.pad(x, ((0, 0), (0, kp - x.shape[1])))
    h = jnp.maximum(x @ prep["w1"].astype(jnp.float32) + prep["b1"], 0.0)
    h = jnp.maximum(h @ prep["w2"].astype(jnp.float32) + prep["b2"], 0.0)
    out = h @ prep["w3"].astype(jnp.float32) + prep["b3"]
    return out[:, :out_sz]


@functools.partial(jax.jit, static_argnames=("out_sz", "cat_offsets", "cont_start"))
def ffnn_forward(x_cat, x_num, prep, *, out_sz, cat_offsets, cont_start):
    """x_cat: (B, n_cat) int32, x_num: (B, n_cont) f32 -> (B, out_sz) f32."""
    B, n_cat = x_cat.shape
    n_cont = x_num.shape[1]
    kp, h1p = prep["w1"].shape
    h2p = prep["w2"].shape[1]
    outp = prep["w3"].shape[1]

    if B <= SMALL_BATCH:
        return _small_batch_forward(x_cat, x_num, prep, out_sz,
                                    cat_offsets, cont_start)

    # Batch tile: large enough to amortize the ~0.35 us per-step overhead, capped
    # for VMEM, and <= ceil(B/2) so the "parallel" grid has >= 2 steps (v7x
    # megacore can shard the batch across both TensorCores).
    tb = min(TB_CAP, max(16, _round_up((B + 1) // 2, 16)))
    bpad = _round_up(B, tb)

    xc = jnp.pad(x_cat.astype(jnp.int32), ((0, bpad - B), (0, 0)))
    xn = jnp.pad(x_num.astype(jnp.float32), ((0, bpad - B), (0, 0)))

    kernel = functools.partial(ffnn_kernel, cat_offsets=cat_offsets,
                               cont_start=cont_start, kp=kp)

    flops = 2 * bpad * (kp * h1p + h1p * h2p + h2p * outp)
    bytes_accessed = (xc.size * 4 + xn.size * 4 + bpad * outp * 4
                      + (prep["w1"].size + prep["w2"].size + prep["w3"].size) * 2
                      + (h1p + h2p + outp) * 4)

    out = pl.pallas_call(
        kernel,
        out_shape=jax.ShapeDtypeStruct((bpad, outp), jnp.float32),
        grid_spec=pltpu.PrefetchScalarGridSpec(
            num_scalar_prefetch=0,
            grid=(bpad // tb,),
            in_specs=[
                pl.BlockSpec((tb, n_cat), lambda i: (i, 0)),    # batch-tiled indices
                pl.BlockSpec((tb, n_cont), lambda i: (i, 0)),   # batch-tiled cont feats
                pl.BlockSpec((kp, h1p), lambda i: (0, 0)),      # weights/biases resident
                pl.BlockSpec((1, h1p), lambda i: (0, 0)),
                pl.BlockSpec((h1p, h2p), lambda i: (0, 0)),
                pl.BlockSpec((1, h2p), lambda i: (0, 0)),
                pl.BlockSpec((h2p, outp), lambda i: (0, 0)),
                pl.BlockSpec((1, outp), lambda i: (0, 0)),
            ],
            out_specs=pl.BlockSpec((tb, outp), lambda i: (i, 0)),
        ),
        compiler_params=pltpu.CompilerParams(
            dimension_semantics=("parallel",),
            vmem_limit_bytes=32 * 1024 * 1024),
        cost_estimate=pl.CostEstimate(
            flops=int(flops), transcendentals=0, bytes_accessed=int(bytes_accessed)),
    )(xc, xn, prep["w1"], prep["b1"], prep["w2"], prep["b2"],
      prep["w3"], prep["b3"])

    return out[:B, :out_sz]


# -------------------------------------------------------------- synthetic parameters
def make_params(key, embedding_dimensions, n_cont, layers, out_sz):
    """Deterministic synthetic parameters matching the PyTorch module shapes."""
    n_emb = sum(out for _, out in embedding_dimensions)
    ks = list(jax.random.split(key, 32))

    def nk():
        return ks.pop()

    def bn_pack(c):
        gamma = jax.random.normal(nk(), (1, c)) * 0.1 + 1.0
        beta = jax.random.normal(nk(), (1, c)) * 0.1
        mean = jax.random.normal(nk(), (1, c)) * 0.1
        var = jax.random.uniform(nk(), (1, c), minval=0.5, maxval=1.5)
        return jnp.concatenate([gamma, beta, mean, var], axis=0).astype(jnp.float32)

    emb_tables = [jax.random.normal(nk(), (inp, out), jnp.float32) * 0.1
                  for inp, out in embedding_dimensions]

    h1, h2 = layers
    w1 = jax.random.normal(nk(), (n_emb + n_cont, h1), jnp.float32) * 0.1
    return {
        "emb_tables": emb_tables,
        "bn_cont": bn_pack(n_cont),
        "w1_emb": w1[:n_emb, :],
        "w1_num": w1[n_emb:, :],
        "b1": jax.random.normal(nk(), (1, h1), jnp.float32) * 0.1,
        "bn1": bn_pack(h1),
        "w2": jax.random.normal(nk(), (h1, h2), jnp.float32) * 0.1,
        "b2": jax.random.normal(nk(), (1, h2), jnp.float32) * 0.1,
        "bn2": bn_pack(h2),
        "w3": jax.random.normal(nk(), (h2, out_sz), jnp.float32) * 0.1,
        "b3": jax.random.normal(nk(), (1, out_sz), jnp.float32) * 0.1,
    }


def reference_forward(x_cat, x_num, params):
    """Pure-JAX f32 reference mirroring the PyTorch eval-mode forward."""
    def bn(x, p):
        return (x - p[2:3]) * jax.lax.rsqrt(p[3:4] + BN_EPS) * p[0:1] + p[1:2]

    embs = [jnp.take(t, x_cat[:, i], axis=0)
            for i, t in enumerate(params["emb_tables"])]
    x = jnp.concatenate(embs, axis=1)
    xn = bn(x_num, params["bn_cont"])
    x = jnp.concatenate([x, xn], axis=1)
    w1 = jnp.concatenate([params["w1_emb"], params["w1_num"]], axis=0)
    h = jnp.maximum(x @ w1 + params["b1"], 0.0)
    h = bn(h, params["bn1"])
    h = jnp.maximum(h @ params["w2"] + params["b2"], 0.0)
    h = bn(h, params["bn2"])
    return h @ params["w3"] + params["b3"]


if __name__ == "__main__":
    # Small synthetic config consistent with the module:
    # 4 categorical columns, 5 continuous columns, layers=[32, 16], out_sz=1.
    embedding_dimensions = [(15, 8), (5, 3), (4, 2), (2, 1)]   # n_emb = 14
    n_cont = 5
    layers = [32, 16]
    out_sz = 1

    # Static categorical lane offsets for the in-kernel one-hot construction.
    cat_offsets = []
    acc = 0
    for n_j, _ in embedding_dimensions:
        cat_offsets.append(acc)
        acc += n_j
    cat_offsets = tuple(cat_offsets)
    cont_start = acc                                            # 26

    key = jax.random.PRNGKey(0)
    k_par, k_cat, k_num = jax.random.split(key, 3)
    params = make_params(k_par, embedding_dimensions, n_cont, layers, out_sz)
    prep = fold_and_pad_params(params, embedding_dimensions, n_cont, layers, out_sz)

    def make_inputs(batch, kc, kn):
        cat_keys = jax.random.split(kc, len(embedding_dimensions))
        x_cat = jnp.stack(
            [jax.random.randint(cat_keys[i], (batch,), 0, embedding_dimensions[i][0])
             for i in range(len(embedding_dimensions))], axis=1).astype(jnp.int32)
        x_num = jax.random.normal(kn, (batch, n_cont), jnp.float32)
        return x_cat, x_num

    # 1) Pallas path: batch above the small-batch threshold -> >= 2 grid tiles.
    x_cat_big, x_num_big = make_inputs(512, k_cat, k_num)
    out_big = ffnn_forward(x_cat_big, x_num_big, prep, out_sz=out_sz,
                           cat_offsets=cat_offsets, cont_start=cont_start)
    out_big = jax.block_until_ready(out_big)
    ref_big = reference_forward(x_cat_big, x_num_big, params)
    assert out_big.shape == (512, out_sz)
    # bf16 matmul inputs (f32 accumulation) -> slightly looser tolerance vs f32 ref.
    assert jnp.allclose(out_big, ref_big, atol=2e-2, rtol=2e-2), \
        "Pallas path mismatch vs reference"

    # 2) Small-batch XLA fast path.
    x_cat_s, x_num_s = make_inputs(8, k_num, k_cat)
    out_s = ffnn_forward(x_cat_s, x_num_s, prep, out_sz=out_sz,
                         cat_offsets=cat_offsets, cont_start=cont_start)
    out_s = jax.block_until_ready(out_s)
    ref_s = reference_forward(x_cat_s, x_num_s, params)
    assert out_s.shape == (8, out_sz)
    assert jnp.allclose(out_s, ref_s, atol=2e-2, rtol=2e-2), \
        "small-batch path mismatch vs reference"

    print("KERNEL_OK")
</pallas_src>

<mosaic_0001>
module attributes {stable_mosaic.version = 11 : i64} {
  func.func @ffnn_kernel(%arg0: i32, %arg1: memref<256x4xi32, #tpu.memory_space<vmem>>, %arg2: memref<256x5xf32, #tpu.memory_space<vmem>>, %arg3: memref<32x128xbf16, #tpu.memory_space<vmem>>, %arg4: memref<1x128xf32, #tpu.memory_space<vmem>>, %arg5: memref<128x128xbf16, #tpu.memory_space<vmem>>, %arg6: memref<1x128xf32, #tpu.memory_space<vmem>>, %arg7: memref<128x8xbf16, #tpu.memory_space<vmem>>, %arg8: memref<1x8xf32, #tpu.memory_space<vmem>>, %arg9: memref<256x8xf32, #tpu.memory_space<vmem>>) attributes {dimension_semantics = [#tpu.dimension_semantics<parallel>], iteration_bounds = array<i64: 2>, scalar_prefetch = 0 : i64, scratch_operands = 0 : i64, tpu.core_type = #tpu.core_type<tc>, window_params = [{transform_indices = @transform_0, window_bounds = array<i64: 256, 4>}, {transform_indices = @transform_1, window_bounds = array<i64: 256, 5>}, {pipeline_mode = #tpu.pipeline_mode<synchronous>, transform_indices = @transform_2, window_bounds = array<i64: 32, 128>}, {pipeline_mode = #tpu.pipeline_mode<synchronous>, transform_indices = @transform_3, window_bounds = array<i64: 1, 128>}, {pipeline_mode = #tpu.pipeline_mode<synchronous>, transform_indices = @transform_4, window_bounds = array<i64: 128, 128>}, {pipeline_mode = #tpu.pipeline_mode<synchronous>, transform_indices = @transform_5, window_bounds = array<i64: 1, 128>}, {pipeline_mode = #tpu.pipeline_mode<synchronous>, transform_indices = @transform_6, window_bounds = array<i64: 128, 8>}, {pipeline_mode = #tpu.pipeline_mode<synchronous>, transform_indices = @transform_7, window_bounds = array<i64: 1, 8>}, {transform_indices = @transform_8, window_bounds = array<i64: 256, 8>}]} {
    %0 = tpu.iota {dimensions = array<i32: 1>} : vector<256x32xi32>
    %c0 = arith.constant 0 : index
    %c0_0 = arith.constant 0 : index
    %1 = vector.load %arg1[%c0, %c0_0] : memref<256x4xi32, #tpu.memory_space<vmem>>, vector<256x4xi32>
    %c0_1 = arith.constant 0 : index
    %c0_2 = arith.constant 0 : index
    %2 = vector.load %arg2[%c0_1, %c0_2] : memref<256x5xf32, #tpu.memory_space<vmem>>, vector<256x5xf32>
    %cst = arith.constant 0.000000e+00 : f32
    %3 = vector.broadcast %cst : f32 to vector<256x32xf32>
    %4 = vector.extract_strided_slice %1 {offsets = [0, 0], sizes = [256, 1], strides = [1, 1]} : vector<256x4xi32> to vector<256x1xi32>
    %c0_i32 = arith.constant 0 : i32
    %5 = vector.broadcast %c0_i32 : i32 to vector<256x1xi32>
    %6 = arith.addi %4, %5 : vector<256x1xi32>
    %7 = vector.broadcast %6 : vector<256x1xi32> to vector<256x32xi32>
    %8 = arith.cmpi eq, %0, %7 : vector<256x32xi32>
    %9 = arith.extui %8 : vector<256x32xi1> to vector<256x32xi32>
    %10 = arith.sitofp %9 : vector<256x32xi32> to vector<256x32xf32>
    %11 = arith.addf %3, %10 : vector<256x32xf32>
    %12 = vector.extract_strided_slice %1 {offsets = [0, 1], sizes = [256, 1], strides = [1, 1]} : vector<256x4xi32> to vector<256x1xi32>
    %c15_i32 = arith.constant 15 : i32
    %13 = vector.broadcast %c15_i32 : i32 to vector<256x1xi32>
    %14 = arith.addi %12, %13 : vector<256x1xi32>
    %15 = vector.broadcast %14 : vector<256x1xi32> to vector<256x32xi32>
    %16 = arith.cmpi eq, %0, %15 : vector<256x32xi32>
    %17 = arith.extui %16 : vector<256x32xi1> to vector<256x32xi32>
    %18 = arith.sitofp %17 : vector<256x32xi32> to vector<256x32xf32>
    %19 = arith.addf %11, %18 : vector<256x32xf32>
    %20 = vector.extract_strided_slice %1 {offsets = [0, 2], sizes = [256, 1], strides = [1, 1]} : vector<256x4xi32> to vector<256x1xi32>
    %c20_i32 = arith.constant 20 : i32
    %21 = vector.broadcast %c20_i32 : i32 to vector<256x1xi32>
    %22 = arith.addi %20, %21 : vector<256x1xi32>
    %23 = vector.broadcast %22 : vector<256x1xi32> to vector<256x32xi32>
    %24 = arith.cmpi eq, %0, %23 : vector<256x32xi32>
    %25 = arith.extui %24 : vector<256x32xi1> to vector<256x32xi32>
    %26 = arith.sitofp %25 : vector<256x32xi32> to vector<256x32xf32>
    %27 = arith.addf %19, %26 : vector<256x32xf32>
    %28 = vector.extract_strided_slice %1 {offsets = [0, 3], sizes = [256, 1], strides = [1, 1]} : vector<256x4xi32> to vector<256x1xi32>
    %c24_i32 = arith.constant 24 : i32
    %29 = vector.broadcast %c24_i32 : i32 to vector<256x1xi32>
    %30 = arith.addi %28, %29 : vector<256x1xi32>
    %31 = vector.broadcast %30 : vector<256x1xi32> to vector<256x32xi32>
    %32 = arith.cmpi eq, %0, %31 : vector<256x32xi32>
    %33 = arith.extui %32 : vector<256x32xi1> to vector<256x32xi32>
    %34 = arith.sitofp %33 : vector<256x32xi32> to vector<256x32xf32>
    %35 = arith.addf %27, %34 : vector<256x32xf32>
    %c26_i32 = arith.constant 26 : i32
    %36 = vector.broadcast %c26_i32 : i32 to vector<256x32xi32>
    %37 = arith.cmpi eq, %0, %36 : vector<256x32xi32>
    %38 = vector.extract_strided_slice %2 {offsets = [0, 0], sizes = [256, 1], strides = [1, 1]} : vector<256x5xf32> to vector<256x1xf32>
    %cst_3 = arith.constant 0.000000e+00 : f32
    %39 = vector.shape_cast %38 : vector<256x1xf32> to vector<256x1xf32>
    %40 = vector.broadcast %39 : vector<256x1xf32> to vector<256x32xf32>
    %41 = vector.broadcast %cst_3 : f32 to vector<256x32xf32>
    %42 = arith.select %37, %40, %41 : vector<256x32xi1>, vector<256x32xf32>
    %43 = arith.addf %35, %42 : vector<256x32xf32>
    %c27_i32 = arith.constant 27 : i32
    %44 = vector.broadcast %c27_i32 : i32 to vector<256x32xi32>
    %45 = arith.cmpi eq, %0, %44 : vector<256x32xi32>
    %46 = vector.extract_strided_slice %2 {offsets = [0, 1], sizes = [256, 1], strides = [1, 1]} : vector<256x5xf32> to vector<256x1xf32>
    %cst_4 = arith.constant 0.000000e+00 : f32
    %47 = vector.shape_cast %46 : vector<256x1xf32> to vector<256x1xf32>
    %48 = vector.broadcast %47 : vector<256x1xf32> to vector<256x32xf32>
    %49 = vector.broadcast %cst_4 : f32 to vector<256x32xf32>
    %50 = arith.select %45, %48, %49 : vector<256x32xi1>, vector<256x32xf32>
    %51 = arith.addf %43, %50 : vector<256x32xf32>
    %c28_i32 = arith.constant 28 : i32
    %52 = vector.broadcast %c28_i32 : i32 to vector<256x32xi32>
    %53 = arith.cmpi eq, %0, %52 : vector<256x32xi32>
    %54 = vector.extract_strided_slice %2 {offsets = [0, 2], sizes = [256, 1], strides = [1, 1]} : vector<256x5xf32> to vector<256x1xf32>
    %cst_5 = arith.constant 0.000000e+00 : f32
    %55 = vector.shape_cast %54 : vector<256x1xf32> to vector<256x1xf32>
    %56 = vector.broadcast %55 : vector<256x1xf32> to vector<256x32xf32>
    %57 = vector.broadcast %cst_5 : f32 to vector<256x32xf32>
    %58 = arith.select %53, %56, %57 : vector<256x32xi1>, vector<256x32xf32>
    %59 = arith.addf %51, %58 : vector<256x32xf32>
    %c29_i32 = arith.constant 29 : i32
    %60 = vector.broadcast %c29_i32 : i32 to vector<256x32xi32>
    %61 = arith.cmpi eq, %0, %60 : vector<256x32xi32>
    %62 = vector.extract_strided_slice %2 {offsets = [0, 3], sizes = [256, 1], strides = [1, 1]} : vector<256x5xf32> to vector<256x1xf32>
    %cst_6 = arith.constant 0.000000e+00 : f32
    %63 = vector.shape_cast %62 : vector<256x1xf32> to vector<256x1xf32>
    %64 = vector.broadcast %63 : vector<256x1xf32> to vector<256x32xf32>
    %65 = vector.broadcast %cst_6 : f32 to vector<256x32xf32>
    %66 = arith.select %61, %64, %65 : vector<256x32xi1>, vector<256x32xf32>
    %67 = arith.addf %59, %66 : vector<256x32xf32>
    %c30_i32 = arith.constant 30 : i32
    %68 = vector.broadcast %c30_i32 : i32 to vector<256x32xi32>
    %69 = arith.cmpi eq, %0, %68 : vector<256x32xi32>
    %70 = vector.extract_strided_slice %2 {offsets = [0, 4], sizes = [256, 1], strides = [1, 1]} : vector<256x5xf32> to vector<256x1xf32>
    %cst_7 = arith.constant 0.000000e+00 : f32
    %71 = vector.shape_cast %70 : vector<256x1xf32> to vector<256x1xf32>
    %72 = vector.broadcast %71 : vector<256x1xf32> to vector<256x32xf32>
    %73 = vector.broadcast %cst_7 : f32 to vector<256x32xf32>
    %74 = arith.select %69, %72, %73 : vector<256x32xi1>, vector<256x32xf32>
    %75 = arith.addf %67, %74 : vector<256x32xf32>
    %76 = arith.truncf %75 : vector<256x32xf32> to vector<256x32xbf16>
    %c0_8 = arith.constant 0 : index
    %c0_9 = arith.constant 0 : index
    %77 = vector.load %arg3[%c0_8, %c0_9] : memref<32x128xbf16, #tpu.memory_space<vmem>>, vector<32x128xbf16>
    %cst_10 = arith.constant dense<0.000000e+00> : vector<256x128xf32>
    %78 = tpu.matmul %76, %77, %cst_10 {dimension_numbers = #tpu.dot_dimension_numbers<[1], [0], [0], [1], [0, 0, 1, 1], [], []>} : vector<256x32xbf16>, vector<32x128xbf16>, vector<256x128xf32> -> vector<256x128xf32>
    %c0_11 = arith.constant 0 : index
    %c0_12 = arith.constant 0 : index
    %79 = vector.load %arg4[%c0_11, %c0_12] : memref<1x128xf32, #tpu.memory_space<vmem>>, vector<1x128xf32>
    %80 = vector.broadcast %79 : vector<1x128xf32> to vector<256x128xf32>
    %81 = arith.addf %78, %80 : vector<256x128xf32>
    %cst_13 = arith.constant 0.000000e+00 : f32
    %82 = vector.broadcast %cst_13 : f32 to vector<256x128xf32>
    %83 = arith.maximumf %81, %82 : vector<256x128xf32>
    %84 = arith.truncf %83 : vector<256x128xf32> to vector<256x128xbf16>
    %c0_14 = arith.constant 0 : index
    %c0_15 = arith.constant 0 : index
    %85 = vector.load %arg5[%c0_14, %c0_15] : memref<128x128xbf16, #tpu.memory_space<vmem>>, vector<128x128xbf16>
    %cst_16 = arith.constant dense<0.000000e+00> : vector<256x128xf32>
    %86 = tpu.matmul %84, %85, %cst_16 {dimension_numbers = #tpu.dot_dimension_numbers<[1], [0], [0], [1], [0, 0, 1, 1], [], []>} : vector<256x128xbf16>, vector<128x128xbf16>, vector<256x128xf32> -> vector<256x128xf32>
    %c0_17 = arith.constant 0 : index
    %c0_18 = arith.constant 0 : index
    %87 = vector.load %arg6[%c0_17, %c0_18] : memref<1x128xf32, #tpu.memory_space<vmem>>, vector<1x128xf32>
    %88 = vector.broadcast %87 : vector<1x128xf32> to vector<256x128xf32>
    %89 = arith.addf %86, %88 : vector<256x128xf32>
    %cst_19 = arith.constant 0.000000e+00 : f32
    %90 = vector.broadcast %cst_19 : f32 to vector<256x128xf32>
    %91 = arith.maximumf %89, %90 : vector<256x128xf32>
    %92 = arith.truncf %91 : vector<256x128xf32> to vector<256x128xbf16>
    %c0_20 = arith.constant 0 : index
    %c0_21 = arith.constant 0 : index
    %93 = vector.load %arg7[%c0_20, %c0_21] : memref<128x8xbf16, #tpu.memory_space<vmem>>, vector<128x8xbf16>
    %cst_22 = arith.constant dense<0.000000e+00> : vector<256x8xf32>
    %94 = tpu.matmul %92, %93, %cst_22 {dimension_numbers = #tpu.dot_dimension_numbers<[1], [0], [0], [1], [0, 0, 1, 1], [], []>} : vector<256x128xbf16>, vector<128x8xbf16>, vector<256x8xf32> -> vector<256x8xf32>
    %c0_23 = arith.constant 0 : index
    %c0_24 = arith.constant 0 : index
    %95 = vector.load %arg8[%c0_23, %c0_24] : memref<1x8xf32, #tpu.memory_space<vmem>>, vector<1x8xf32>
    %96 = vector.broadcast %95 : vector<1x8xf32> to vector<256x8xf32>
    %97 = arith.addf %94, %96 : vector<256x8xf32>
    %c0_25 = arith.constant 0 : index
    %c0_26 = arith.constant 0 : index
    %98 = vector.load %arg9[%c0_25, %c0_26] : memref<256x8xf32, #tpu.memory_space<vmem>>, vector<256x8xf32>
    tpu.vector_store %arg9[%c0_25, %c0_26], %97 {strides = array<i32>} : memref<256x8xf32, #tpu.memory_space<vmem>>, vector<256x8xf32>,
    return
  }
  func.func @transform_0(%arg0: i32) -> (i32, i32) {
    %c0_i32 = arith.constant 0 : i32
    %c0_i32_0 = arith.constant 0 : i32
    return %arg0, %c0_i32 : i32, i32
  }
  func.func @transform_1(%arg0: i32) -> (i32, i32) {
    %c0_i32 = arith.constant 0 : i32
    %c0_i32_0 = arith.constant 0 : i32
    return %arg0, %c0_i32 : i32, i32
  }
  func.func @transform_2(%arg0: i32) -> (i32, i32) {
    %c0_i32 = arith.constant 0 : i32
    %c0_i32_0 = arith.constant 0 : i32
    %c0_i32_1 = arith.constant 0 : i32
    return %c0_i32, %c0_i32_0 : i32, i32
  }
  func.func @transform_3(%arg0: i32) -> (i32, i32) {
    %c0_i32 = arith.constant 0 : i32
    %c0_i32_0 = arith.constant 0 : i32
    %c0_i32_1 = arith.constant 0 : i32
    return %c0_i32, %c0_i32_0 : i32, i32
  }
  func.func @transform_4(%arg0: i32) -> (i32, i32) {
    %c0_i32 = arith.constant 0 : i32
    %c0_i32_0 = arith.constant 0 : i32
    %c0_i32_1 = arith.constant 0 : i32
    return %c0_i32, %c0_i32_0 : i32, i32
  }
  func.func @transform_5(%arg0: i32) -> (i32, i32) {
    %c0_i32 = arith.constant 0 : i32
    %c0_i32_0 = arith.constant 0 : i32
    %c0_i32_1 = arith.constant 0 : i32
    return %c0_i32, %c0_i32_0 : i32, i32
  }
  func.func @transform_6(%arg0: i32) -> (i32, i32) {
    %c0_i32 = arith.constant 0 : i32
    %c0_i32_0 = arith.constant 0 : i32
    %c0_i32_1 = arith.constant 0 : i32
    return %c0_i32, %c0_i32_0 : i32, i32
  }
  func.func @transform_7(%arg0: i32) -> (i32, i32) {
    %c0_i32 = arith.constant 0 : i32
    %c0_i32_0 = arith.constant 0 : i32
    %c0_i32_1 = arith.constant 0 : i32
    return %c0_i32, %c0_i32_0 : i32, i32
  }
  func.func @transform_8(%arg0: i32) -> (i32, i32) {
    %c0_i32 = arith.constant 0 : i32
    %c0_i32_0 = arith.constant 0 : i32
    return %arg0, %c0_i32 : i32, i32
  }
}

</mosaic_0001>

<bundles_post_ra>
// kernel: ffnn_forward.1
= control target key start
LH: loop header
LB: loop body
LE: loop exit
PB: predicated region body
PF: predicated region fallthrough
CT: control target
= control target key end

     0   :  { %s3873_s27 = smov 0   ;;  %s6173_s0 = inlined_call_operand.vmem [shape: s32[512,4], index: 0, kind: input, shape index: {}]   ;;  %s6174_s1 = inlined_call_operand.vmem [shape: f32[512,5], index: 1, kind: input, shape index: {}]   ;;  %s6175_s2 = inlined_call_operand.vmem [shape: bf16[32,128], index: 2, kind: input, shape index: {}]   ;;  %s6176_s3 = inlined_call_operand.vmem [shape: f32[1,128], index: 3, kind: input, shape index: {}]   ;;  %s6177_s4 = inlined_call_operand.vmem [shape: bf16[128,128], index: 4, kind: input, shape index: {}]   ;;  %s6178_s5 = inlined_call_operand.vmem [shape: f32[1,128], index: 5, kind: input, shape index: {}]   ;;  %s6179_s6 = inlined_call_operand.vmem [shape: bf16[128,8], index: 6, kind: input, shape index: {}]   ;;  %s6180_s7 = inlined_call_operand.vmem [shape: f32[1,8], index: 7, kind: input, shape index: {}]   ;;  %s6181_s8 = inlined_call_operand.vmem [shape: f32[512,8], index: 8, kind: output, shape index: {}]  }
   0x1 LB: > { %s3297_s28 = sadd.s32 4294967295, %s3820_s27   ;;  %p3301_p0 = scmp.ge.s32.totalorder %s3820_s27, 1  ;;  %s3820_s27 = sphi %s3873_s27, %s18_s27  }
   0x2   : > { %p274_p1 = scmp.lt.s32.totalorder %s3820_s27, 3 }
   0x4   : > { %p275_p2 = pnand %p3301_p0, %p274_p1 }
   0x6   : > { %278 = sbr.rel (%p275_p2) target bundleno = 1550 (0x60e), region = 52 }
   0xd   : > { %s3302_s29 = sshll.u32 %s3297_s28, 5  ;;  %v6182_v0 = vmov 4   ;;  %v6186_v1 = vmov 0   ;;  %v6188_v36 = vmov 1  }
   0xe   : > { %3703 = vset.pattern.permute.xlu0 %v6182_v0  ;;  %3691 = vset.pattern.permute.xlu1 %v6186_v1  ;;  %p314_p3 = scmp.lt.s32.totalorder %s3302_s29, 63 }
  0x10   : > { %s6508_s29 = smov (!%p314_p3, %s3302_s29), 63 }
  0x11   : > { %s3883_s30 = sshll.u32 %s6508_s29, 3 }
  0x12   : > { %s3889_s11 = scalar_lea.vmem %s6174_s1, %s3883_s30  ;;  %s3895_s14 = scalar_lea.vmem %s6173_s0, %s3883_s30 }
  0x13   : > { %v3898_v2 = vld [vmem:[%s3889_s11 + $0x8] sm:$0xff]  ;;  %v3901_v3 = vld [vmem:[%s3895_s14 + $0x10] sm:$0xff]  ;;  %v3909_v5 = vld [vmem:[%s3895_s14 + $0x18] sm:$0xff]  ;;  %s6072_s19 = scalar_lea.vmem %s6181_s8, %s3883_s30 }
  0x14   : > { %2200 = vperm.xlu0 %3703, %v3898_v2   ;;  %405 = vperm.xlu1 %3691, %v3901_v3   ;;  %v3906_v4 = vld [vmem:[%s3889_s11 + $0x10] sm:$0xff]  ;;  %v3917_v7 = vld [vmem:[%s3895_s14 + $0x28] sm:$0xff]  ;;  %v3925_v9 = vld [vmem:[%s3895_s14 + $0x38] sm:$0xff]  ;;  %v624_v37 = vadd.s32 15, %v3901_v3 }
  0x15   : > { %v3914_v6 = vld [vmem:[%s3889_s11 + $0x30] sm:$0xff]  ;;  %v3922_v8 = vld [vmem:[%s3889_s11 + $0x48] sm:$0xff]  ;;  %v3941_v13 = vld [vmem:[%s3895_s14 + $0x58] sm:$0xff] }
  0x16   : > { %v3930_v10 = vld [vmem:[%s3889_s11 + $0x50] sm:$0xff]  ;;  %v3933_v11 = vld [vmem:[%s3895_s14 + $0x48] sm:$0xff]  ;;  %v3957_v17 = vld [vmem:[%s3895_s14 + $0x78] sm:$0xff] }
  0x17   : > { %v3936_v12 = vld [vmem:[%s3889_s11 + $0x70] sm:$0xff]  ;;  %v3944_v14 = vld [vmem:[%s3889_s11 + $0x88] sm:$0xff]  ;;  %v3973_v21 = vld [vmem:[%s3895_s14 + $0x98] sm:$0xff] }
  0x18   : > { %2204 = vperm.xlu0 %3703, %v3906_v4   ;;  %408 = vperm.xlu1 %3691, %v3909_v5   ;;  %v3949_v15 = vld [vmem:[%s3895_s14 + $0x68] sm:$0xff]  ;;  %v3954_v16 = vld [vmem:[%s3889_s11 + $0x90] sm:$0xff]  ;;  %v3981_v23 = vld [vmem:[%s3895_s14] sm:$0xff] }
  0x19   : > { %v3962_v18 = vld [vmem:[%s3889_s11 + $0xa8] sm:$0xff]  ;;  %v3970_v20 = vld [vmem:[%s3889_s11 + $0xb0] sm:$0xff]  ;;  %v3987_v24 = vld [vmem:[%s3895_s14 + $0xb8] sm:$0xff] }
  0x1a   : > { %v3965_v19 = vld [vmem:[%s3895_s14 + $0x88] sm:$0xff]  ;;  %v3998_v27 = vld [vmem:[%s3895_s14 + $0x20] sm:$0xff]  ;;  %v4003_v28 = vld [vmem:[%s3895_s14 + $0xd8] sm:$0xff] }
  0x1b   : > { %v3978_v22 = vld [vmem:[%s3895_s14 + $0xa8] sm:$0xff]  ;;  %v4006_v29 = vld [vmem:[%s3895_s14 + $0x30] sm:$0xff]  ;;  %v4014_v31 = vld [vmem:[%s3895_s14 + $0x40] sm:$0xff]  ;;  %v626_v39 = vadd.s32 15, %v3998_v27 }
  0x1c   : > { %2220 = vperm.xlu0 %3703, %v3914_v6   ;;  %414 = vperm.xlu1 %3691, %v3917_v7   ;;  %v3990_v25 = vld [vmem:[%s3895_s14 + $0x8] sm:$0xff]  ;;  %v4019_v32 = vld [vmem:[%s3895_s14 + $0xf8] sm:$0xff]  ;;  %v4022_v33 = vld [vmem:[%s3895_s14 + $0x50] sm:$0xff]  ;;  %v628_v41 = vadd.s32 15, %v4006_v29  ;;  %v630_v43 = vadd.s32 15, %v4014_v31 }
  0x1d   : > { %v3995_v26 = vld [vmem:[%s3895_s14 + $0xc8] sm:$0xff]  ;;  %v623_v34 = vadd.s32 15, %v3990_v25  ;;  %v4028_v35 = vld [vmem:[%s3895_s14 + $0x60] sm:$0xff]  ;;  %v4034_v38 = vld [vmem:[%s3895_s14 + $0x70] sm:$0xff]  ;;  %v632_v45 = vadd.s32 15, %v4022_v33 }
  0x1e   : > { %v4011_v30 = vld [vmem:[%s3895_s14 + $0xe8] sm:$0xff]  ;;  %v4039_v40 = vld [vmem:[%s3895_s14 + $0x80] sm:$0xff]  ;;  %v4044_v42 = vld [vmem:[%s3895_s14 + $0x90] sm:$0xff]  ;;  %v634_v47 = vadd.s32 15, %v4028_v35  ;;  %v636_v49 = vadd.s32 15, %v4034_v38 }
  0x1f   : > { %v4049_v44 = vld [vmem:[%s3895_s14 + $0xa0] sm:$0xff]  ;;  %v4054_v46 = vld [vmem:[%s3895_s14 + $0xb0] sm:$0xff]  ;;  %v638_v51 = vadd.s32 15, %v4039_v40  ;;  %v640_v53 = vadd.s32 15, %v4044_v42  ;;  %v4084_v58 = vld [vmem:[%s3889_s11 + $0x18] sm:$0xff] }
  0x20   : > { %2232 = vperm.xlu0 %3703, %v3922_v8   ;;  %420 = vperm.xlu1 %3691, %v3925_v9   ;;  %v4059_v48 = vld [vmem:[%s3895_s14 + $0xc0] sm:$0xff]  ;;  %v4064_v50 = vld [vmem:[%s3895_s14 + $0xd0] sm:$0xff]  ;;  %v642_v55 = vadd.s32 15, %v4049_v44  ;;  %v644_v57 = vadd.s32 15, %v4054_v46 }
  0x21   : > { %v4069_v52 = vld [vmem:[%s3895_s14 + $0xe0] sm:$0xff]  ;;  %v4074_v54 = vld [vmem:[%s3895_s14 + $0xf0] sm:$0xff]  ;;  %v646_v59 = vadd.s32 15, %v4059_v48  ;;  %v648_v61 = vadd.s32 15, %v4064_v50 }
  0x22   : > { %v4079_v56 = vld [vmem:[%s3889_s11] sm:$0xff]  ;;  %v650_v62 = vadd.s32 15, %v4069_v52  ;;  %v652_v63 = vadd.s32 15, %v4074_v54 }
  0x23   : > { %v4089_v60 = vld [vmem:[%s3889_s11 + $0x20] sm:$0xff] }
  0x24   : > { %2236 = vperm.xlu0 %3703, %v3930_v10   ;;  %426 = vperm.xlu1 %3691, %v3933_v11  }
  0x28   : > { %2252 = vperm.xlu0 %3703, %v3936_v12   ;;  %432 = vperm.xlu1 %3691, %v3941_v13  }
  0x2c   : > { %2264 = vperm.xlu0 %3703, %v3944_v14   ;;  %438 = vperm.xlu1 %3691, %v3949_v15  }
  0x30   : > { %2268 = vperm.xlu0 %3703, %v3954_v16   ;;  %444 = vperm.xlu1 %3691, %v3957_v17  }
  0x34   : > { %2280 = vperm.xlu0 %3703, %v3962_v18   ;;  %450 = vperm.xlu1 %3691, %v3965_v19  }
  0x38   : > { %2284 = vperm.xlu0 %3703, %v3970_v20   ;;  %456 = vperm.xlu1 %3691, %v3973_v21  }
  0x3c   : > { %3752 = vset.pattern.permute.xlu0 %v6186_v1  ;;  %462 = vperm.xlu1 %3691, %v3978_v22  }
  0x3d   : > { %399 = vperm.xlu0 %3752, %v3981_v23  }
  0x40   : > { %468 = vperm.xlu1 %3691, %v3987_v24  }
  0x41   : > { %402 = vperm.xlu0 %3752, %v3990_v25  }
  0x44   : > { %474 = vperm.xlu1 %3691, %v3995_v26  }
  0x45   : > { %411 = vperm.xlu0 %3752, %v3998_v27  }
  0x48   : > { %480 = vperm.xlu1 %3691, %v4003_v28  }
  0x49   : > { %417 = vperm.xlu0 %3752, %v4006_v29  }
  0x4c   : > { %486 = vperm.xlu1 %3691, %v4011_v30  }
  0x4d   : > { %423 = vperm.xlu0 %3752, %v4014_v31  }
  0x50   : > { %492 = vperm.xlu1 %3691, %v4019_v32  }
  0x51   : > { %429 = vperm.xlu0 %3752, %v4022_v33  }
  0x54   : > { %3692 = vset.pattern.permute.xlu1 %v6188_v36 }
  0x55   : > { %658 = vperm.xlu1 %3692, %v623_v34   ;;  %435 = vperm.xlu0 %3752, %v4028_v35   ;;  %v4098_v34 = vld [vmem:[%s3889_s11 + $0x60] sm:$0xff] }
  0x59   : > { %661 = vperm.xlu1 %3692, %v624_v37   ;;  %441 = vperm.xlu0 %3752, %v4034_v38   ;;  %v878_v37 = vadd.s32 20, %v3981_v23 }
  0x5d   : > { %667 = vperm.xlu1 %3692, %v626_v39   ;;  %447 = vperm.xlu0 %3752, %v4039_v40  }
  0x61   : > { %673 = vperm.xlu1 %3692, %v628_v41   ;;  %453 = vperm.xlu0 %3752, %v4044_v42  }
  0x65   : > { %679 = vperm.xlu1 %3692, %v630_v43   ;;  %459 = vperm.xlu0 %3752, %v4049_v44   ;;  %v6184_v43 = vmov 2  }
  0x69   : > { %685 = vperm.xlu1 %3692, %v632_v45   ;;  %465 = vperm.xlu0 %3752, %v4054_v46   ;;  %v880_v45 = vadd.s32 20, %v3901_v3 }
  0x6d   : > { %691 = vperm.xlu1 %3692, %v634_v47   ;;  %471 = vperm.xlu0 %3752, %v4059_v48  }
  0x71   : > { %697 = vperm.xlu1 %3692, %v636_v49   ;;  %477 = vperm.xlu0 %3752, %v4064_v50  }
  0x75   : > { %703 = vperm.xlu1 %3692, %v638_v51   ;;  %483 = vperm.xlu0 %3752, %v4069_v52   ;;  %v4115_v51 = vld [vmem:[%s3889_s11 + $0xa0] sm:$0xff] }
  0x79   : > { %709 = vperm.xlu1 %3692, %v640_v53   ;;  %489 = vperm.xlu0 %3752, %v4074_v54   ;;  %v881_v53 = vadd.s32 20, %v3909_v5 }
  0x7d   : > { %715 = vperm.xlu1 %3692, %v642_v55   ;;  %1393 = vperm.xlu0 %3752, %v4079_v56  }
  0x81   : > { %721 = vperm.xlu1 %3692, %v644_v57   ;;  %1408 = vperm.xlu0 %3752, %v4084_v58  }
  0x85   : > { %727 = vperm.xlu1 %3692, %v646_v59   ;;  %1413 = vperm.xlu0 %3752, %v4089_v60   ;;  %v4124_v59 = vld [vmem:[%s3889_s11 + $0xc0] sm:$0xff] }
  0x89   : > { %733 = vperm.xlu1 %3692, %v648_v61   ;;  %1438 = vperm.xlu0 %3752, %v3922_v8   ;;  %v883_v61 = vadd.s32 20, %v3917_v7 }
  0x8d   : > { %739 = vperm.xlu1 %3692, %v650_v62   ;;  %1443 = vperm.xlu0 %3752, %v3930_v10  }
  0x91   : > { %745 = vperm.xlu1 %3692, %v652_v63   ;;  %1453 = vperm.xlu0 %3752, %v4098_v34   ;;  %v4133_v63 = vld [vmem:[%s3889_s11 + $0xe8] sm:$0xff] }
  0x93   : > { %v4102_v39 = vpop.permute.xlu1 %405  ;;  %v4104_v41 = vpop.permute.xlu0 %2200 }
  0x94   : > { %6210 = vst [vmem:[#allocation2_spill] sm:$0xff] %v4104_v41 }
  0x95   : > { %3693 = vset.pattern.permute.xlu1 %v6184_v43  ;;  %1478 = vperm.xlu0 %3752, %v3944_v14   ;;  %v887_v43 = vadd.s32 20, %v3933_v11 }
  0x96   : > { %911 = vperm.xlu1 %3693, %v878_v37   ;;  %v885_v37 = vadd.s32 20, %v3925_v9 }
  0x97   : > { %v4109_v47 = vpop.permute.xlu1 %408  ;;  %v4111_v49 = vpop.permute.xlu0 %2204 }
  0x98   : > { %6211 = vst [vmem:[#allocation3_spill] sm:$0xff] %v4111_v49 }
  0x99   : > { %1483 = vperm.xlu0 %3752, %v3954_v16  }
  0x9a   : > { %917 = vperm.xlu1 %3693, %v880_v45  }
  0x9b   : > { %v4118_v55 = vpop.permute.xlu1 %414  ;;  %v4120_v57 = vpop.permute.xlu0 %2220 }
  0x9c   : > { %6212 = vst [vmem:[#allocation4_spill] sm:$0xff] %v4120_v57 }
  0x9d   : > { %1493 = vperm.xlu0 %3752, %v4115_v51  }
  0x9e   : > { %920 = vperm.xlu1 %3693, %v881_v53   ;;  %v396_v53 = vld [vmem:[%s3889_s11 + $0xf0] sm:$0xff] }
  0x9f   : > { %v4127_v62 = vpop.permute.xlu1 %420  ;;  %v4129_v16 = vpop.permute.xlu0 %2232 }
  0xa0   : > { %6213 = vst [vmem:[#allocation5_spill] sm:$0xff] %v4129_v16  ;;  %v622_v16 = vadd.s32 15, %v3981_v23 }
  0xa1   : > { %1513 = vperm.xlu0 %3752, %v4124_v59  }
  0xa2   : > { %926 = vperm.xlu1 %3693, %v883_v61   ;;  %v889_v61 = vadd.s32 20, %v3941_v13 }
  0xa3   : > { %v4136_v45 = vpop.permute.xlu1 %426  ;;  %v4138_v0 = vpop.permute.xlu0 %2236 }
  0xa4   : > { %6214 = vst [vmem:[#allocation6_spill] sm:$0xff] %v4136_v45  ;;  %6215 = vst [vmem:[#allocation7_spill] sm:$0xff] %v4138_v0  ;;  %v6220_v0 = vmov 1  }
  0xa5   : > { %1538 = vperm.xlu0 %3752, %v4133_v63  }
  0xa6   : > { %932 = vperm.xlu1 %3693, %v885_v37   ;;  %v891_v37 = vadd.s32 20, %v3949_v15 }
  0xa7   : > { %v4143_v1 = vpop.permute.xlu1 %432  ;;  %v4145_v36 = vpop.permute.xlu0 %2252 }
  0xa8   : > { %6216 = vst [vmem:[#allocation8_spill] sm:$0xff] %v4143_v1  ;;  %6217 = vst [vmem:[#allocation9_spill] sm:$0xff] %v4145_v36  ;;  %v625_v1 = vadd.s32 15, %v3909_v5  ;;  %v627_v36 = vadd.s32 15, %v3917_v7 }
  0xa9   : > { %1543 = vperm.xlu0 %3752, %v396_v53  }
  0xaa   : > { %938 = vperm.xlu1 %3693, %v887_v43   ;;  %v893_v43 = vadd.s32 20, %v3957_v17 }
  0xab   : > { %v4149_v57 = vpop.permute.xlu1 %438  ;;  %v4151_v49 = vpop.permute.xlu0 %2264 }
  0xac   : > { %6218 = vst [vmem:[#allocation10_spill] sm:$0xff] %v4149_v57  ;;  %6219 = vst [vmem:[#allocation11_spill] sm:$0xff] %v4151_v49 }
  0xad   : > { %3763 = vset.pattern.permute.xlu0 %v6220_v0 }
  0xae   : > { %944 = vperm.xlu1 %3693, %v889_v61   ;;  %655 = vperm.xlu0 %3763, %v622_v16   ;;  %v895_v16 = vadd.s32 20, %v3965_v19  ;;  %v629_v61 = vadd.s32 15, %v3925_v9 }
  0xaf   : > { %v4156_v45 = vpop.permute.xlu1 %444  ;;  %v4158_v53 = vpop.permute.xlu0 %2268 }
  0xb0   : > { %6221 = vst [vmem:[#allocation12_spill] sm:$0xff] %v4156_v45  ;;  %6222 = vst [vmem:[#allocation13_spill] sm:$0xff] %v4158_v53 }
  0xb2   : > { %950 = vperm.xlu1 %3693, %v891_v37   ;;  %664 = vperm.xlu0 %3763, %v625_v1   ;;  %v897_v1 = vadd.s32 20, %v3973_v21  ;;  %v631_v37 = vadd.s32 15, %v3933_v11 }
  0xb3   : > { %v4162_v57 = vpop.permute.xlu1 %450  ;;  %v4164_v49 = vpop.permute.xlu0 %2280 }
  0xb4   : > { %6223 = vst [vmem:[#allocation14_spill] sm:$0xff] %v4162_v57  ;;  %6224 = vst [vmem:[#allocation15_spill] sm:$0xff] %v4164_v49 }
  0xb6   : > { %956 = vperm.xlu1 %3693, %v893_v43   ;;  %670 = vperm.xlu0 %3763, %v627_v36   ;;  %v899_v36 = vadd.s32 20, %v3978_v22  ;;  %v633_v43 = vadd.s32 15, %v3941_v13 }
  0xb7   : > { %v4168_v41 = vpop.permute.xlu1 %456  ;;  %v4170_v45 = vpop.permute.xlu0 %2284 }
  0xb8   : > { %6225 = vst [vmem:[#allocation16_spill] sm:$0xff] %v4168_v41  ;;  %6226 = vst [vmem:[#allocation17_spill] sm:$0xff] %v4170_v45 }
  0xba   : > { %962 = vperm.xlu1 %3693, %v895_v16   ;;  %676 = vperm.xlu0 %3763, %v629_v61   ;;  %v901_v16 = vadd.s32 20, %v3987_v24  ;;  %v635_v61 = vadd.s32 15, %v3949_v15 }
  0xbb   : > { %v4174_v53 = vpop.permute.xlu1 %462 }
  0xbc   : > { %6227 = vst [vmem:[#allocation18_spill] sm:$0xff] %v4174_v53  ;;  %v4176_v57 = vpop.permute.xlu0 %399 }
  0xbd   : > { %6228 = vst [vmem:[#allocation19_spill] sm:$0xff] %v4176_v57 }
  0xbe   : > { %968 = vperm.xlu1 %3693, %v897_v1   ;;  %682 = vperm.xlu0 %3763, %v631_v37   ;;  %v637_v1 = vadd.s32 15, %v3957_v17 }
  0xbf   : > { %v4180_v49 = vpop.permute.xlu1 %468 }
  0xc0   : > { %6229 = vst [vmem:[#allocation20_spill] sm:$0xff] %v4180_v49  ;;  %v4182_v41 = vpop.permute.xlu0 %402  ;;  %v1134_v49 = vadd.s32 24, %v3981_v23  ;;  %v1137_v23 = vadd.s32 24, %v3909_v5 }
  0xc1   : > { %6230 = vst [vmem:[#allocation21_spill] sm:$0xff] %v4182_v41 }
  0xc2   : > { %974 = vperm.xlu1 %3693, %v899_v36   ;;  %688 = vperm.xlu0 %3763, %v633_v43   ;;  %v6192_v36 = vmov 3   ;;  %v639_v43 = vadd.s32 15, %v3965_v19 }
  0xc3   : > { %v4186_v45 = vpop.permute.xlu1 %474 }
  0xc4   : > { %6231 = vst [vmem:[#allocation22_spill] sm:$0xff] %v4186_v45  ;;  %v4188_v53 = vpop.permute.xlu0 %411 }
  0xc6   : > { %980 = vperm.xlu1 %3693, %v901_v16   ;;  %694 = vperm.xlu0 %3763, %v635_v61   ;;  %v1136_v16 = vadd.s32 24, %v3901_v3  ;;  %v645_v3 = vadd.s32 15, %v3987_v24  ;;  %v649_v24 = vadd.s32 15, %v4003_v28  ;;  %v653_v28 = vadd.s32 15, %v4019_v32 }
  0xc7   : > { %v4191_v37 = vpop.permute.xlu1 %480  ;;  %v1138_v32 = vadd.s32 24, %v3998_v27 }
  0xc8   : > { %6232 = vst [vmem:[#allocation23_spill] sm:$0xff] %v4191_v37  ;;  %v4194_v57 = vpop.permute.xlu0 %417  ;;  %v641_v37 = vadd.s32 15, %v3973_v21 }
  0xc9   : > { %6233 = vst [vmem:[#allocation24_spill] sm:$0xff] %v4194_v57 }
  0xca   : > { %3694 = vset.pattern.permute.xlu1 %v6192_v36  ;;  %700 = vperm.xlu0 %3763, %v637_v1   ;;  %v643_v1 = vadd.s32 15, %v3978_v22 }
  0xcb   : > { %v4198_v41 = vpop.permute.xlu1 %486  ;;  %1167 = vperm.xlu1 %3694, %v1134_v49  }
  0xcc   : > { %6234 = vst [vmem:[#allocation25_spill] sm:$0xff] %v4198_v41  ;;  %v4201_v61 = vpop.permute.xlu0 %423 }
  0xce   : > { %706 = vperm.xlu0 %3763, %v639_v43   ;;  %v6238_v43 = vmov 0  }
  0xcf   : > { %v4204_v45 = vpop.permute.xlu1 %492  ;;  %1173 = vperm.xlu1 %3694, %v1136_v16  }
  0xd0   : > { %6235 = vst [vmem:[#allocation26_spill] sm:$0xff] %v4204_v45  ;;  %v4207_v57 = vpop.permute.xlu0 %429 }
  0xd1   : > { %6236 = vst [vmem:[#allocation27_spill] sm:$0xff] %v4207_v57 }
  0xd2   : > { %712 = vperm.xlu0 %3763, %v641_v37   ;;  %v647_v37 = vadd.s32 15, %v3995_v26  ;;  %v651_v26 = vadd.s32 15, %v4011_v30 }
  0xd3   : > { %1176 = vperm.xlu1 %3694, %v1137_v23  }
  0xd4   : > { %v4210_v36 = vpop.permute.xlu1 %658  ;;  %v4212_v49 = vpop.permute.xlu0 %435 }
  0xd5   : > { %6237 = vst [vmem:[#allocation28_spill] sm:$0xff] %v4212_v49 }
  0xd6   : > { %718 = vperm.xlu0 %3763, %v643_v1  }
  0xd7   : > { %3695 = vset.pattern.permute.xlu1 %v6238_v43 }
  0xd8   : > { %v4216_v41 = vpop.permute.xlu1 %661  ;;  %1398 = vperm.xlu1 %3695, %v3898_v2   ;;  %v4219_v5 = vpop.permute.xlu0 %441 }
  0xd9   : > { %6239 = vst [vmem:[#allocation29_spill] sm:$0xff] %v4219_v5 }
  0xda   : > { %724 = vperm.xlu0 %3763, %v645_v3  }
  0xdc   : > { %v4222_v16 = vpop.permute.xlu1 %667  ;;  %1403 = vperm.xlu1 %3695, %v3906_v4   ;;  %v4225_v23 = vpop.permute.xlu0 %447 }
  0xdd   : > { %6240 = vst [vmem:[#allocation30_spill] sm:$0xff] %v4225_v23 }
  0xde   : > { %730 = vperm.xlu0 %3763, %v647_v37  }
  0xe0   : > { %v4228_v1 = vpop.permute.xlu1 %673  ;;  %3696 = vset.pattern.permute.xlu1 %v6220_v0  ;;  %v4231_v45 = vpop.permute.xlu0 %453 }
  0xe1   : > { %6241 = vst [vmem:[#allocation31_spill] sm:$0xff] %v4231_v45  ;;  %1617 = vperm.xlu1 %3696, %v4079_v56   ;;  %v6247_v45 = vmov 2  }
  0xe2   : > { %736 = vperm.xlu0 %3763, %v649_v24  }
  0xe4   : > { %v4235_v3 = vpop.permute.xlu1 %679  ;;  %v4237_v5 = vpop.permute.xlu0 %459 }
  0xe5   : > { %6242 = vst [vmem:[#allocation32_spill] sm:$0xff] %v4237_v5  ;;  %1625 = vperm.xlu1 %3696, %v3906_v4  }
  0xe6   : > { %742 = vperm.xlu0 %3763, %v651_v26  }
  0xe8   : > { %v4241_v37 = vpop.permute.xlu1 %685  ;;  %v4243_v23 = vpop.permute.xlu0 %465 }
  0xe9   : > { %6243 = vst [vmem:[#allocation33_spill] sm:$0xff] %v4241_v37  ;;  %6244 = vst [vmem:[#allocation34_spill] sm:$0xff] %v4243_v23  ;;  %1629 = vperm.xlu1 %3696, %v4084_v58   ;;  %v6250_v23 = vmov 3  }
  0xea   : > { %748 = vperm.xlu0 %3763, %v653_v28   ;;  %v4261_v28 = vld [vmem:[%s3889_s11 + $0x38] sm:$0xff] }
  0xec   : > { %v4246_v24 = vpop.permute.xlu1 %691  ;;  %v4248_v49 = vpop.permute.xlu0 %471 }
  0xed   : > { %6245 = vst [vmem:[#allocation35_spill] sm:$0xff] %v4246_v24  ;;  %6246 = vst [vmem:[#allocation36_spill] sm:$0xff] %v4248_v49  ;;  %3697 = vset.pattern.permute.xlu1 %v6247_v45 }
  0xee   : > { %1814 = vperm.xlu1 %3697, %v3898_v2   ;;  %1621 = vperm.xlu0 %3763, %v3898_v2  }
  0xf0   : > { %v4254_v26 = vpop.permute.xlu1 %697  ;;  %v4256_v5 = vpop.permute.xlu0 %477 }
  0xf1   : > { %6248 = vst [vmem:[#allocation37_spill] sm:$0xff] %v4254_v26  ;;  %6249 = vst [vmem:[#allocation38_spill] sm:$0xff] %v4256_v5 }
  0xf2   : > { %3698 = vset.pattern.permute.xlu1 %v6250_v23  ;;  %1633 = vperm.xlu0 %3763, %v4089_v60  }
  0xf3   : > { %1179 = vperm.xlu1 %3698, %v1138_v32  }
  0xf4   : > { %v4263_v49 = vpop.permute.xlu1 %703  ;;  %v4265_v24 = vpop.permute.xlu0 %483 }
  0xf5   : > { %6251 = vst [vmem:[#allocation39_spill] sm:$0xff] %v4263_v49  ;;  %6252 = vst [vmem:[#allocation40_spill] sm:$0xff] %v4265_v24  ;;  %v1141_v24 = vadd.s32 24, %v3925_v9  ;;  %v4283_v49 = vld [vmem:[%s3889_s11 + $0x78] sm:$0xff] }
  0xf6   : > { %1645 = vperm.xlu0 %3763, %v4261_v28  }
  0xf7   : > { %3699 = vset.pattern.permute.xlu1 %v6247_v45 }
  0xf8   : > { %v4269_v37 = vpop.permute.xlu1 %709  ;;  %1818 = vperm.xlu1 %3699, %v3906_v4   ;;  %v4272_v5 = vpop.permute.xlu0 %489 }
  0xf9   : > { %6253 = vst [vmem:[#allocation41_spill] sm:$0xff] %v4269_v37  ;;  %6254 = vst [vmem:[#allocation42_spill] sm:$0xff] %v4272_v5 }
  0xfa   : > { %1653 = vperm.xlu0 %3763, %v3922_v8  }
  0xfc   : > { %v4275_v26 = vpop.permute.xlu1 %715  ;;  %1822 = vperm.xlu1 %3699, %v4084_v58   ;;  %v4278_v32 = vpop.permute.xlu0 %1393 }
  0xfd   : > { %6255 = vst [vmem:[#allocation43_spill] sm:$0xff] %v4275_v26  ;;  %6256 = vst [vmem:[#allocation44_spill] sm:$0xff] %v4278_v32 }
  0xfe   : > { %1665 = vperm.xlu0 %3763, %v4098_v34  }
 0x100   : > { %v4285_v37 = vpop.permute.xlu1 %721  ;;  %3700 = vset.pattern.permute.xlu1 %v6250_v23  ;;  %v4288_v5 = vpop.permute.xlu0 %1408 }
 0x101   : > { %6257 = vst [vmem:[#allocation45_spill] sm:$0xff] %v4285_v37  ;;  %6258 = vst [vmem:[#allocation46_spill] sm:$0xff] %v4288_v5  ;;  %1188 = vperm.xlu1 %3700, %v1141_v24   ;;  %v4304_v37 = vld [vmem:[%s3889_s11 + $0x28] sm:$0xff] }
 0x102   : > { %1677 = vperm.xlu0 %3763, %v4283_v49  }
 0x104   : > { %v4291_v26 = vpop.permute.xlu1 %727  ;;  %v4293_v57 = vpop.permute.xlu0 %1413 }
 0x105   : > { %6259 = vst [vmem:[#allocation47_spill] sm:$0xff] %v4291_v26  ;;  %6260 = vst [vmem:[#allocation48_spill] sm:$0xff] %v4293_v57  ;;  %2007 = vperm.xlu1 %3700, %v3898_v2   ;;  %v6267_v26 = vmov 4   ;;  %v884_v57 = vadd.s32 20, %v4006_v29 }
 0x106   : > { %1685 = vperm.xlu0 %3763, %v3944_v14  }
 0x108   : > { %v4297_v9 = vpop.permute.xlu1 %733  ;;  %v4299_v32 = vpop.permute.xlu0 %1438 }
 0x109   : > { %6261 = vst [vmem:[#allocation49_spill] sm:$0xff] %v4297_v9  ;;  %6262 = vst [vmem:[#allocation50_spill] sm:$0xff] %v4299_v32  ;;  %2015 = vperm.xlu1 %3700, %v4084_v58  }
 0x10a   : > { %1697 = vperm.xlu0 %3763, %v4115_v51  }
 0x10c   : > { %v4306_v24 = vpop.permute.xlu1 %739  ;;  %v4308_v5 = vpop.permute.xlu0 %1443 }
 0x10d   : > { %6263 = vst [vmem:[#allocation51_spill] sm:$0xff] %v4306_v24  ;;  %6264 = vst [vmem:[#allocation52_spill] sm:$0xff] %v4308_v5  ;;  %3701 = vset.pattern.permute.xlu1 %v6238_v43  ;;  %v882_v5 = vadd.s32 20, %v3998_v27  ;;  %v886_v27 = vadd.s32 20, %v4014_v31 }
 0x10e   : > { %1418 = vperm.xlu1 %3701, %v4304_v37   ;;  %1705 = vperm.xlu0 %3763, %v3970_v20   ;;  %v879_v20 = vadd.s32 20, %v3990_v25 }
 0x110   : > { %v4313_v2 = vpop.permute.xlu1 %745  ;;  %v4315_v14 = vpop.permute.xlu0 %1453 }
 0x111   : > { %6265 = vst [vmem:[#allocation53_spill] sm:$0xff] %v4313_v2  ;;  %6266 = vst [vmem:[#allocation54_spill] sm:$0xff] %v4315_v14 }
 0x112   : > { %3702 = vset.pattern.permute.xlu1 %v6267_v26  ;;  %1713 = vperm.xlu0 %3763, %v4124_v59  }
 0x113   : > { %2196 = vperm.xlu1 %3702, %v4079_v56  }
 0x114   : > { %v4320_v9 = vpop.permute.xlu0 %1478 }
 0x115   : > { %6268 = vst [vmem:[#allocation55_spill] sm:$0xff] %v4320_v9  ;;  %v4322_v24 = vpop.permute.xlu1 %911 }
 0x116   : > { %6269 = vst [vmem:[#allocation56_spill] sm:$0xff] %v4322_v24  ;;  %1733 = vperm.xlu0 %3763, %v4133_v63  }
 0x117   : > { %3704 = vset.pattern.permute.xlu1 %v6238_v43 }
 0x118   : > { %1423 = vperm.xlu1 %3704, %v3914_v6   ;;  %v4328_v2 = vpop.permute.xlu0 %1483 }
 0x119   : > { %6270 = vst [vmem:[#allocation57_spill] sm:$0xff] %v4328_v2  ;;  %v4330_v14 = vpop.permute.xlu1 %917 }
 0x11a   : > { %6271 = vst [vmem:[#allocation58_spill] sm:$0xff] %v4330_v14  ;;  %3767 = vset.pattern.permute.xlu0 %v6247_v45 }
 0x11b   : > { %914 = vperm.xlu0 %3767, %v879_v20  }
 0x11c   : > { %1428 = vperm.xlu1 %3704, %v4261_v28   ;;  %v4335_v9 = vpop.permute.xlu0 %1493 }
 0x11d   : > { %6272 = vst [vmem:[#allocation59_spill] sm:$0xff] %v4335_v9  ;;  %v4337_v32 = vpop.permute.xlu1 %920 }
 0x11e   : > { %6273 = vst [vmem:[#allocation60_spill] sm:$0xff] %v4337_v32 }
 0x11f   : > { %923 = vperm.xlu0 %3767, %v882_v5   ;;  %v888_v5 = vadd.s32 20, %v4022_v33 }
 0x120   : > { %3705 = vset.pattern.permute.xlu1 %v6267_v26  ;;  %v4341_v24 = vpop.permute.xlu0 %1513 }
 0x121   : > { %6274 = vst [vmem:[#allocation61_spill] sm:$0xff] %v4341_v24  ;;  %2208 = vperm.xlu1 %3705, %v4084_v58   ;;  %v4344_v2 = vpop.permute.xlu1 %926  ;;  %v890_v58 = vadd.s32 20, %v4028_v35 }
 0x122   : > { %6275 = vst [vmem:[#allocation62_spill] sm:$0xff] %v4344_v2 }
 0x123   : > { %929 = vperm.xlu0 %3767, %v884_v57  }
 0x124   : > { %v4347_v20 = vpop.permute.xlu0 %1538 }
 0x125   : > { %6276 = vst [vmem:[#allocation63_spill] sm:$0xff] %v4347_v20  ;;  %3706 = vset.pattern.permute.xlu1 %v6220_v0  ;;  %v4350_v9 = vpop.permute.xlu1 %932 }
 0x126   : > { %6277 = vst [vmem:[#allocation64_spill] sm:$0xff] %v4350_v9  ;;  %1637 = vperm.xlu1 %3706, %v4304_v37  }
 0x127   : > { %935 = vperm.xlu0 %3767, %v886_v27   ;;  %v892_v27 = vadd.s32 20, %v4034_v38 }
 0x128   : > { %v4354_v32 = vpop.permute.xlu0 %1543 }
 0x129   : > { %6278 = vst [vmem:[#allocation65_spill] sm:$0xff] %v4354_v32  ;;  %v4356_v24 = vpop.permute.xlu1 %938  ;;  %v1142_v32 = vadd.s32 24, %v4014_v31 }
 0x12a   : > { %6279 = vst [vmem:[#allocation66_spill] sm:$0xff] %v4356_v24  ;;  %1641 = vperm.xlu1 %3706, %v3914_v6  }
 0x12b   : > { %941 = vperm.xlu0 %3767, %v888_v5   ;;  %v894_v5 = vadd.s32 20, %v4039_v40 }
 0x12d   : > { %v4360_v57 = vpop.permute.xlu1 %944  ;;  %v4362_v20 = vpop.permute.xlu0 %655 }
 0x12e   : > { %6280 = vst [vmem:[#allocation67_spill] sm:$0xff] %v4360_v57  ;;  %3707 = vset.pattern.permute.xlu1 %v6247_v45  ;;  %v1143_v57 = vadd.s32 24, %v3933_v11 }
 0x12f   : > { %1826 = vperm.xlu1 %3707, %v4089_v60   ;;  %947 = vperm.xlu0 %3767, %v890_v58   ;;  %v896_v58 = vadd.s32 20, %v4044_v42 }
 0x131   : > { %v4368_v9 = vpop.permute.xlu1 %950  ;;  %v4370_v24 = vpop.permute.xlu0 %664 }
 0x132   : > { %6281 = vst [vmem:[#allocation68_spill] sm:$0xff] %v4368_v9 }
 0x133   : > { %3708 = vset.pattern.permute.xlu1 %v6250_v23  ;;  %953 = vperm.xlu0 %3767, %v892_v27   ;;  %v898_v27 = vadd.s32 20, %v4049_v44  ;;  %v902_v44 = vadd.s32 20, %v4059_v48 }
 0x134   : > { %1191 = vperm.xlu1 %3708, %v1142_v32  }
 0x135   : > { %v4375_v2 = vpop.permute.xlu1 %956  ;;  %v4377_v14 = vpop.permute.xlu0 %670 }
 0x136   : > { %6282 = vst [vmem:[#allocation69_spill] sm:$0xff] %v4375_v2 }
 0x137   : > { %959 = vperm.xlu0 %3767, %v894_v5   ;;  %v1145_v5 = vadd.s32 24, %v3941_v13 }
 0x138   : > { %1194 = vperm.xlu1 %3708, %v1143_v57   ;;  %v900_v57 = vadd.s32 20, %v4054_v46 }
 0x139   : > { %v4380_v31 = vpop.permute.xlu1 %962  ;;  %v4382_v9 = vpop.permute.xlu0 %676 }
 0x13a   : > { %6283 = vst [vmem:[#allocation70_spill] sm:$0xff] %v4380_v31 }
 0x13b   : > { %965 = vperm.xlu0 %3767, %v896_v58  }
 0x13c   : > { %3709 = vset.pattern.permute.xlu1 %v6247_v45 }
 0x13d   : > { %1838 = vperm.xlu1 %3709, %v4261_v28   ;;  %v4387_v11 = vpop.permute.xlu1 %968  ;;  %v4389_v32 = vpop.permute.xlu0 %682 }
 0x13e   : > { %6284 = vst [vmem:[#allocation71_spill] sm:$0xff] %v4387_v11  ;;  %6285 = vst [vmem:[#allocation72_spill] sm:$0xff] %v4389_v32 }
 0x13f   : > { %971 = vperm.xlu0 %3767, %v898_v27  }
 0x141   : > { %3710 = vset.pattern.permute.xlu1 %v6250_v23  ;;  %v4394_v31 = vpop.permute.xlu1 %974  ;;  %v4396_v58 = vpop.permute.xlu0 %688 }
 0x142   : > { %6286 = vst [vmem:[#allocation73_spill] sm:$0xff] %v4394_v31  ;;  %6287 = vst [vmem:[#allocation74_spill] sm:$0xff] %v4396_v58  ;;  %1200 = vperm.xlu1 %3710, %v1145_v5   ;;  %v4411_v5 = vld [vmem:[%s3889_s11 + $0x40] sm:$0xff] }
 0x143   : > { %977 = vperm.xlu0 %3767, %v900_v57  }
 0x145   : > { %v4399_v2 = vpop.permute.xlu1 %980  ;;  %v4401_v11 = vpop.permute.xlu0 %694 }
 0x146   : > { %6288 = vst [vmem:[#allocation75_spill] sm:$0xff] %v4399_v2  ;;  %6289 = vst [vmem:[#allocation76_spill] sm:$0xff] %v4401_v11  ;;  %2019 = vperm.xlu1 %3710, %v4089_v60   ;;  %v4439_v11 = vld [vmem:[%s3889_s11 + $0x58] sm:$0xff] }
 0x147   : > { %983 = vperm.xlu0 %3767, %v902_v44  }
 0x149   : > { %v4404_v13 = vpop.permute.xlu0 %700 }
 0x14a   : > { %6290 = vst [vmem:[#allocation77_spill] sm:$0xff] %v4404_v13  ;;  %2027 = vperm.xlu1 %3710, %v3914_v6   ;;  %v4407_v27 = vpop.permute.xlu1 %1167  ;;  %v4434_v13 = vld [vmem:[%s3889_s11 + $0x68] sm:$0xff] }
 0x14b   : > { %1810 = vperm.xlu0 %3767, %v4079_v56  }
 0x14d   : > { %v4413_v57 = vpop.permute.xlu0 %706 }
 0x14e   : > { %6291 = vst [vmem:[#allocation78_spill] sm:$0xff] %v4413_v57  ;;  %3711 = vset.pattern.permute.xlu1 %v6238_v43  ;;  %v4416_v48 = vpop.permute.xlu1 %1173 }
 0x14f   : > { %6292 = vst [vmem:[#allocation79_spill] sm:$0xff] %v4416_v48  ;;  %1433 = vperm.xlu1 %3711, %v4411_v5   ;;  %1830 = vperm.xlu0 %3767, %v4304_v37  }
 0x151   : > { %v4420_v44 = vpop.permute.xlu0 %712 }
 0x152   : > { %6293 = vst [vmem:[#allocation80_spill] sm:$0xff] %v4420_v44  ;;  %v4422_v2 = vpop.permute.xlu1 %1176 }
 0x153   : > { %3712 = vset.pattern.permute.xlu1 %v6267_v26  ;;  %1834 = vperm.xlu0 %3767, %v3914_v6  }
 0x154   : > { %2212 = vperm.xlu1 %3712, %v4089_v60  }
 0x155   : > { %v4427_v31 = vpop.permute.xlu0 %718 }
 0x156   : > { %6294 = vst [vmem:[#allocation81_spill] sm:$0xff] %v4427_v31  ;;  %v4452_v31 = vld [vmem:[%s3889_s11 + $0x80] sm:$0xff] }
 0x157   : > { %v4429_v57 = vpop.permute.xlu1 %1398  ;;  %1842 = vperm.xlu0 %3767, %v4411_v5  }
 0x158   : > { %6295 = vst [vmem:[#allocation82_spill] sm:$0xff] %v4429_v57  ;;  %2216 = vperm.xlu1 %3712, %v4304_v37   ;;  %v904_v57 = vadd.s32 20, %v4064_v50 }
 0x159   : > { %v4436_v44 = vpop.permute.xlu0 %724 }
 0x15a   : > { %6296 = vst [vmem:[#allocation83_spill] sm:$0xff] %v4436_v44 }
 0x15b   : > { %v4441_v58 = vpop.permute.xlu1 %1403  ;;  %1862 = vperm.xlu0 %3767, %v4434_v13  }
 0x15c   : > { %6297 = vst [vmem:[#allocation84_spill] sm:$0xff] %v4441_v58  ;;  %3713 = vset.pattern.permute.xlu1 %v6238_v43 }
 0x15d   : > { %1448 = vperm.xlu1 %3713, %v4439_v11   ;;  %v4446_v6 = vpop.permute.xlu0 %730 }
 0x15e   : > { %6298 = vst [vmem:[#allocation85_spill] sm:$0xff] %v4446_v6 }
 0x15f   : > { %1866 = vperm.xlu0 %3767, %v3936_v12  }
 0x160   : > { %v4449_v60 = vpop.permute.xlu1 %1617 }
 0x161   : > { %6299 = vst [vmem:[#allocation86_spill] sm:$0xff] %v4449_v60  ;;  %3714 = vset.pattern.permute.xlu1 %v6267_v26  ;;  %v4455_v44 = vpop.permute.xlu0 %736 }
 0x162   : > { %6300 = vst [vmem:[#allocation87_spill] sm:$0xff] %v4455_v44  ;;  %2224 = vperm.xlu1 %3714, %v4261_v28   ;;  %v907_v44 = vadd.s32 20, %v4011_v30  ;;  %v1146_v30 = vadd.s32 24, %v4028_v35 }
 0x163   : > { %1874 = vperm.xlu0 %3767, %v4452_v31  }
 0x164   : > { %v4460_v58 = vpop.permute.xlu1 %1625 }
 0x165   : > { %6301 = vst [vmem:[#allocation88_spill] sm:$0xff] %v4460_v58  ;;  %v4462_v32 = vpop.permute.xlu0 %742 }
 0x166   : > { %6302 = vst [vmem:[#allocation89_spill] sm:$0xff] %v4462_v32  ;;  %3715 = vset.pattern.permute.xlu1 %v6220_v0 }
 0x167   : > { %1649 = vperm.xlu1 %3715, %v4411_v5   ;;  %989 = vperm.xlu0 %3767, %v904_v57   ;;  %v908_v57 = vadd.s32 20, %v4074_v54  ;;  %v4493_v54 = vld [vmem:[%s3889_s11 + $0xd8] sm:$0xff] }
 0x168   : > { %v4466_v6 = vpop.permute.xlu1 %1629 }
 0x169   : > { %v4468_v60 = vpop.permute.xlu0 %748 }
 0x16a   : > { %6303 = vst [vmem:[#allocation90_spill] sm:$0xff] %v4468_v60 }
 0x16b   : > { %1657 = vperm.xlu1 %3715, %v3930_v10   ;;  %1894 = vperm.xlu0 %3767, %v3962_v18  }
 0x16d   : > { %v4473_v48 = vpop.permute.xlu1 %1814  ;;  %v4475_v58 = vpop.permute.xlu0 %1621 }
 0x16e   : > { %6304 = vst [vmem:[#allocation91_spill] sm:$0xff] %v4473_v48 }
 0x16f   : > { %1661 = vperm.xlu1 %3715, %v4439_v11   ;;  %998 = vperm.xlu0 %3767, %v907_v44  }
 0x171   : > { %v4479_v32 = vpop.permute.xlu0 %1633 }
 0x172   : > { %6305 = vst [vmem:[#allocation92_spill] sm:$0xff] %v4479_v32  ;;  %v4481_v60 = vpop.permute.xlu1 %1179 }
 0x173   : > { %6306 = vst [vmem:[#allocation93_spill] sm:$0xff] %v4481_v60  ;;  %3716 = vset.pattern.permute.xlu1 %v6247_v45  ;;  %1001 = vperm.xlu0 %3767, %v908_v57   ;;  %v4501_v57 = vld [vmem:[%s3889_s11 + $0xe0] sm:$0xff] }
 0x174   : > { %1846 = vperm.xlu1 %3716, %v3922_v8  }
 0x175   : > { %v4485_v18 = vpop.permute.xlu0 %1645 }
 0x176   : > { %6307 = vst [vmem:[#allocation94_spill] sm:$0xff] %v4485_v18 }
 0x177   : > { %v4488_v48 = vpop.permute.xlu1 %1818  ;;  %1906 = vperm.xlu0 %3767, %v4124_v59  }
 0x178   : > { %6308 = vst [vmem:[#allocation95_spill] sm:$0xff] %v4488_v48  ;;  %3717 = vset.pattern.permute.xlu1 %v6250_v23  ;;  %v4511_v48 = vld [vmem:[%s3889_s11 + $0xf8] sm:$0xff] }
 0x179   : > { %1203 = vperm.xlu1 %3717, %v1146_v30   ;;  %v4495_v44 = vpop.permute.xlu0 %1653 }
 0x17a   : > { %6309 = vst [vmem:[#allocation96_spill] sm:$0xff] %v4495_v44  ;;  %v1149_v44 = vadd.s32 24, %v3957_v17  ;;  %v1140_v17 = vadd.s32 24, %v4006_v29 }
 0x17b   : > { %v4497_v32 = vpop.permute.xlu1 %1822  ;;  %1918 = vperm.xlu0 %3767, %v4493_v54  }
 0x17c   : > { %6310 = vst [vmem:[#allocation97_spill] sm:$0xff] %v4497_v32 }
 0x17d   : > { %3718 = vset.pattern.permute.xlu1 %v6247_v45  ;;  %v4504_v35 = vpop.permute.xlu0 %1665 }
 0x17e   : > { %6311 = vst [vmem:[#allocation98_spill] sm:$0xff] %v4504_v35  ;;  %1850 = vperm.xlu1 %3718, %v3930_v10   ;;  %v1135_v35 = vadd.s32 24, %v3990_v25 }
 0x17f   : > { %1922 = vperm.xlu0 %3767, %v4501_v57  }
 0x180   : > { %v4508_v18 = vpop.permute.xlu1 %1188 }
 0x181   : > { %6312 = vst [vmem:[#allocation99_spill] sm:$0xff] %v4508_v18  ;;  %v4513_v30 = vpop.permute.xlu0 %1677 }
 0x182   : > { %6313 = vst [vmem:[#allocation100_spill] sm:$0xff] %v4513_v30  ;;  %1854 = vperm.xlu1 %3718, %v4439_v11   ;;  %v1139_v30 = vadd.s32 24, %v3917_v7 }
 0x183   : > { %1934 = vperm.xlu0 %3767, %v4511_v48  }
 0x184   : > { %v4518_v32 = vpop.permute.xlu1 %2007 }
 0x185   : > { %v4521_v60 = vpop.permute.xlu0 %1685 }
 0x186   : > { %6314 = vst [vmem:[#allocation101_spill] sm:$0xff] %v4521_v60  ;;  %3719 = vset.pattern.permute.xlu1 %v6250_v23 }
 0x187   : > { %1212 = vperm.xlu1 %3719, %v1149_v44   ;;  %3769 = vset.pattern.permute.xlu0 %v6250_v23 }
 0x188   : > { %v4525_v10 = vpop.permute.xlu1 %2015  ;;  %1170 = vperm.xlu0 %3769, %v1135_v35   ;;  %v1144_v35 = vadd.s32 24, %v4022_v33 }
 0x189   : > { %6315 = vst [vmem:[#allocation102_spill] sm:$0xff] %v4525_v10  ;;  %v4528_v18 = vpop.permute.xlu0 %1697 }
 0x18a   : > { %6316 = vst [vmem:[#allocation103_spill] sm:$0xff] %v4528_v18  ;;  %v3791_v18 = vld [vmem:[%s3889_s11 + $0x70] sm:$0xff] }
 0x18b   : > { %2039 = vperm.xlu1 %3719, %v3922_v8   ;;  %v3773_v8 = vld [vmem:[%s6175_s2] sm:$0xff]  }
 0x18c   : > { %1182 = vperm.xlu0 %3769, %v1139_v30   ;;  %3541 = vmatprep.subr.bf16.mxu0 %v3773_v8 }
 0x18d   : > { %v4532_v25 = vpop.permute.xlu1 %1418  ;;  %v4534_v60 = vpop.permute.xlu0 %1705  ;;  %3673 = vmatprep.subr.bf16.mxu1 %v3773_v8  ;;  %3542 = vmatpush3.bf16.msra.mxu0 %v3773_v8 }
 0x18e   : > { %6317 = vst [vmem:[#allocation104_spill] sm:$0xff] %v4534_v60  ;;  %3675 = vmatpush3.bf16.msra.mxu1 %v3773_v8 }
 0x18f   : > { %2047 = vperm.xlu1 %3719, %v4439_v11  }
 0x190   : > { %1185 = vperm.xlu0 %3769, %v1140_v17  }
 0x191   : > { %v4537_v44 = vpop.permute.xlu0 %1713 }
 0x192   : > { %6318 = vst [vmem:[#allocation105_spill] sm:$0xff] %v4537_v44  ;;  %v4539_v10 = vpop.permute.xlu1 %2196  ;;  %v1152_v44 = vadd.s32 24, %v4044_v42 }
 0x193   : > { %3720 = vset.pattern.permute.xlu1 %v6238_v43 }
 0x194   : > { %1458 = vperm.xlu1 %3720, %v4434_v13   ;;  %2003 = vperm.xlu0 %3769, %v4079_v56   ;;  %v3774_v56 = vld [vmem:[%s6175_s2 + $0x8] sm:$0xff]  }
 0x195   : > { %v4544_v7 = vpop.permute.xlu0 %1733  ;;  %3543 = vmatprep.subr.bf16.mxu0 %v3774_v56  ;;  %3674 = vmatprep.subr.bf16.mxu1 %v3774_v56 }
 0x196   : > { %6319 = vst [vmem:[#allocation106_spill] sm:$0xff] %v4544_v7  ;;  %3544 = vmatpush3.bf16.msra.mxu0 %v3774_v56  ;;  %3676 = vmatpush3.bf16.msra.mxu1 %v3774_v56 }
 0x197   : > { %v4549_v29 = vpop.permute.xlu1 %1423 }
 0x198   : > { %3721 = vset.pattern.permute.xlu1 %v6267_v26  ;;  %2011 = vperm.xlu0 %3769, %v3906_v4  }
 0x199   : > { %2228 = vperm.xlu1 %3721, %v4411_v5  }
 0x19a   : > { %v4558_v30 = vpop.permute.xlu0 %914 }
 0x19b   : > { %v4560_v17 = vpop.permute.xlu1 %1428 }
 0x19c   : > { %1197 = vperm.xlu0 %3769, %v1144_v35   ;;  %v1147_v35 = vadd.s32 24, %v3949_v15 }
 0x19d   : > { %3722 = vset.pattern.permute.xlu1 %v6238_v43 }
 0x19e   : > { %1463 = vperm.xlu1 %3722, %v3936_v12   ;;  %v4564_v4 = vpop.permute.xlu0 %923 }
 0x1a0   : > { %v4566_v33 = vpop.permute.xlu1 %2208  ;;  %2023 = vperm.xlu0 %3769, %v4304_v37   ;;  %v1148_v37 = vadd.s32 24, %v4034_v38 }
 0x1a2   : > { %1468 = vperm.xlu1 %3722, %v4283_v49   ;;  %v4570_v8 = vpop.permute.xlu0 %929 }
 0x1a4   : > { %2031 = vperm.xlu0 %3769, %v4261_v28  }
 0x1a5   : > { %v4574_v7 = vpop.permute.xlu1 %1637 }
 0x1a6   : > { %3723 = vset.pattern.permute.xlu1 %v6267_v26  ;;  %v4577_v12 = vpop.permute.xlu0 %935 }
 0x1a7   : > { %2240 = vperm.xlu1 %3723, %v4439_v11  }
 0x1a8   : > { %1206 = vperm.xlu0 %3769, %v1147_v35   ;;  %v3792_v35 = vld [vmem:[%s3889_s11 + $0x50] sm:$0xff] }
 0x1a9   : > { %v4581_v56 = vpop.permute.xlu1 %1641 }
 0x1aa   : > { %v4583_v60 = vpop.permute.xlu0 %941 }
 0x1ab   : > { %6320 = vst [vmem:[#allocation107_spill] sm:$0xff] %v4583_v60  ;;  %3724 = vset.pattern.permute.xlu1 %v6220_v0 }
 0x1ac   : > { %1669 = vperm.xlu1 %3724, %v4434_v13   ;;  %1209 = vperm.xlu0 %3769, %v1148_v37  }
 0x1ae   : > { %v4587_v15 = vpop.permute.xlu1 %1826  ;;  %v4589_v28 = vpop.permute.xlu0 %947 }
 0x1af   : > { %6321 = vst [vmem:[#allocation108_spill] sm:$0xff] %v4589_v28  ;;  %v1150_v28 = vadd.s32 24, %v4039_v40  ;;  %v1155_v40 = vadd.s32 24, %v3978_v22 }
 0x1b0   : > { %1673 = vperm.xlu1 %3724, %v3791_v18   ;;  %2035 = vperm.xlu0 %3769, %v4411_v5  }
 0x1b2   : > { %v4593_v11 = vpop.permute.xlu0 %953 }
 0x1b3   : > { %6322 = vst [vmem:[#allocation109_spill] sm:$0xff] %v4593_v11  ;;  %v4595_v38 = vpop.permute.xlu1 %1191  ;;  %v1151_v11 = vadd.s32 24, %v3965_v19  ;;  %v1153_v19 = vadd.s32 24, %v3973_v21 }
 0x1b4   : > { %6323 = vst [vmem:[#allocation110_spill] sm:$0xff] %v4595_v38  ;;  %3725 = vset.pattern.permute.xlu1 %v6247_v45  ;;  %2043 = vperm.xlu0 %3769, %v3792_v35  }
 0x1b5   : > { %1858 = vperm.xlu1 %3725, %v4098_v34  }
 0x1b6   : > { %v4601_v37 = vpop.permute.xlu0 %959 }
 0x1b7   : > { %6324 = vst [vmem:[#allocation111_spill] sm:$0xff] %v4601_v37  ;;  %v4604_v60 = vpop.permute.xlu1 %1194 }
 0x1b8   : > { %1221 = vperm.xlu0 %3769, %v1152_v44  }
 0x1b9   : > { %3726 = vset.pattern.permute.xlu1 %v6250_v23 }
 0x1ba   : > { %1215 = vperm.xlu1 %3726, %v1150_v28   ;;  %v4607_v5 = vpop.permute.xlu0 %965  ;;  %v1156_v28 = vadd.s32 24, %v4054_v46  ;;  %v4641_v46 = vld [vmem:[%s3889_s11 + $0x90] sm:$0xff] }
 0x1bb   : > { %6325 = vst [vmem:[#allocation112_spill] sm:$0xff] %v4607_v5  ;;  %v1160_v5 = vadd.s32 24, %v4064_v50 }
 0x1bc   : > { %v4610_v38 = vpop.permute.xlu1 %1838  ;;  %2055 = vperm.xlu0 %3769, %v4434_v13  }
 0x1be   : > { %1218 = vperm.xlu1 %3726, %v1151_v11   ;;  %v4613_v42 = vpop.permute.xlu0 %971 }
 0x1bf   : > { %6326 = vst [vmem:[#allocation113_spill] sm:$0xff] %v4613_v42 }
 0x1c0   : > { %2063 = vperm.xlu0 %3769, %v4283_v49  }
 0x1c1   : > { %v4617_v35 = vpop.permute.xlu1 %1200 }
 0x1c2   : > { %6327 = vst [vmem:[#allocation114_spill] sm:$0xff] %v4617_v35  ;;  %3727 = vset.pattern.permute.xlu1 %v6247_v45  ;;  %v4620_v44 = vpop.permute.xlu0 %977 }
 0x1c3   : > { %6328 = vst [vmem:[#allocation115_spill] sm:$0xff] %v4620_v44  ;;  %1870 = vperm.xlu1 %3727, %v4283_v49  }
 0x1c4   : > { %1230 = vperm.xlu0 %3769, %v1155_v40  }
 0x1c5   : > { %v4625_v11 = vpop.permute.xlu1 %2019 }
 0x1c6   : > { %v4627_v42 = vpop.permute.xlu0 %983 }
 0x1c7   : > { %6329 = vst [vmem:[#allocation116_spill] sm:$0xff] %v4627_v42  ;;  %3728 = vset.pattern.permute.xlu1 %v6250_v23  ;;  %v4645_v42 = vld [vmem:[%s3895_s14 + $0xc8] sm:$0xff] }
 0x1c8   : > { %1224 = vperm.xlu1 %3728, %v1153_v19   ;;  %1233 = vperm.xlu0 %3769, %v1156_v28   ;;  %6332 = vst [vmem:[#allocation119_spill] sm:$0xff] %v4645_v42  ;;  %v1159_v19 = vadd.s32 24, %v4645_v42 }
 0x1c9   : > { %v4630_v22 = vpop.permute.xlu1 %2027 }
 0x1ca   : > { %6330 = vst [vmem:[#allocation117_spill] sm:$0xff] %v4630_v22  ;;  %v4632_v37 = vpop.permute.xlu0 %1810 }
 0x1cc   : > { %2051 = vperm.xlu1 %3728, %v4098_v34   ;;  %2067 = vperm.xlu0 %3769, %v4452_v31  }
 0x1ce   : > { %v4636_v21 = vpop.permute.xlu1 %1433  ;;  %v4638_v40 = vpop.permute.xlu0 %1830 }
 0x1cf   : > { %6331 = vst [vmem:[#allocation118_spill] sm:$0xff] %v4636_v21 }
 0x1d0   : > { %2059 = vperm.xlu1 %3728, %v3791_v18   ;;  %2075 = vperm.xlu0 %3769, %v4641_v46  }
 0x1d2   : > { %v4648_v28 = vpop.permute.xlu0 %1834 }
 0x1d3   : > { %v4650_v44 = vpop.permute.xlu1 %2212 }
 0x1d4   : > { %6333 = vst [vmem:[#allocation120_spill] sm:$0xff] %v4650_v44  ;;  %3729 = vset.pattern.permute.xlu1 %v6238_v43  ;;  %1242 = vperm.xlu0 %3769, %v1159_v19   ;;  %v4670_v19 = vld [vmem:[%s3889_s11 + $0x98] sm:$0xff] }
 0x1d5   : > { %1473 = vperm.xlu1 %3729, %v4452_v31  }
 0x1d6   : > { %v4655_v18 = vpop.permute.xlu0 %1842 }
 0x1d7   : > { %6334 = vst [vmem:[#allocation121_spill] sm:$0xff] %v4655_v18  ;;  %v4657_v35 = vpop.permute.xlu1 %2216  ;;  %v4673_v18 = vld [vmem:[%s3889_s11 + $0xb0] sm:$0xff] }
 0x1d8   : > { %6335 = vst [vmem:[#allocation122_spill] sm:$0xff] %v4657_v35  ;;  %1245 = vperm.xlu0 %3769, %v1160_v5   ;;  %6339 = vst [vmem:[#allocation126_spill] sm:$0xff] %v4673_v18  ;;  %v1162_v5 = vadd.s32 24, %v4069_v52 }
 0x1d9   : > { %3730 = vset.pattern.permute.xlu1 %v6267_v26 }
 0x1da   : > { %2244 = vperm.xlu1 %3730, %v4098_v34   ;;  %v4661_v42 = vpop.permute.xlu0 %1862 }
 0x1db   : > { %6336 = vst [vmem:[#allocation123_spill] sm:$0xff] %v4661_v42 }
 0x1dc   : > { %v4663_v21 = vpop.permute.xlu1 %1448  ;;  %2083 = vperm.xlu0 %3769, %v4115_v51  }
 0x1dd   : > { %6337 = vst [vmem:[#allocation124_spill] sm:$0xff] %v4663_v21 }
 0x1de   : > { %2248 = vperm.xlu1 %3730, %v4434_v13   ;;  %v4667_v50 = vpop.permute.xlu0 %1866 }
 0x1df   : > { %6338 = vst [vmem:[#allocation125_spill] sm:$0xff] %v4667_v50  ;;  %v332_v50 = vlaneseq }
 0x1e0   : > { %2091 = vperm.xlu0 %3769, %v4673_v18  }
 0x1e1   : > { %v4677_v35 = vpop.permute.xlu1 %2224  ;;  %v4694_v21 = vand.u32 127, %v332_v50  ;;  %v6351_v50 = vld [vmem:[#allocation8_spill] sm:$0xff] }
 0x1e2   : > { %6340 = vst [vmem:[#allocation127_spill] sm:$0xff] %v4677_v35  ;;  %3731 = vset.pattern.permute.xlu1 %v6238_v43  ;;  %v4680_v34 = vpop.permute.xlu0 %1874 }
 0x1e3   : > { %6341 = vst [vmem:[#allocation128_spill] sm:$0xff] %v4680_v34  ;;  %1488 = vperm.xlu1 %3731, %v4670_v19   ;;  %vm496_vm0 = vcmp.eq.s32.totalorder %v4694_v21, %v4102_v39  ;;  %vm2194_vm1 = vcmp.eq.s32.totalorder %v4694_v21, 30  ;;  %vm497_vm2 = vcmp.eq.s32.totalorder %v4694_v21, %v4109_v47  ;;  %vm499_vm3 = vcmp.eq.s32.totalorder %v4694_v21, %v4118_v55  ;;  %v6350_v47 = vld [vmem:[#allocation6_spill] sm:$0xff] }
 0x1e4   : > { %1251 = vperm.xlu0 %3769, %v1162_v5   ;;  %vm501_vm4 = vcmp.eq.s32.totalorder %v4694_v21, %v4127_v62  ;;  %vm503_vm5 = vcmp.eq.s32.totalorder %v4694_v21, %v6350_v47  ;;  %vm505_vm6 = vcmp.eq.s32.totalorder %v4694_v21, %v6351_v50  ;;  %vm1390_vm8 = vcmp.eq.s32.totalorder %v4694_v21, 26 }
 0x1e5   : > { %vm498_vm10 = vcmp.eq.s32.totalorder %v4694_v21, %v4188_v53  ;;  %vm751_vm12 = vcmp.eq.s32.totalorder %v4694_v21, %v4210_v36  ;;  %vm502_vm13 = vcmp.eq.s32.totalorder %v4694_v21, %v4201_v61  ;;  %vm752_vm14 = vcmp.eq.s32.totalorder %v4694_v21, %v4216_v41 }
 0x1e6   : > { %v4683_v51 = vpop.permute.xlu1 %1649  ;;  %v4685_v13 = vpop.permute.xlu0 %989  ;;  %vm754_vm15 = vcmp.eq.s32.totalorder %v4694_v21, %v4222_v16  ;;  %v6364_v16 = vld [vmem:[#allocation33_spill] sm:$0xff] }
 0x1e7   : > { %6342 = vst [vmem:[#allocation129_spill] sm:$0xff] %v4683_v51  ;;  %6343 = vst [vmem:[#allocation130_spill] sm:$0xff] %v4685_v13  ;;  %3732 = vset.pattern.permute.xlu1 %v6267_v26  ;;  %v4813_v51 = vld [vmem:[%s3889_s11 + $0x88] sm:$0xff] }
 0x1e8   : > { %2256 = vperm.xlu1 %3732, %v4283_v49   ;;  %2099 = vperm.xlu0 %3769, %v4124_v59   ;;  %v3827_v49 = vmov 0.0  }
 0x1e9   : > { %v3310_v39 = vsel %vm496_vm0, 1.0, %v3827_v49  ;;  %v4770_v55 = vsel %vm503_vm5, 1.0, %v3827_v49  ;;  %v4776_v62 = vsel %vm505_vm6, 1.0, %v3827_v49  ;;  %v3312_v50 = vsel %vm498_vm10, 1.0, %v3827_v49 }
 0x1ea   : > { %v4690_v52 = vpop.permute.xlu1 %1657  ;;  %v4692_v42 = vpop.permute.xlu0 %1894  ;;  %vm756_vm0 = vcmp.eq.s32.totalorder %v4694_v21, %v4228_v1  ;;  %v3341_v41 = vsel %vm751_vm12, 1.0, %v3827_v49  ;;  %vm750_vm5 = vcmp.eq.s32.totalorder %v4694_v21, %v4362_v20  ;;  %v3797_v20 = vld [vmem:[%s3895_s14 + $0xa0] sm:$0xff]  ;;  %vm1262_vm12 = vcmp.eq.s32.totalorder %v4694_v21, %v4407_v27 }
 0x1eb   : > { %6344 = vst [vmem:[#allocation131_spill] sm:$0xff] %v4690_v52  ;;  %6345 = vst [vmem:[#allocation132_spill] sm:$0xff] %v4692_v42  ;;  %v4729_v42 = vsel %vm497_vm2, 1.0, %v3827_v49  ;;  %v4745_v52 = vld [vmem:[%s3889_s11 + $0xd0] sm:$0xff]  ;;  %vm758_vm2 = vcmp.eq.s32.totalorder %v4694_v21, %v4235_v3  ;;  %v1154_v18 = vadd.s32 24, %v3797_v20  ;;  %v3340_v20 = vsel %vm750_vm5, 1.0, %v3827_v49 }
 0x1ec   : > { %3733 = vset.pattern.permute.xlu1 %v6220_v0  ;;  %2111 = vperm.xlu0 %3769, %v4493_v54   ;;  %v6349_v54 = vld [vmem:[#allocation2_spill] sm:$0xff]  ;;  %v6354_v0 = vld [vmem:[#allocation4_spill] sm:$0xff]  ;;  %6357 = vst [vmem:[#allocation8_spill] sm:$0xff] %v4745_v52  ;;  %v3348_v35 = vsel %vm758_vm2, 1.0, %v3827_v49 }
 0x1ed   : > { %1681 = vperm.xlu1 %3733, %v4452_v31  }
 0x1ee   : > { %v4699_v5 = vpop.permute.xlu1 %1661  ;;  %v4701_v34 = vpop.permute.xlu0 %998 }
 0x1ef   : > { %6346 = vst [vmem:[#allocation133_spill] sm:$0xff] %v4699_v5  ;;  %6347 = vst [vmem:[#allocation134_spill] sm:$0xff] %v4701_v34  ;;  %v6356_v5 = vld [vmem:[#allocation19_spill] sm:$0xff] }
 0x1f0   : > { %2119 = vperm.xlu0 %3769, %v4133_v63   ;;  %v4720_v63 = vsel %vm2194_vm1, %v6349_v54, 0.0  ;;  %v4739_v54 = vsel %vm2194_vm1, %v6354_v0, 0.0  ;;  %vm494_vm7 = vcmp.eq.s32.totalorder %v4694_v21, %v6356_v5  ;;  %v4758_v0 = vsel %vm501_vm4, 1.0, %v3827_v49 }
 0x1f1   : > { %1689 = vperm.xlu1 %3733, %v4641_v46   ;;  %6355 = vst [vmem:[#allocation6_spill] sm:$0xff] %v4739_v54  ;;  %v3308_v5 = vsel %vm494_vm7, 1.0, %v3827_v49  ;;  %vm760_vm4 = vcmp.eq.s32.totalorder %v4694_v21, %v6364_v16  ;;  %vm753_vm7 = vcmp.eq.s32.totalorder %v4694_v21, %v4370_v24  ;;  %v6368_v16 = vld [vmem:[#allocation56_spill] sm:$0xff] }
 0x1f2   : > { %v4714_v59 = vpop.permute.xlu0 %1001  ;;  %v3350_v1 = vsel %vm760_vm4, 1.0, %v3827_v49  ;;  %vm1006_vm10 = vcmp.eq.s32.totalorder %v4694_v21, %v6368_v16  ;;  %v6373_v16 = vld [vmem:[#allocation50_spill] sm:$0xff] }
 0x1f3   : > { %6348 = vst [vmem:[#allocation135_spill] sm:$0xff] %v4714_v59  ;;  %v4726_v34 = vpop.permute.xlu1 %1846  ;;  %v6353_v59 = vld [vmem:[#allocation3_spill] sm:$0xff]  ;;  %v4891_v24 = vsel %vm1390_vm8, %v6373_v16, 0.0 }
 0x1f4   : > { %6352 = vst [vmem:[#allocation2_spill] sm:$0xff] %v4726_v34  ;;  %v4734_v13 = vsel %vm2194_vm1, %v6353_v59, 0.0  ;;  %3771 = vset.pattern.permute.xlu0 %v6267_v26  ;;  %v4752_v59 = vsel %vm499_vm3, 1.0, %v3827_v49  ;;  %v6358_v34 = vld [vmem:[#allocation21_spill] sm:$0xff]  ;;  %6359 = vst [vmem:[#allocation3_spill] sm:$0xff] %v4776_v62  ;;  %v6366_v62 = vld [vmem:[#allocation58_spill] sm:$0xff] }
 0x1f5   : > { %vm495_vm9 = vcmp.eq.s32.totalorder %v4694_v21, %v6358_v34  ;;  %1693 = vperm.xlu1 %3733, %v4670_v19   ;;  %2300 = vperm.xlu0 %3771, %v4745_v52   ;;  %v6360_v34 = vld [vmem:[#allocation24_spill] sm:$0xff]  ;;  %v3342_v52 = vsel %vm752_vm14, 1.0, %v3827_v49  ;;  %vm1008_vm6 = vcmp.eq.s32.totalorder %v4694_v21, %v6366_v62  ;;  %v3343_v62 = vsel %vm753_vm7, 1.0, %v3827_v49  ;;  %v6379_v16 = vld [vmem:[#allocation79_spill] sm:$0xff] }
 0x1f6   : > { %vm500_vm11 = vcmp.eq.s32.totalorder %v4694_v21, %v6360_v34  ;;  %v4782_v53 = vpop.permute.xlu0 %1906  ;;  %v3309_v47 = vsel %vm495_vm9, 1.0, %v3827_v49  ;;  %v6363_v34 = vld [vmem:[#allocation27_spill] sm:$0xff]  ;;  %v848_v3 = vadd.f32 %v3342_v52, %v3310_v39  ;;  %vm755_vm9 = vcmp.eq.s32.totalorder %v4694_v21, %v4377_v14 }
 0x1f7   : > { %6361 = vst [vmem:[#allocation4_spill] sm:$0xff] %v4782_v53  ;;  %v3314_v61 = vsel %vm500_vm11, 1.0, %v3827_v49  ;;  %vm504_vm3 = vcmp.eq.s32.totalorder %v4694_v21, %v6363_v34  ;;  %v3316_v53 = vsel %vm502_vm13, 1.0, %v3827_v49  ;;  %v4833_v22 = vadd.f32 %v3341_v41, %v3309_v47 }
 0x1f8   : > { %v4797_v36 = vpop.permute.xlu1 %1203  ;;  %v4851_v41 = vadd.f32 %v3348_v35, %v3316_v53  ;;  %v3374_v52 = vsel %vm1008_vm6, 1.0, %v3827_v49  ;;  %v6371_v35 = vld [vmem:[#allocation46_spill] sm:$0xff]  ;;  %vm1615_vm11 = vcmp.eq.s32.totalorder %v4694_v21, 27  ;;  %vm757_vm13 = vcmp.eq.s32.totalorder %v4694_v21, %v4382_v9 }
 0x1f9   : > { %6362 = vst [vmem:[#allocation19_spill] sm:$0xff] %v4797_v36  ;;  %3734 = vset.pattern.permute.xlu1 %v6247_v45  ;;  %2308 = vperm.xlu0 %3771, %v4501_v57   ;;  %v3344_v36 = vsel %vm754_vm15, 1.0, %v3827_v49  ;;  %v3346_v57 = vsel %vm756_vm0, 1.0, %v3827_v49  ;;  %v4870_v53 = vsel %vm1390_vm8, %v6371_v35, 0.0  ;;  %v849_v14 = vadd.f32 %v3343_v62, %v4729_v42  ;;  %v6376_v35 = vld [vmem:[#allocation62_spill] sm:$0xff] }
 0x1fa   : > { %1878 = vperm.xlu1 %3734, %v4813_v51   ;;  %v4816_v54 = vpop.permute.xlu0 %1918  ;;  %v4841_v44 = vadd.f32 %v3344_v36, %v3312_v50  ;;  %v4849_v47 = vadd.f32 %v3346_v57, %v3314_v61  ;;  %v6370_v36 = vld [vmem:[#allocation44_spill] sm:$0xff]  ;;  %v846_v57 = vadd.f32 %v3340_v20, %v3308_v5  ;;  %vm1265_vm15 = vcmp.eq.s32.totalorder %v4694_v21, %v4422_v2  ;;  %v6378_v42 = vld [vmem:[#allocation66_spill] sm:$0xff] }
 0x1fb   : > { %6365 = vst [vmem:[#allocation21_spill] sm:$0xff] %v4816_v54  ;;  %v3318_v54 = vsel %vm504_vm3, 1.0, %v3827_v49  ;;  %v6372_v61 = vld [vmem:[#allocation48_spill] sm:$0xff]  ;;  %vm1007_vm0 = vcmp.eq.s32.totalorder %v4694_v21, %v4558_v30  ;;  %vm1011_vm2 = vcmp.eq.s32.totalorder %v4694_v21, %v6376_v35  ;;  %vm1015_vm4 = vcmp.eq.s32.totalorder %v4694_v21, %v6378_v42 }
 0x1fc   : > { %v4862_v50 = vadd.f32 %v3350_v1, %v3318_v54  ;;  %v4880_v54 = vsel %vm1390_vm8, %v6372_v61, 0.0  ;;  %v3345_v1 = vsel %vm755_vm9, 1.0, %v3827_v49  ;;  %v6374_v20 = vld [vmem:[#allocation60_spill] sm:$0xff]  ;;  %v3347_v62 = vsel %vm757_vm13, 1.0, %v3827_v49 }
 0x1fd   : > { %v4846_v34 = vpop.permute.xlu1 %1850  ;;  %2320 = vperm.xlu0 %3771, %v4511_v48   ;;  %v1551_v48 = vsel %vm1390_vm8, %v6370_v36, 0.0  ;;  %v1104_v36 = vadd.f32 %v3374_v52, %v848_v3  ;;  %vm1009_vm14 = vcmp.eq.s32.totalorder %v4694_v21, %v6374_v20  ;;  %v6377_v3 = vld [vmem:[#allocation64_spill] sm:$0xff]  ;;  %v851_v9 = vadd.f32 %v3345_v1, %v4752_v59 }
 0x1fe   : > { %6367 = vst [vmem:[#allocation24_spill] sm:$0xff] %v4846_v34  ;;  %3735 = vset.pattern.permute.xlu1 %v6250_v23  ;;  %v4860_v39 = vpop.permute.xlu0 %1922  ;;  %vm1013_vm3 = vcmp.eq.s32.totalorder %v4694_v21, %v6377_v3  ;;  %v3404_v52 = vsel %vm1262_vm12, 1.0, %v3827_v49  ;;  %vm1264_vm5 = vcmp.eq.s32.totalorder %v4694_v21, %v6379_v16  ;;  %vm1808_vm6 = vcmp.eq.s32.totalorder %v4694_v21, 28  ;;  %v6380_v1 = vld [vmem:[#allocation72_spill] sm:$0xff] }
 0x1ff   : > { %6369 = vst [vmem:[#allocation27_spill] sm:$0xff] %v4860_v39  ;;  %1227 = vperm.xlu1 %3735, %v1154_v18   ;;  %v3372_v18 = vsel %vm1006_vm10, 1.0, %v3827_v49  ;;  %v3375_v59 = vsel %vm1009_vm14, 1.0, %v3827_v49  ;;  %vm759_vm7 = vcmp.eq.s32.totalorder %v4694_v21, %v6380_v1  ;;  %v3379_v35 = vsel %vm1013_vm3, 1.0, %v3827_v49 }
 0x200   : > { %v1102_v61 = vadd.f32 %v3372_v18, %v846_v57  ;;  %v3407_v57 = vsel %vm1265_vm15, 1.0, %v3827_v49  ;;  %v3373_v18 = vsel %vm1007_vm0, 1.0, %v3827_v49  ;;  %v1105_v20 = vadd.f32 %v3375_v59, %v849_v14  ;;  %v6382_v14 = vld [vmem:[#allocation84_spill] sm:$0xff] }
 0x201   : > { %v4896_v5 = vpop.permute.xlu1 %1854  ;;  %v4940_v16 = vsel %vm1015_vm4, 1.0, %v3827_v49  ;;  %v853_v2 = vadd.f32 %v3347_v62, %v4758_v0  ;;  %v3406_v1 = vsel %vm1264_vm5, 1.0, %v3827_v49  ;;  %vm2001_vm9 = vcmp.eq.s32.totalorder %v4694_v21, 29  ;;  %v3798_v62 = vld [vmem:[%s3895_s14 + $0xb8] sm:$0xff] }
 0x202   : > { %v4905_v27 = vpop.permute.xlu0 %1934  ;;  %v1358_v3 = vadd.f32 %v3404_v52, %v1102_v61  ;;  %v3349_v39 = vsel %vm759_vm7, 1.0, %v3827_v49  ;;  %v1103_v52 = vadd.f32 %v3373_v18, %v4833_v22  ;;  %v1553_v61 = vsel %vm1390_vm8, %v6382_v14, 0.0 }
 0x203   : > { %6375 = vst [vmem:[#allocation33_spill] sm:$0xff] %v4905_v27  ;;  %3736 = vset.pattern.permute.xlu1 %v6247_v45  ;;  %v1361_v45 = vadd.f32 %v3407_v57, %v1105_v20  ;;  %vm1010_vm12 = vcmp.eq.s32.totalorder %v4694_v21, %v4564_v4  ;;  %v1360_v59 = vadd.f32 %v3406_v1, %v1104_v36  ;;  %v6383_v57 = vld [vmem:[#allocation86_spill] sm:$0xff]  ;;  %v1745_v36 = vsel %vm1615_vm11, %v4475_v58, 0.0 }
 0x204   : > { %1882 = vperm.xlu1 %3736, %v4641_v46   ;;  %v3377_v46 = vsel %vm1011_vm2, 1.0, %v3827_v49  ;;  %v1744_v22 = vsel %vm1615_vm11, %v6383_v57, 0.0  ;;  %vm1012_vm13 = vcmp.eq.s32.totalorder %v4694_v21, %v4570_v8  ;;  %v1109_v1 = vadd.f32 %v3379_v35, %v853_v2  ;;  %v6389_v57 = vld [vmem:[#allocation95_spill] sm:$0xff] }
 0x205   : > { %v1107_v27 = vadd.f32 %v3377_v46, %v851_v9  ;;  %v1157_v9 = vadd.s32 24, %v3798_v62  ;;  %v1583_v46 = vadd.f32 %v1551_v48, %v1358_v3  ;;  %v1585_v3 = vadd.f32 %v1553_v61, %v1360_v59  ;;  %v6386_v59 = vld [vmem:[#allocation91_spill] sm:$0xff] }
 0x206   : > { %v4937_v42 = vpop.permute.xlu1 %1212  ;;  %v1586_v58 = vadd.f32 %v4870_v53, %v1361_v45  ;;  %v1747_v35 = vsel %vm1615_vm11, %v4466_v6, 0.0  ;;  %v3378_v4 = vsel %vm1012_vm13, 1.0, %v3827_v49  ;;  %v6388_v45 = vld [vmem:[#allocation99_spill] sm:$0xff]  ;;  %v1937_v6 = vsel %vm1808_vm6, %v4632_v37, 0.0  ;;  %v6391_v37 = vld [vmem:[#allocation74_spill] sm:$0xff] }
 0x207   : > { %6381 = vst [vmem:[#allocation58_spill] sm:$0xff] %v4937_v42  ;;  %v1171_v30 = vpop.permute.xlu0 %1170  ;;  %v6385_v42 = vld [vmem:[#allocation88_spill] sm:$0xff]  ;;  %v1776_v62 = vadd.f32 %v1744_v22, %v1583_v46  ;;  %vm1269_vm0 = vcmp.eq.s32.totalorder %v4694_v21, %v6388_v45  ;;  %v1939_v22 = vsel %vm1808_vm6, %v6389_v57, 0.0  ;;  %vm761_vm3 = vcmp.eq.s32.totalorder %v4694_v21, %v6391_v37  ;;  %v6396_v37 = vld [vmem:[#allocation110_spill] sm:$0xff] }
 0x208   : > { %vm1263_vm10 = vcmp.eq.s32.totalorder %v4694_v21, %v1171_v30  ;;  %1886 = vperm.xlu1 %3736, %v4670_v19   ;;  %v6384_v30 = vld [vmem:[#allocation82_spill] sm:$0xff]  ;;  %v1746_v34 = vsel %vm1615_vm11, %v6385_v42, 0.0  ;;  %v4978_v42 = vadd.f32 %v3349_v39, %v4770_v55  ;;  %v1938_v55 = vsel %vm1808_vm6, %v6386_v59, 0.0  ;;  %v6387_v39 = vld [vmem:[#allocation93_spill] sm:$0xff] }
 0x209   : > { %v3405_v0 = vsel %vm1263_vm10, 1.0, %v3827_v49  ;;  %v1552_v14 = vsel %vm1390_vm8, %v6384_v30, 0.0  ;;  %v1778_v8 = vadd.f32 %v1746_v34, %v1585_v3  ;;  %vm1266_vm15 = vcmp.eq.s32.totalorder %v4694_v21, %v6387_v39 }
 0x20a   : > { %v1359_v18 = vadd.f32 %v3405_v0, %v1103_v52  ;;  %v4959_v20 = vpop.permute.xlu1 %2039  ;;  %v3376_v52 = vsel %vm1010_vm12, 1.0, %v3827_v49  ;;  %v3411_v3 = vsel %vm1269_vm0, 1.0, %v3827_v49  ;;  %vm2426_vm4 = vcmask 261120  }
 0x20b   : > { %v1183_v48 = vpop.permute.xlu0 %1182  ;;  %v1106_v34 = vadd.f32 %v3376_v52, %v4841_v44  ;;  %v1108_v44 = vadd.f32 %v3378_v4, %v4849_v47  ;;  %v2131_v52 = vsel %vm2001_vm9, %v4518_v32, 0.0  ;;  %v1556_v32 = vsel %vm1390_vm8, %v4532_v25, 0.0 }
 0x20c   : > { %v1584_v0 = vadd.f32 %v1552_v14, %v1359_v18  ;;  %3737 = vset.pattern.permute.xlu1 %v6250_v23  ;;  %vm1267_vm14 = vcmp.eq.s32.totalorder %v4694_v21, %v1183_v48  ;;  %v6390_v18 = vld [vmem:[#allocation97_spill] sm:$0xff]  ;;  %v3408_v48 = vsel %vm1266_vm15, 1.0, %v3827_v49  ;;  %vm1271_vm5 = vcmp.eq.s32.totalorder %v4694_v21, %v4604_v60 }
 0x20d   : > { %1236 = vperm.xlu1 %3737, %v1157_v9   ;;  %v3409_v9 = vsel %vm1267_vm14, 1.0, %v3827_v49  ;;  %v1940_v30 = vsel %vm1808_vm6, %v6390_v18, 0.0  ;;  %v1362_v45 = vadd.f32 %v3408_v48, %v1106_v34  ;;  %v2326_v34 = vsel %vm2194_vm1, %v4566_v33, 0.0 }
 0x20e   : > { %v1777_v2 = vadd.f32 %v1745_v36, %v1584_v0  ;;  %v4986_v61 = vpop.permute.xlu1 %2047  ;;  %v1779_v36 = vadd.f32 %v1747_v35, %v1586_v58  ;;  %v1969_v0 = vadd.f32 %v1937_v6, %v1776_v62  ;;  %v1365_v35 = vadd.f32 %v3411_v3, %v1109_v1 }
 0x20f   : > { %v1186_v53 = vpop.permute.xlu0 %1185  ;;  %v2323_v62 = vsel %vm2194_vm1, %v4539_v10, 0.0  ;;  %v1558_v1 = vsel %vm1390_vm8, %v4560_v17, 0.0  ;;  %v1587_v18 = vadd.f32 %v4880_v54, %v1362_v45  ;;  %v6393_v17 = vld [vmem:[#allocation92_spill] sm:$0xff]  ;;  %v1749_v3 = vsel %vm1615_vm11, %v4574_v7, 0.0 }
 0x210   : > { %vm1268_vm2 = vcmp.eq.s32.totalorder %v4694_v21, %v1186_v53  ;;  %v1970_v46 = vadd.f32 %v1938_v55, %v1777_v2  ;;  %v1363_v2 = vadd.f32 %v3409_v9, %v1107_v27  ;;  %v1972_v39 = vadd.f32 %v1940_v30, %v1779_v36  ;;  %v6392_v53 = vld [vmem:[#allocation102_spill] sm:$0xff] }
 0x211   : > { %v3410_v14 = vsel %vm1268_vm2, 1.0, %v3827_v49  ;;  %2071 = vperm.xlu1 %3737, %v4813_v51   ;;  %v1971_v51 = vadd.f32 %v1939_v22, %v1778_v8  ;;  %v2133_v57 = vsel %vm2001_vm9, %v6392_v53, 0.0  ;;  %v1557_v8 = vsel %vm1390_vm8, %v4549_v29, 0.0 }
 0x212   : > { %v1364_v59 = vadd.f32 %v3410_v14, %v1108_v44  ;;  %v2163_v55 = vadd.f32 %v2131_v52, %v1970_v46  ;;  %v1588_v25 = vadd.f32 %v1556_v32, %v1363_v2  ;;  %v2165_v10 = vadd.f32 %v2133_v57, %v1972_v39  ;;  %v6394_v44 = vld [vmem:[#allocation94_spill] sm:$0xff] }
 0x213   : > { %v5017_v47 = vpop.permute.xlu1 %1458  ;;  %v2004_v4 = vpop.permute.xlu0 %2003  ;;  %v1748_v33 = vsel %vm1615_vm11, %v6393_v17, 0.0  ;;  %v1751_v14 = vsel %vm1615_vm11, %v6394_v44, 0.0  ;;  %v1590_v48 = vadd.f32 %v1558_v1, %v1365_v35  ;;  %v1750_v52 = vsel %vm1615_vm11, %v4581_v56, 0.0  ;;  %v6400_v44 = vld [vmem:[#allocation67_spill] sm:$0xff] }
 0x214   : > { %v2130_v58 = vsel %vm2001_vm9, %v2004_v4, 0.0  ;;  %v1589_v6 = vadd.f32 %v1557_v8, %v1364_v59  ;;  %v2356_v22 = vadd.f32 %v4720_v63, %v2163_v55  ;;  %v2358_v54 = vadd.f32 %v2326_v34, %v2165_v10 }
 0x215   : > { %v2162_v27 = vadd.f32 %v2130_v58, %v1969_v0  ;;  %2079 = vperm.xlu1 %3737, %v4670_v19   ;;  %v5060_v0 = vld [vmem:[%s3889_s11 + $0xa8] sm:$0xff]  ;;  %v1941_v2 = vsel %vm1808_vm6, %v4587_v15, 0.0  ;;  %v1780_v7 = vadd.f32 %v1748_v33, %v1587_v18  ;;  %v1942_v56 = vsel %vm1808_vm6, %v4638_v40, 0.0 }
 0x216   : > { %v1782_v59 = vadd.f32 %v1750_v52, %v1589_v6  ;;  %v1943_v39 = vsel %vm1808_vm6, %v4648_v28, 0.0  ;;  %v3351_v15 = vsel %vm761_vm3, 1.0, %v3827_v49  ;;  %vm1014_vm7 = vcmp.eq.s32.totalorder %v4694_v21, %v4577_v12  ;;  %v6395_v58 = vld [vmem:[#allocation107_spill] sm:$0xff]  ;;  %v6398_v6 = vld [vmem:[#allocation117_spill] sm:$0xff] }
 0x217   : > { %v2012_v9 = vpop.permute.xlu0 %2011  ;;  %v2355_v46 = vadd.f32 %v2323_v62, %v2162_v27  ;;  %vm1016_vm10 = vcmp.eq.s32.totalorder %v4694_v21, %v6395_v58  ;;  %v1973_v40 = vadd.f32 %v1941_v2, %v1780_v7  ;;  %v1783_v35 = vadd.f32 %v1751_v14, %v1590_v48  ;;  %v6397_v27 = vld [vmem:[#allocation120_spill] sm:$0xff]  ;;  %v6401_v48 = vld [vmem:[#allocation126_spill] sm:$0xff] }
 0x218   : > { %v2132_v29 = vsel %vm2001_vm9, %v2012_v9, 0.0  ;;  %v5044_v30 = vpop.permute.xlu1 %2228  ;;  %v2134_v28 = vsel %vm2001_vm9, %v4625_v11, 0.0  ;;  %vm1270_vm12 = vcmp.eq.s32.totalorder %v4694_v21, %v6396_v37  ;;  %v3413_v53 = vsel %vm1271_vm5, 1.0, %v3827_v49  ;;  %v6403_v7 = vld [vmem:[#allocation118_spill] sm:$0xff]  ;;  %v6408_v37 = vld [vmem:[#allocation129_spill] sm:$0xff] }
 0x219   : > { %v2164_v36 = vadd.f32 %v2132_v29, %v1971_v51  ;;  %3738 = vset.pattern.permute.xlu1 %v6238_v43  ;;  %v2387_v63 = vpack.c.bf16 %v2356_v22, %v2355_v46  ;;  %v1781_v51 = vadd.f32 %v1749_v3, %v1588_v25  ;;  %v3380_v32 = vsel %vm1014_vm7, 1.0, %v3827_v49  ;;  %v6399_v46 = vld [vmem:[#allocation122_spill] sm:$0xff] }
 0x21a   : > { %1498 = vperm.xlu1 %3738, %v5060_v0   ;;  %v1944_v11 = vsel %vm1808_vm6, %v4610_v38, 0.0  ;;  %v2327_v62 = vsel %vm2194_vm1, %v6397_v27, 0.0  ;;  %v3382_v8 = vsel %vm1016_vm10, 1.0, %v3827_v49  ;;  %v2166_v1 = vadd.f32 %v2134_v28, %v1973_v40 }
 0x21b   : > { %v2357_v4 = vadd.f32 %v4734_v13, %v2164_v36  ;;  %3545 = vmatprep.mubr.msk.bf16.mxu0 %vm2426_vm4, %v2387_v63  ;;  %v1198_v55 = vpop.permute.xlu0 %1197  ;;  %v1111_v13 = vadd.f32 %v4940_v16, %v4978_v42  ;;  %v1975_v16 = vadd.f32 %v1943_v39, %v1782_v59  ;;  %v1974_v42 = vadd.f32 %v1942_v56, %v1781_v51  ;;  %v6404_v56 = vld [vmem:[#allocation127_spill] sm:$0xff] }
 0x21c   : > { %vm1272_vm13 = vcmp.eq.s32.totalorder %v4694_v21, %v1198_v55  ;;  %v3412_v38 = vsel %vm1270_vm12, 1.0, %v3827_v49  ;;  %v2136_v9 = vsel %vm2001_vm9, %v6398_v6, 0.0  ;;  %v2328_v22 = vsel %vm2194_vm1, %v6399_v46, 0.0 }
 0x21d   : > { %v2388_v60 = vpack.c.bf16 %v2358_v54, %v2357_v4  ;;  %v5084_v45 = vpop.permute.xlu1 %1463  ;;  %v1367_v25 = vadd.f32 %v3413_v53, %v1111_v13  ;;  %v1976_v10 = vadd.f32 %v1944_v11, %v1783_v35  ;;  %v2359_v18 = vadd.f32 %v2327_v62, %v2166_v1  ;;  %v6402_v54 = vld [vmem:[#allocation3_spill] sm:$0xff]  ;;  %v5137_v4 = vld [vmem:[%s3889_s11 + $0xb8] sm:$0xff]  ;;  %v6410_v62 = vld [vmem:[#allocation2_spill] sm:$0xff] }
 0x21e   : > { %3739 = vset.pattern.permute.xlu1 %v6267_v26  ;;  %v2168_v17 = vadd.f32 %v2136_v9, %v1975_v16  ;;  %vm1017_vm14 = vcmp.eq.s32.totalorder %v4694_v21, %v6400_v44  ;;  %v1110_v14 = vadd.f32 %v3380_v32, %v4851_v41  ;;  %v3414_v36 = vsel %vm1272_vm13, 1.0, %v3827_v49  ;;  %v6411_v9 = vld [vmem:[#allocation121_spill] sm:$0xff] }
 0x21f   : > { %2260 = vperm.xlu1 %3739, %v4452_v31   ;;  %3546 = vmatmul.mubr.msk.bf16.vlgmr.msra.gmra.mrb[0].mxu0 %vm2426_vm4, %v2388_v60  ;;  %v2024_v57 = vpop.permute.xlu0 %2023  ;;  %v857_v3 = vadd.f32 %v3351_v15, %v6402_v54  ;;  %v1112_v52 = vadd.f32 %v3382_v8, %v4862_v50  ;;  %v1592_v51 = vadd.f32 %v4891_v24, %v1367_v25  ;;  %v1559_v41 = vsel %vm1390_vm8, %v6403_v7, 0.0  ;;  %v6405_v60 = vld [vmem:[#allocation114_spill] sm:$0xff]  ;;  %v6407_v24 = vld [vmem:[#allocation96_spill] sm:$0xff]  ;;  %v6414_v44 = vld [vmem:[#allocation41_spill] sm:$0xff] }
 0x220   : > { %v2135_v31 = vsel %vm2001_vm9, %v2024_v57, 0.0  ;;  %v1366_v55 = vadd.f32 %v3412_v38, %v1110_v14  ;;  %v2330_v39 = vsel %vm2194_vm1, %v6404_v56, 0.0  ;;  %vm1273_vm15 = vcmp.eq.s32.totalorder %v4694_v21, %v6405_v60  ;;  %v6406_v15 = vld [vmem:[#allocation6_spill] sm:$0xff]  ;;  %v6409_v57 = vld [vmem:[#allocation52_spill] sm:$0xff]  ;;  %v6415_v14 = vld [vmem:[#allocation131_spill] sm:$0xff] }
 0x221   : > { %v2167_v12 = vadd.f32 %v2135_v31, %v1974_v42  ;;  %v5114_v34 = vpop.permute.xlu1 %1468  ;;  %v1368_v50 = vadd.f32 %v3414_v36, %v1112_v52  ;;  %v2361_v58 = vadd.f32 %v6406_v15, %v2168_v17  ;;  %v1753_v28 = vsel %vm1615_vm11, %v6407_v24, 0.0  ;;  %v6420_v24 = vld [vmem:[#allocation112_spill] sm:$0xff] }
 0x222   : > { %v1752_v53 = vsel %vm1615_vm11, %v6408_v37, 0.0  ;;  %v1591_v16 = vadd.f32 %v1559_v41, %v1366_v55  ;;  %v1561_v32 = vsel %vm1390_vm8, %v6409_v57, 0.0  ;;  %v3383_v11 = vsel %vm1017_vm14, 1.0, %v3827_v49 }
 0x223   : > { %v2360_v29 = vadd.f32 %v2328_v22, %v2167_v12  ;;  %3740 = vset.pattern.permute.xlu1 %v6238_v43  ;;  %v2032_v33 = vpop.permute.xlu0 %2031  ;;  %v3415_v27 = vsel %vm1273_vm15, 1.0, %v3827_v49  ;;  %v1946_v31 = vsel %vm1808_vm6, %v6410_v62, 0.0  ;;  %v1113_v8 = vadd.f32 %v3383_v11, %v857_v3  ;;  %v6412_v22 = vld [vmem:[#allocation124_spill] sm:$0xff] }
 0x224   : > { %v2137_v63 = vsel %vm2001_vm9, %v2032_v33, 0.0  ;;  %1503 = vperm.xlu1 %3740, %v6401_v48   ;;  %v1784_v1 = vadd.f32 %v1752_v53, %v1591_v16  ;;  %v1785_v12 = vadd.f32 %v1753_v28, %v1592_v51  ;;  %v1593_v38 = vadd.f32 %v1561_v32, %v1368_v50  ;;  %v6417_v51 = vld [vmem:[#allocation5_spill] sm:$0xff]  ;;  %v6421_v28 = vld [vmem:[#allocation24_spill] sm:$0xff] }
 0x225   : > { %v2389_v2 = vpack.c.bf16 %v2360_v29, %v2359_v18  ;;  %v2169_v59 = vadd.f32 %v2137_v63, %v1976_v10  ;;  %v1945_v46 = vsel %vm1808_vm6, %v6411_v9, 0.0  ;;  %v1562_v10 = vsel %vm1390_vm8, %v6412_v22, 0.0  ;;  %v6413_v29 = vld [vmem:[#allocation31_spill] sm:$0xff]  ;;  %v6416_v63 = vld [vmem:[#allocation133_spill] sm:$0xff] }
 0x226   : > { %v2241_v13 = vpop.permute.xlu1 %2240  ;;  %v2139_v18 = vsel %vm2001_vm9, %v4959_v20, 0.0  ;;  %vm512_vm0 = vcmp.eq.s32.totalorder %v4694_v21, %v6413_v29  ;;  %v1369_v17 = vadd.f32 %v3415_v27, %v1113_v8  ;;  %v1978_v33 = vadd.f32 %v1946_v31, %v1785_v12  ;;  %v6422_v12 = vld [vmem:[#allocation7_spill] sm:$0xff] }
 0x227   : > { %v2362_v40 = vadd.f32 %v2330_v39, %v2169_v59  ;;  %3549 = vmatprep.mubr.msk.bf16.mxu0 %vm2426_vm4, %v2389_v2  ;;  %v5150_v35 = vpop.permute.xlu0 %1206  ;;  %vm768_vm2 = vcmp.eq.s32.totalorder %v4694_v21, %v6414_v44  ;;  %v1754_v36 = vsel %vm1615_vm11, %v6415_v14, 0.0  ;;  %v1755_v20 = vsel %vm1615_vm11, %v6416_v63, 0.0  ;;  %v5248_v63 = vld [vmem:[%s3895_s14 + $0xd8] sm:$0xff] }
 0x228   : > { %1508 = vperm.xlu1 %3740, %v5137_v4   ;;  %v1594_v54 = vadd.f32 %v1562_v10, %v1369_v17  ;;  %v2171_v3 = vadd.f32 %v2139_v18, %v1978_v33  ;;  %v1977_v2 = vadd.f32 %v1945_v46, %v1784_v1  ;;  %v1786_v55 = vadd.f32 %v1754_v36, %v1593_v38 }
 0x229   : > { %v2390_v42 = vpack.c.bf16 %v2362_v40, %v2361_v58  ;;  %v3326_v7 = vsel %vm512_vm0, 1.0, %v3827_v49  ;;  %v1948_v41 = vsel %vm1808_vm6, %v4896_v5, 0.0  ;;  %v3358_v39 = vsel %vm768_vm2, 1.0, %v3827_v49  ;;  %v6419_v58 = vld [vmem:[#allocation119_spill] sm:$0xff] }
 0x22a   : > { %v1787_v60 = vadd.f32 %v1755_v20, %v1594_v54  ;;  %v6418_v15 = vmov 1   ;;  %v903_v40 = vadd.s32 20, %v6419_v58  ;;  %vm1024_vm3 = vcmp.eq.s32.totalorder %v4694_v21, %v6420_v24 }
 0x22b   : > { %v5170_v25 = vpop.permute.xlu1 %1669  ;;  %3550 = vmatmul.mubr.msk.bf16.gmra.mrb[4].mxu0 %vm2426_vm4, %v2390_v42  ;;  %v5173_v6 = vpop.permute.xlu0 %1209  ;;  %v1947_v37 = vsel %vm1808_vm6, %v6421_v28, 0.0  ;;  %v2141_v5 = vsel %vm2001_vm9, %v4986_v61, 0.0  ;;  %v2331_v53 = vsel %vm2194_vm1, %v5044_v30, 0.0  ;;  %v2334_v27 = vsel %vm2194_vm1, %v2241_v13, 0.0  ;;  %v6429_v28 = vld [vmem:[#allocation28_spill] sm:$0xff] }
 0x22c   : > { %3741 = vset.pattern.permute.xlu1 %v6267_v26  ;;  %v1980_v16 = vadd.f32 %v1948_v41, %v1787_v60  ;;  %v1979_v32 = vadd.f32 %v1947_v37, %v1786_v55  ;;  %v3390_v61 = vsel %vm1024_vm3, 1.0, %v3827_v49  ;;  %v2333_v38 = vsel %vm2194_vm1, %v6422_v12, 0.0  ;;  %v5272_v60 = vld [vmem:[%s3889_s11 + $0xa0] sm:$0xff]  ;;  %v6430_v37 = vld [vmem:[#allocation35_spill] sm:$0xff] }
 0x22d   : > { %2272 = vperm.xlu1 %3741, %v4670_v19   ;;  %v2332_v19 = vsel %vm2194_vm1, %v6417_v51, 0.0  ;;  %v864_v9 = vadd.f32 %v3358_v39, %v3326_v7  ;;  %v6423_v46 = vmov 2   ;;  %v905_v20 = vadd.s32 20, %v5248_v63  ;;  %v6427_v7 = vld [vmem:[#allocation76_spill] sm:$0xff] }
 0x22e   : > { %v2364_v42 = vadd.f32 %v2332_v19, %v2171_v3  ;;  %v2173_v8 = vadd.f32 %v2141_v5, %v1980_v16  ;;  %v6424_v3 = vld [vmem:[#allocation34_spill] sm:$0xff]  ;;  %vm763_vm13 = vcmp.eq.s32.totalorder %v4694_v21, %v6427_v7  ;;  %vm506_vm15 = vcmp.eq.s32.totalorder %v4694_v21, %v6429_v28 }
 0x22f   : > { %v5196_v52 = vpop.permute.xlu1 %1673  ;;  %v2036_v59 = vpop.permute.xlu0 %2035  ;;  %v1120_v18 = vadd.f32 %v3390_v61, %v864_v9  ;;  %vm516_vm7 = vcmp.eq.s32.totalorder %v4694_v21, %v6424_v3  ;;  %v3353_v58 = vsel %vm763_vm13, 1.0, %v3827_v49  ;;  %vm762_vm0 = vcmp.eq.s32.totalorder %v4694_v21, %v6430_v37  ;;  %v6438_v3 = vld [vmem:[#allocation77_spill] sm:$0xff] }
 0x230   : > { %v2138_v56 = vsel %vm2001_vm9, %v2036_v59, 0.0  ;;  %v2366_v22 = vadd.f32 %v2334_v27, %v2173_v8  ;;  %v6426_v59 = vld [vmem:[#allocation115_spill] sm:$0xff]  ;;  %v3330_v51 = vsel %vm516_vm7, 1.0, %v3827_v49  ;;  %vm1275_vm7 = vcmp.eq.s32.totalorder %v4694_v21, %v5150_v35 }
 0x231   : > { %v2170_v50 = vadd.f32 %v2138_v56, %v1977_v2  ;;  %3742 = vset.pattern.permute.xlu1 %v6418_v15  ;;  %v6425_v2 = vld [vmem:[#allocation45_spill] sm:$0xff]  ;;  %vm1028_vm12 = vcmp.eq.s32.totalorder %v4694_v21, %v6426_v59  ;;  %v6428_v56 = vld [vmem:[#allocation10_spill] sm:$0xff]  ;;  %v3352_v61 = vsel %vm762_vm0, 1.0, %v3827_v49  ;;  %vm765_vm0 = vcmp.eq.s32.totalorder %v4694_v21, %v6438_v3 }
 0x232   : > { %1701 = vperm.xlu1 %3742, %v5060_v0   ;;  %vm772_vm10 = vcmp.eq.s32.totalorder %v4694_v21, %v6425_v2  ;;  %vm507_vm14 = vcmp.eq.s32.totalorder %v4694_v21, %v6428_v56  ;;  %v3394_v39 = vsel %vm1028_vm12, 1.0, %v3827_v49 }
 0x233   : > { %v2363_v57 = vadd.f32 %v2331_v53, %v2170_v50  ;;  %v2044_v11 = vpop.permute.xlu0 %2043  ;;  %v3362_v19 = vsel %vm772_vm10, 1.0, %v3827_v49  ;;  %v3321_v16 = vsel %vm507_vm14, 1.0, %v3827_v49 }
 0x234   : > { %v2140_v62 = vsel %vm2001_vm9, %v2044_v11, 0.0  ;;  %v5226_v31 = vpop.permute.xlu1 %1858  ;;  %v868_v50 = vadd.f32 %v3362_v19, %v3330_v51  ;;  %v6432_v11 = vld [vmem:[#allocation108_spill] sm:$0xff]  ;;  %v6439_v19 = vld [vmem:[#allocation109_spill] sm:$0xff] }
 0x235   : > { %v2391_v1 = vpack.c.bf16 %v2364_v42, %v2363_v57  ;;  %v2172_v30 = vadd.f32 %v2140_v62, %v1979_v32  ;;  %v6431_v42 = vld [vmem:[#allocation68_spill] sm:$0xff]  ;;  %v859_v32 = vadd.f32 %v3353_v58, %v3321_v16  ;;  %v3320_v62 = vsel %vm506_vm15, 1.0, %v3827_v49  ;;  %v6440_v58 = vld [vmem:[#allocation49_spill] sm:$0xff] }
 0x236   : > { %3743 = vset.pattern.permute.xlu1 %v6423_v46  ;;  %vm1019_vm2 = vcmp.eq.s32.totalorder %v4694_v21, %v6431_v42  ;;  %v1124_v57 = vadd.f32 %v3394_v39, %v868_v50  ;;  %v1564_v16 = vsel %vm1390_vm8, %v5017_v47, 0.0 }
 0x237   : > { %v2365_v13 = vadd.f32 %v2333_v38, %v2172_v30  ;;  %986 = vperm.xlu1 %3743, %v903_v40   ;;  %3553 = vmatprep.mubr.msk.bf16.mxu0 %vm2426_vm4, %v2391_v1  ;;  %v1222_v10 = vpop.permute.xlu0 %1221  ;;  %v3802_v40 = vld [vmem:[%s3895_s14 + $0xc0] sm:$0xff]  ;;  %v6433_v1 = vld [vmem:[#allocation29_spill] sm:$0xff]  ;;  %v6434_v30 = vld [vmem:[#allocation19_spill] sm:$0xff]  ;;  %v3385_v9 = vsel %vm1019_vm2, 1.0, %v3827_v49  ;;  %vm1020_vm2 = vcmp.eq.s32.totalorder %v4694_v21, %v6439_v19  ;;  %v1949_v19 = vsel %vm1808_vm6, %v5226_v31, 0.0 }
 0x238   : > { %vm1280_vm5 = vcmp.eq.s32.totalorder %v4694_v21, %v1222_v10  ;;  %v1158_v24 = vadd.s32 24, %v3802_v40  ;;  %vm508_vm10 = vcmp.eq.s32.totalorder %v4694_v21, %v6433_v1  ;;  %vm1274_vm12 = vcmp.eq.s32.totalorder %v4694_v21, %v6434_v30  ;;  %v6435_v38 = vld [vmem:[#allocation37_spill] sm:$0xff]  ;;  %v6436_v10 = vld [vmem:[#allocation12_spill] sm:$0xff] }
 0x239   : > { %v2392_v29 = vpack.c.bf16 %v2366_v22, %v2365_v13  ;;  %v3422_v17 = vsel %vm1280_vm5, 1.0, %v3827_v49  ;;  %v5236_v33 = vpop.permute.xlu1 %1215  ;;  %vm1018_vm5 = vcmp.eq.s32.totalorder %v4694_v21, %v6432_v11  ;;  %vm764_vm13 = vcmp.eq.s32.totalorder %v4694_v21, %v6435_v38  ;;  %v6443_v11 = vld [vmem:[#allocation69_spill] sm:$0xff] }
 0x23a   : > { %v5238_v44 = vadd.f32 %v3422_v17, %v1120_v18  ;;  %v3384_v22 = vsel %vm1018_vm5, 1.0, %v3827_v49  ;;  %v3417_v13 = vsel %vm1275_vm7, 1.0, %v3827_v49  ;;  %vm509_vm14 = vcmp.eq.s32.totalorder %v4694_v21, %v6436_v10 }
 0x23b   : > { %3744 = vset.pattern.permute.xlu1 %v6418_v15  ;;  %3554 = vmatmul.mubr.msk.bf16.gmra.mrb[8].mxu0 %vm2426_vm4, %v2392_v29  ;;  %v5242_v14 = vpop.permute.xlu0 %2055  ;;  %v858_v18 = vadd.f32 %v3352_v61, %v3320_v62  ;;  %v1115_v29 = vadd.f32 %v3385_v9, %v859_v32  ;;  %v3322_v17 = vsel %vm508_vm10, 1.0, %v3827_v49  ;;  %v3416_v2 = vsel %vm1274_vm12, 1.0, %v3827_v49 }
 0x23c   : > { %1709 = vperm.xlu1 %3744, %v5137_v4   ;;  %v3354_v59 = vsel %vm764_vm13, 1.0, %v3827_v49  ;;  %v3323_v50 = vsel %vm509_vm14, 1.0, %v3827_v49  ;;  %vm1276_vm5 = vcmp.eq.s32.totalorder %v4694_v21, %v5173_v6  ;;  %vm1021_vm10 = vcmp.eq.s32.totalorder %v4694_v21, %v6443_v11 }
 0x23d   : > { %v5245_v36 = vpop.permute.xlu1 %1218  ;;  %v1114_v51 = vadd.f32 %v3384_v22, %v858_v18  ;;  %v1371_v7 = vadd.f32 %v3417_v13, %v1115_v29  ;;  %v860_v37 = vadd.f32 %v3354_v59, %v3322_v17  ;;  %v1757_v61 = vsel %vm1615_vm11, %v5170_v25, 0.0  ;;  %v6444_v13 = vld [vmem:[#allocation58_spill] sm:$0xff]  ;;  %v6446_v17 = vld [vmem:[#allocation123_spill] sm:$0xff] }
 0x23e   : > { %v3418_v47 = vsel %vm1276_vm5, 1.0, %v3827_v49  ;;  %v1161_v30 = vadd.s32 24, %v5248_v63  ;;  %vm1277_vm12 = vcmp.eq.s32.totalorder %v4694_v21, %v6444_v13  ;;  %v6445_v18 = vld [vmem:[#allocation98_spill] sm:$0xff]  ;;  %v3387_v25 = vsel %vm1021_vm10, 1.0, %v3827_v49 }
 0x23f   : > { %v5251_v54 = vpop.permute.xlu0 %2063  ;;  %v1370_v28 = vadd.f32 %v3416_v2, %v1114_v51  ;;  %v1596_v6 = vadd.f32 %v1564_v16, %v1371_v7  ;;  %v1756_v29 = vsel %vm1615_vm11, %v6445_v18, 0.0  ;;  %v3419_v51 = vsel %vm1277_vm12, 1.0, %v3827_v49 }
 0x240   : > { %3745 = vset.pattern.permute.xlu1 %v6423_v46  ;;  %v2143_v31 = vsel %vm2001_vm9, %v5242_v14, 0.0  ;;  %vm1278_vm10 = vcmp.eq.s32.totalorder %v4694_v21, %v5236_v33 }
 0x241   : > { %992 = vperm.xlu1 %3745, %v905_v20   ;;  %v6437_v20 = vld [vmem:[#allocation38_spill] sm:$0xff]  ;;  %v1789_v3 = vadd.f32 %v1757_v61, %v1596_v6  ;;  %v6447_v6 = vld [vmem:[#allocation100_spill] sm:$0xff]  ;;  %v3420_v33 = vsel %vm1278_vm10, 1.0, %v3827_v49 }
 0x242   : > { %v5260_v55 = vpop.permute.xlu1 %1870  ;;  %vm520_vm15 = vcmp.eq.s32.totalorder %v4694_v21, %v6437_v20  ;;  %v1950_v20 = vsel %vm1808_vm6, %v6446_v17, 0.0 }
 0x243   : > { %v5266_v41 = vpop.permute.xlu0 %1230  ;;  %v3334_v40 = vsel %vm520_vm15, 1.0, %v3827_v49 }
 0x245   : > { %1890 = vperm.xlu1 %3745, %v5272_v60  }
 0x247   : > { %v5281_v5 = vpop.permute.xlu1 %1224  ;;  %v1234_v53 = vpop.permute.xlu0 %1233 }
 0x248   : > { %vm1284_vm3 = vcmp.eq.s32.totalorder %v4694_v21, %v1234_v53  ;;  %v6441_v53 = vld [vmem:[#allocation130_spill] sm:$0xff] }
 0x249   : > { %v3426_v27 = vsel %vm1284_vm3, 1.0, %v3827_v49  ;;  %3746 = vset.pattern.permute.xlu1 %v6250_v23  ;;  %vm776_vm3 = vcmp.eq.s32.totalorder %v4694_v21, %v6440_v58  ;;  %vm1032_vm7 = vcmp.eq.s32.totalorder %v4694_v21, %v6441_v53 }
 0x24a   : > { %v5295_v8 = vadd.f32 %v3426_v27, %v1124_v57  ;;  %1239 = vperm.xlu1 %3746, %v1158_v24   ;;  %v3355_v24 = vsel %vm765_vm0, 1.0, %v3827_v49  ;;  %v3366_v42 = vsel %vm776_vm3, 1.0, %v3827_v49  ;;  %v6442_v57 = vld [vmem:[#allocation54_spill] sm:$0xff]  ;;  %v3398_v9 = vsel %vm1032_vm7, 1.0, %v3827_v49 }
 0x24b   : > { %v5301_v12 = vpop.permute.xlu1 %2051  ;;  %v5303_v35 = vpop.permute.xlu0 %2067  ;;  %v1563_v32 = vsel %vm1390_vm8, %v6442_v57, 0.0  ;;  %v861_v62 = vadd.f32 %v3355_v24, %v3323_v50  ;;  %v872_v10 = vadd.f32 %v3366_v42, %v3334_v40  ;;  %v1565_v50 = vsel %vm1390_vm8, %v5084_v45, 0.0 }
 0x24c   : > { %v1595_v22 = vadd.f32 %v1563_v32, %v1370_v28  ;;  %v1566_v28 = vsel %vm1390_vm8, %v5114_v34, 0.0  ;;  %v1982_v42 = vadd.f32 %v1950_v20, %v1789_v3  ;;  %v1758_v57 = vsel %vm1615_vm11, %v5196_v52, 0.0 }
 0x24d   : > { %v1128_v59 = vadd.f32 %v3398_v9, %v872_v10  ;;  %v1117_v7 = vadd.f32 %v3387_v25, %v861_v62  ;;  %v1759_v62 = vsel %vm1615_vm11, %v6447_v6, 0.0  ;;  %vm1279_vm7 = vcmp.eq.s32.totalorder %v4694_v21, %v5245_v36 }
 0x24e   : > { %3747 = vset.pattern.permute.xlu1 %v6423_v46  ;;  %v1788_v58 = vadd.f32 %v1756_v29, %v1595_v22  ;;  %v2175_v32 = vadd.f32 %v2143_v31, %v1982_v42  ;;  %v5414_v29 = vld [vmem:[%s3889_s11 + $0xc8] sm:$0xff]  ;;  %v3804_v31 = vld [vmem:[%s3895_s14 + $0xe0] sm:$0xff] }
 0x24f   : > { %1898 = vperm.xlu1 %3747, %v6401_v48   ;;  %v5326_v56 = vpop.permute.xlu1 %2059  ;;  %v5328_v39 = vpop.permute.xlu0 %2075  ;;  %v3386_v48 = vsel %vm1020_vm2, 1.0, %v3827_v49  ;;  %v1373_v53 = vadd.f32 %v3419_v51, %v1117_v7 }
 0x250   : > { %v1116_v38 = vadd.f32 %v3386_v48, %v860_v37  ;;  %v2142_v37 = vsel %vm2001_vm9, %v5301_v12, 0.0  ;;  %v1981_v16 = vadd.f32 %v1949_v19, %v1788_v58  ;;  %v2144_v10 = vsel %vm2001_vm9, %v5326_v56, 0.0 }
 0x251   : > { %v1598_v14 = vadd.f32 %v1566_v28, %v1373_v53 }
 0x252   : > { %v1372_v63 = vadd.f32 %v3418_v47, %v1116_v38  ;;  %v2174_v11 = vadd.f32 %v2142_v37, %v1981_v16  ;;  %v6448_v38 = vld [vmem:[#allocation125_spill] sm:$0xff]  ;;  %v906_v37 = vadd.s32 20, %v3804_v31  ;;  %v6452_v16 = vld [vmem:[#allocation14_spill] sm:$0xff]  ;;  %v3806_v31 = vld [vmem:[%s3895_s14 + $0xe8] sm:$0xff] }
 0x253   : > { %1902 = vperm.xlu1 %3747, %v5137_v4   ;;  %v5350_v27 = vpop.permute.xlu0 %1242  ;;  %v1951_v9 = vsel %vm1808_vm6, %v6448_v38, 0.0  ;;  %v1791_v22 = vadd.f32 %v1759_v62, %v1598_v14  ;;  %vm511_vm15 = vcmp.eq.s32.totalorder %v4694_v21, %v6452_v16  ;;  %v6457_v38 = vld [vmem:[#allocation81_spill] sm:$0xff] }
 0x254   : > { %v5356_v1 = vpop.permute.xlu1 %1473  ;;  %v1597_v45 = vadd.f32 %v1565_v50, %v1372_v63  ;;  %v6449_v63 = vld [vmem:[#allocation9_spill] sm:$0xff]  ;;  %v6450_v50 = vld [vmem:[#allocation8_spill] sm:$0xff]  ;;  %v3325_v14 = vsel %vm511_vm15, 1.0, %v3827_v49  ;;  %vm771_vm12 = vcmp.eq.s32.totalorder %v4694_v21, %v6457_v38  ;;  %vm1283_vm15 = vcmp.eq.s32.totalorder %v4694_v21, %v5266_v41 }
 0x255   : > { %v3425_v16 = vsel %vm1283_vm15, 1.0, %v3827_v49 }
 0x256   : > { %v1790_v47 = vadd.f32 %v1758_v57, %v1597_v45  ;;  %v6451_v45 = vld [vmem:[#allocation78_spill] sm:$0xff] }
 0x257   : > { %3748 = vset.pattern.permute.xlu1 %v6250_v23  ;;  %v1246_v2 = vpop.permute.xlu0 %1245  ;;  %vm767_vm14 = vcmp.eq.s32.totalorder %v4694_v21, %v6451_v45  ;;  %v6453_v57 = vld [vmem:[#allocation30_spill] sm:$0xff] }
 0x258   : > { %vm1288_vm13 = vcmp.eq.s32.totalorder %v4694_v21, %v1246_v2  ;;  %1248 = vperm.xlu1 %3748, %v1161_v30   ;;  %v1983_v17 = vadd.f32 %v1951_v9, %v1790_v47  ;;  %v2337_v2 = vsel %vm2194_vm1, %v6449_v63, 0.0  ;;  %vm510_vm0 = vcmp.eq.s32.totalorder %v4694_v21, %v6453_v57  ;;  %v5480_v47 = vld [vmem:[%s3895_s14 + $0xf8] sm:$0xff] }
 0x259   : > { %v3430_v40 = vsel %vm1288_vm13, 1.0, %v3827_v49  ;;  %v2245_v24 = vpop.permute.xlu1 %2244  ;;  %v3324_v6 = vsel %vm510_vm0, 1.0, %v3827_v49  ;;  %v3421_v9 = vsel %vm1279_vm7, 1.0, %v3827_v49  ;;  %v6461_v57 = vld [vmem:[#allocation101_spill] sm:$0xff] }
 0x25a   : > { %v5388_v48 = vadd.f32 %v3430_v40, %v1128_v59  ;;  %v2335_v34 = vsel %vm2194_vm1, %v2245_v24, 0.0  ;;  %v2176_v20 = vadd.f32 %v2144_v10, %v1983_v17  ;;  %v5435_v40 = vld [vmem:[%s3889_s11 + $0xd8] sm:$0xff]  ;;  %v3361_v10 = vsel %vm771_vm12, 1.0, %v3827_v49 }
 0x25b   : > { %v2367_v30 = vadd.f32 %v2335_v34, %v2174_v11  ;;  %v6454_v34 = vld [vmem:[#allocation39_spill] sm:$0xff]  ;;  %v1761_v41 = vsel %vm1615_vm11, %v6461_v57, 0.0  ;;  %vm1287_vm12 = vcmp.eq.s32.totalorder %v4694_v21, %v5350_v27 }
 0x25c   : > { %2087 = vperm.xlu1 %3748, %v5060_v0   ;;  %v1952_v0 = vsel %vm1808_vm6, %v5260_v55, 0.0  ;;  %v2145_v55 = vsel %vm2001_vm9, %v5251_v54, 0.0  ;;  %v2369_v51 = vadd.f32 %v2337_v2, %v2176_v20  ;;  %vm766_vm2 = vcmp.eq.s32.totalorder %v4694_v21, %v6454_v34  ;;  %v6462_v34 = vld [vmem:[#allocation128_spill] sm:$0xff] }
 0x25d   : > { %v2249_v12 = vpop.permute.xlu1 %2248  ;;  %v1984_v25 = vadd.f32 %v1952_v0, %v1791_v22  ;;  %v3356_v62 = vsel %vm766_vm2, 1.0, %v3827_v49  ;;  %v1567_v20 = vsel %vm1390_vm8, %v5356_v1, 0.0 }
 0x25e   : > { %v2336_v61 = vsel %vm2194_vm1, %v2249_v12, 0.0  ;;  %v6456_v12 = vld [vmem:[#allocation111_spill] sm:$0xff]  ;;  %v862_v0 = vadd.f32 %v3356_v62, %v3324_v6 }
 0x25f   : > { %v2368_v52 = vadd.f32 %v2336_v61, %v2175_v32  ;;  %v2177_v56 = vadd.f32 %v2145_v55, %v1984_v25  ;;  %v6455_v32 = vld [vmem:[#allocation70_spill] sm:$0xff]  ;;  %vm1022_vm5 = vcmp.eq.s32.totalorder %v4694_v21, %v6456_v12 }
 0x260   : > { %2095 = vperm.xlu1 %3748, %v5137_v4   ;;  %vm1023_vm3 = vcmp.eq.s32.totalorder %v4694_v21, %v6455_v32  ;;  %v3388_v36 = vsel %vm1022_vm5, 1.0, %v3827_v49  ;;  %vm1281_vm5 = vcmp.eq.s32.totalorder %v4694_v21, %v5281_v5 }
 0x261   : > { %v2393_v13 = vpack.c.bf16 %v2368_v52, %v2367_v30  ;;  %v909_v30 = vadd.s32 20, %v5480_v47  ;;  %v3389_v52 = vsel %vm1023_vm3, 1.0, %v3827_v49  ;;  %v1118_v25 = vadd.f32 %v3388_v36, %v862_v0 }
 0x262   : > { %v5411_v18 = vpop.permute.xlu1 %1488  ;;  %v2146_v0 = vsel %vm2001_vm9, %v5303_v35, 0.0 }
 0x263   : > { %3557 = vmatprep.mubr.msk.bf16.mxu0 %vm2426_vm4, %v2393_v13  ;;  %v6458_v13 = vld [vmem:[#allocation18_spill] sm:$0xff]  ;;  %v1374_v2 = vadd.f32 %v3420_v33, %v1118_v25 }
 0x264   : > { %3749 = vset.pattern.permute.xlu1 %v6238_v43  ;;  %vm515_vm13 = vcmp.eq.s32.totalorder %v4694_v21, %v6458_v13 }
 0x265   : > { %1518 = vperm.xlu1 %3749, %v5414_v29  }
 0x267   : > { %v2257_v3 = vpop.permute.xlu1 %2256 }
 0x268   : > { %v2338_v59 = vsel %vm2194_vm1, %v2257_v3, 0.0  ;;  %v3329_v3 = vsel %vm515_vm13, 1.0, %v3827_v49 }
 0x269   : > { %v2370_v19 = vadd.f32 %v2338_v59, %v2177_v56  ;;  %3750 = vset.pattern.permute.xlu1 %v6267_v26  ;;  %v6459_v56 = vld [vmem:[#allocation55_spill] sm:$0xff]  ;;  %v6460_v59 = vld [vmem:[#allocation73_spill] sm:$0xff] }
 0x26a   : > { %2276 = vperm.xlu1 %3750, %v5272_v60   ;;  %v1568_v63 = vsel %vm1390_vm8, %v6459_v56, 0.0 }
 0x26b   : > { %v2394_v54 = vpack.c.bf16 %v2370_v19, %v2369_v51  ;;  %v867_v51 = vadd.f32 %v3361_v10, %v3329_v3  ;;  %v6465_v10 = vld [vmem:[#allocation71_spill] sm:$0xff] }
 0x26c   : > { %v1682_v7 = vpop.permute.xlu1 %1681  ;;  %vm1025_vm3 = vcmp.eq.s32.totalorder %v4694_v21, %v6465_v10  ;;  %v6466_v3 = vld [vmem:[#allocation11_spill] sm:$0xff] }
 0x26d   : > { %3558 = vmatmul.mubr.msk.bf16.gmra.mrb[12].mxu0 %vm2426_vm4, %v2394_v54  ;;  %v1760_v19 = vsel %vm1615_vm11, %v1682_v7, 0.0  ;;  %v1953_v7 = vsel %vm1808_vm6, %v6462_v34, 0.0  ;;  %v2340_v35 = vsel %vm2194_vm1, %v6466_v3, 0.0  ;;  %v3391_v5 = vsel %vm1025_vm3, 1.0, %v3827_v49 }
 0x26e   : > { %3751 = vset.pattern.permute.xlu1 %v6238_v43  ;;  %v1165_v34 = vadd.s32 24, %v5480_v47  ;;  %v2148_v47 = vsel %vm2001_vm9, %v5328_v39, 0.0 }
 0x26f   : > { %1523 = vperm.xlu1 %3751, %v6450_v50  }
 0x270   : > { %v5432_v58 = vpop.permute.xlu1 %1689 }
 0x273   : > { %1528 = vperm.xlu1 %3751, %v5435_v40  }
 0x274   : > { %v5438_v24 = vpop.permute.xlu1 %1693 }
 0x277   : > { %3753 = vset.pattern.permute.xlu1 %v6267_v26 }
 0x278   : > { %2288 = vperm.xlu1 %3753, %v5137_v4   ;;  %v3357_v4 = vsel %vm767_vm14, 1.0, %v3827_v49  ;;  %vm1027_vm14 = vcmp.eq.s32.totalorder %v4694_v21, %v6460_v59 }
 0x279   : > { %v5442_v60 = vpop.permute.xlu1 %1878  ;;  %v863_v11 = vadd.f32 %v3357_v4, %v3325_v14  ;;  %v3393_v45 = vsel %vm1027_vm14, 1.0, %v3827_v49 }
 0x27a   : > { %v1123_v14 = vadd.f32 %v3393_v45, %v867_v51  ;;  %v1954_v32 = vsel %vm1808_vm6, %v5442_v60, 0.0 }
 0x27b   : > { %v1119_v22 = vadd.f32 %v3389_v52, %v863_v11  ;;  %v6463_v11 = vld [vmem:[#allocation80_spill] sm:$0xff] }
 0x27c   : > { %3754 = vset.pattern.permute.xlu1 %v6418_v15  ;;  %vm769_vm0 = vcmp.eq.s32.totalorder %v4694_v21, %v6463_v11  ;;  %v1379_v6 = vadd.f32 %v3425_v16, %v1123_v14  ;;  %v6464_v52 = vld [vmem:[#allocation16_spill] sm:$0xff]  ;;  %v1763_v14 = vsel %vm1615_vm11, %v5438_v24, 0.0 }
 0x27d   : > { %1717 = vperm.xlu1 %3754, %v5414_v29   ;;  %v1375_v17 = vadd.f32 %v3421_v9, %v1119_v22  ;;  %vm513_vm2 = vcmp.eq.s32.totalorder %v4694_v21, %v6464_v52  ;;  %v3359_v9 = vsel %vm769_vm0, 1.0, %v3827_v49 }
 0x27e   : > { %v5446_v28 = vpop.permute.xlu1 %1227  ;;  %v3327_v33 = vsel %vm513_vm2, 1.0, %v3827_v49 }
 0x27f   : > { %v1600_v54 = vadd.f32 %v1568_v63, %v1375_v17  ;;  %v865_v25 = vadd.f32 %v3359_v9, %v3327_v33  ;;  %v3807_v17 = vld [vmem:[%s3889_s11 + $0xd0] sm:$0xff]  ;;  %v6470_v33 = vld [vmem:[#allocation22_spill] sm:$0xff] }
 0x280   : > { %v3808_v63 = vld [vmem:[%s3895_s14 + $0xf0] sm:$0xff]  ;;  %vm519_vm10 = vcmp.eq.s32.totalorder %v4694_v21, %v6470_v33 }
 0x281   : > { %3755 = vset.pattern.permute.xlu1 %v6423_v46  ;;  %v1793_v12 = vadd.f32 %v1761_v41, %v1600_v54  ;;  %v1121_v45 = vadd.f32 %v3391_v5, %v865_v25  ;;  %v6472_v5 = vld [vmem:[#allocation36_spill] sm:$0xff] }
 0x282   : > { %995 = vperm.xlu1 %3755, %v906_v37   ;;  %v1163_v37 = vadd.s32 24, %v3806_v31  ;;  %v1762_v31 = vsel %vm1615_vm11, %v5432_v58, 0.0  ;;  %vm518_vm14 = vcmp.eq.s32.totalorder %v4694_v21, %v6472_v5  ;;  %v6484_v5 = vld [vmem:[#allocation103_spill] sm:$0xff] }
 0x283   : > { %v5450_v53 = vpop.permute.xlu1 %1882  ;;  %v1986_v36 = vadd.f32 %v1954_v32, %v1793_v12 }
 0x284   : > { %v1955_v57 = vsel %vm1808_vm6, %v5450_v53, 0.0 }
 0x286   : > { %3756 = vset.pattern.permute.xlu1 %v6418_v15 }
 0x287   : > { %1721 = vperm.xlu1 %3756, %v6450_v50   ;;  %v5459_v42 = vpop.permute.xlu1 %1886  ;;  %v1599_v50 = vadd.f32 %v1567_v20, %v1374_v2  ;;  %v1164_v2 = vadd.s32 24, %v3808_v63  ;;  %v3429_v63 = vsel %vm1287_vm12, 1.0, %v3827_v49 }
 0x288   : > { %v1956_v11 = vsel %vm1808_vm6, %v5459_v42, 0.0 }
 0x289   : > { %v1792_v4 = vadd.f32 %v1760_v19, %v1599_v50  ;;  %v6467_v19 = vld [vmem:[#allocation57_spill] sm:$0xff]  ;;  %v3423_v50 = vsel %vm1281_vm5, 1.0, %v3827_v49 }
 0x28a   : > { %v1569_v54 = vsel %vm1390_vm8, %v6467_v19, 0.0 }
 0x28b   : > { %1725 = vperm.xlu1 %3756, %v5435_v40   ;;  %v1985_v38 = vadd.f32 %v1953_v7, %v1792_v4  ;;  %v1570_v4 = vsel %vm1390_vm8, %v5411_v18, 0.0  ;;  %v1377_v7 = vadd.f32 %v3423_v50, %v1121_v45  ;;  %v6473_v50 = vld [vmem:[#allocation47_spill] sm:$0xff] }
 0x28c   : > { %v5477_v61 = vpop.permute.xlu1 %1236  ;;  %vm774_vm15 = vcmp.eq.s32.totalorder %v4694_v21, %v6473_v50  ;;  %v1764_v50 = vsel %vm1615_vm11, %v6484_v5, 0.0 }
 0x28d   : > { %v2178_v20 = vadd.f32 %v2146_v0, %v1985_v38  ;;  %v1602_v32 = vadd.f32 %v1570_v4, %v1377_v7  ;;  %v6468_v38 = vld [vmem:[#allocation13_spill] sm:$0xff] }
 0x28e   : > { %v2341_v39 = vsel %vm2194_vm1, %v6468_v38, 0.0  ;;  %v6469_v0 = vld [vmem:[#allocation85_spill] sm:$0xff] }
 0x28f   : > { %3757 = vset.pattern.permute.xlu1 %v6423_v46  ;;  %vm775_vm7 = vcmp.eq.s32.totalorder %v4694_v21, %v6469_v0 }
 0x290   : > { %1004 = vperm.xlu1 %3757, %v909_v30   ;;  %v2072_v55 = vpop.permute.xlu1 %2071  ;;  %v3365_v25 = vsel %vm775_vm7, 1.0, %v3827_v49 }
 0x291   : > { %v2147_v62 = vsel %vm2001_vm9, %v2072_v55, 0.0 }
 0x292   : > { %v2179_v13 = vadd.f32 %v2147_v62, %v1986_v36 }
 0x294   : > { %1910 = vperm.xlu1 %3757, %v5414_v29   ;;  %v5507_v1 = vpop.permute.xlu1 %2079  ;;  %v2372_v51 = vadd.f32 %v2340_v35, %v2179_v13 }
 0x295   : > { %v2149_v24 = vsel %vm2001_vm9, %v5507_v1, 0.0 }
 0x298   : > { %3758 = vset.pattern.permute.xlu1 %v6250_v23 }
 0x299   : > { %1254 = vperm.xlu1 %3758, %v1163_v37   ;;  %v1499_v30 = vpop.permute.xlu1 %1498  ;;  %v1601_v37 = vadd.f32 %v1569_v54, %v5238_v44 }
 0x29a   : > { %v1572_v60 = vsel %vm1390_vm8, %v1499_v30, 0.0 }
 0x29b   : > { %v1604_v22 = vadd.f32 %v1572_v60, %v1379_v6  ;;  %v1794_v58 = vadd.f32 %v1762_v31, %v1601_v37  ;;  %v1795_v6 = vadd.f32 %v1763_v14, %v1602_v32  ;;  %v5627_v31 = vld [vmem:[%s3889_s11 + $0xf8] sm:$0xff]  ;;  %v6474_v37 = vld [vmem:[#allocation116_spill] sm:$0xff] }
 0x29c   : > { %vm1030_vm0 = vcmp.eq.s32.totalorder %v4694_v21, %v6474_v37 }
 0x29d   : > { %3759 = vset.pattern.permute.xlu1 %v6423_v46  ;;  %v1987_v53 = vadd.f32 %v1955_v57, %v1794_v58  ;;  %v1988_v62 = vadd.f32 %v1956_v11, %v1795_v6  ;;  %v6475_v58 = vld [vmem:[#allocation61_spill] sm:$0xff]  ;;  %v5652_v11 = vld [vmem:[%s3889_s11 + $0xf0] sm:$0xff] }
 0x29e   : > { %1914 = vperm.xlu1 %3759, %v3807_v17   ;;  %v2261_v55 = vpop.permute.xlu1 %2260  ;;  %v6478_v6 = vld [vmem:[#allocation32_spill] sm:$0xff] }
 0x29f   : > { %v2339_v56 = vsel %vm2194_vm1, %v2261_v55, 0.0  ;;  %v2181_v30 = vadd.f32 %v2149_v24, %v1988_v62  ;;  %vm514_vm5 = vcmp.eq.s32.totalorder %v4694_v21, %v6478_v6  ;;  %v6479_v24 = vld [vmem:[#allocation43_spill] sm:$0xff] }
 0x2a0   : > { %v2371_v59 = vadd.f32 %v2339_v56, %v2178_v20  ;;  %v5603_v20 = vld [vmem:[%s3889_s11 + $0xe0] sm:$0xff]  ;;  %vm770_vm7 = vcmp.eq.s32.totalorder %v4694_v21, %v6479_v24  ;;  %v6488_v6 = vld [vmem:[#allocation15_spill] sm:$0xff] }
 0x2a2   : > { %3760 = vset.pattern.permute.xlu1 %v6250_v23  ;;  %v2395_v16 = vpack.c.bf16 %v2372_v51, %v2371_v59  ;;  %v3810_v51 = vld [vmem:[%s3889_s11 + $0xc0] sm:$0xff] }
 0x2a3   : > { %1257 = vperm.xlu1 %3760, %v1164_v2   ;;  %v1504_v41 = vpop.permute.xlu1 %1503 }
 0x2a4   : > { %v1573_v44 = vsel %vm1390_vm8, %v1504_v41, 0.0  ;;  %3561 = vmatprep.mubr.msk.bf16.mxu1 %vm2426_vm4, %v2395_v16  ;;  %v3332_v16 = vsel %vm518_vm14, 1.0, %v3827_v49  ;;  %vm1282_vm14 = vcmp.eq.s32.totalorder %v4694_v21, %v5446_v28 }
 0x2a5   : > { %v5571_v18 = vadd.f32 %v1573_v44, %v5295_v8  ;;  %v2180_v8 = vadd.f32 %v2148_v47, %v1987_v53  ;;  %v1575_v44 = vsel %vm1390_vm8, %v6475_v58, 0.0  ;;  %v6477_v47 = vld [vmem:[#allocation87_spill] sm:$0xff] }
 0x2a6   : > { %vm777_vm3 = vcmp.eq.s32.totalorder %v4694_v21, %v6477_v47 }
 0x2a7   : > { %1260 = vperm.xlu1 %3760, %v1165_v34   ;;  %v5579_v12 = vpop.permute.xlu1 %1508  ;;  %v2373_v36 = vadd.f32 %v2341_v39, %v2180_v8  ;;  %v6480_v8 = vld [vmem:[#allocation4_spill] sm:$0xff]  ;;  %v3367_v39 = vsel %vm777_vm3, 1.0, %v3827_v49 }
 0x2a8   : > { %v1961_v62 = vsel %vm1808_vm6, %v6480_v8, 0.0 }
 0x2ab   : > { %2103 = vperm.xlu1 %3760, %v5414_v29  }
 0x2ac   : > { %v2273_v52 = vpop.permute.xlu1 %2272 }
 0x2ad   : > { %v2342_v42 = vsel %vm2194_vm1, %v2273_v52, 0.0 }
 0x2ae   : > { %v2374_v60 = vadd.f32 %v2342_v42, %v2181_v30  ;;  %v6481_v30 = vld [vmem:[#allocation23_spill] sm:$0xff]  ;;  %v6482_v42 = vld [vmem:[#allocation113_spill] sm:$0xff] }
 0x2af   : > { %2107 = vperm.xlu1 %3760, %v3807_v17   ;;  %v6471_v17 = vld [vmem:[#allocation132_spill] sm:$0xff] }
 0x2b0   : > { %v2396_v9 = vpack.c.bf16 %v2374_v60, %v2373_v36  ;;  %v1958_v55 = vsel %vm1808_vm6, %v6471_v17, 0.0  ;;  %v3328_v36 = vsel %vm514_vm5, 1.0, %v3827_v49  ;;  %v3360_v60 = vsel %vm770_vm7, 1.0, %v3827_v49 }
 0x2b1   : > { %v1702_v1 = vpop.permute.xlu1 %1701  ;;  %v866_v33 = vadd.f32 %v3360_v60, %v3328_v36  ;;  %vm1285_vm5 = vcmp.eq.s32.totalorder %v4694_v21, %v5477_v61  ;;  %v6489_v60 = vld [vmem:[#allocation104_spill] sm:$0xff] }
 0x2b2   : > { %v1765_v13 = vsel %vm1615_vm11, %v1702_v1, 0.0  ;;  %3562 = vmatmul.mubr.msk.bf16.vlgmr.msra.gmra.mrb[0].mxu1 %vm2426_vm4, %v2396_v9 }
 0x2b3   : > { %v1797_v10 = vadd.f32 %v1765_v13, %v1604_v22  ;;  %3761 = vset.pattern.permute.xlu1 %v6238_v43  ;;  %v3333_v22 = vsel %vm519_vm10, 1.0, %v3827_v49  ;;  %vm521_vm10 = vcmp.eq.s32.totalorder %v4694_v21, %v6481_v30  ;;  %v3778_v30 = vld [vmem:[%s6177_s4 + $0x18] sm:$0xff]  }
 0x2b4   : > { %1533 = vperm.xlu1 %3761, %v5603_v20   ;;  %v871_v56 = vadd.f32 %v3365_v25, %v3333_v22  ;;  %v3335_v9 = vsel %vm521_vm10, 1.0, %v3827_v49  ;;  %v3424_v25 = vsel %vm1282_vm14, 1.0, %v3827_v49 }
 0x2b5   : > { %v5608_v3 = vadd.f32 %v1958_v55, %v1797_v10  ;;  %v873_v1 = vadd.f32 %v3367_v39, %v3335_v9  ;;  %v3427_v39 = vsel %vm1285_vm5, 1.0, %v3827_v49  ;;  %v1766_v9 = vsel %vm1615_vm11, %v6489_v60, 0.0 }
 0x2b6   : > { %v987_v35 = vpop.permute.xlu1 %986 }
 0x2b7   : > { %vm1031_vm13 = vcmp.eq.s32.totalorder %v4694_v21, %v987_v35  ;;  %v3813_v35 = vld [vmem:[%s3889_s11 + $0xe8] sm:$0xff] }
 0x2b8   : > { %v3397_v2 = vsel %vm1031_vm13, 1.0, %v3827_v49  ;;  %3762 = vset.pattern.permute.xlu1 %v6267_v26  ;;  %vm1026_vm13 = vcmp.eq.s32.totalorder %v4694_v21, %v6482_v42 }
 0x2b9   : > { %v1127_v59 = vadd.f32 %v3397_v2, %v871_v56  ;;  %2292 = vperm.xlu1 %3762, %v3810_v51   ;;  %v3392_v13 = vsel %vm1026_vm13, 1.0, %v3827_v49  ;;  %v6483_v2 = vld [vmem:[#allocation59_spill] sm:$0xff]  ;;  %v3775_v51 = vld [vmem:[%s6177_s4] sm:$0xff]  }
 0x2ba   : > { %v1122_v55 = vadd.f32 %v3392_v13, %v866_v33  ;;  %3577 = vmatprep.subr.bf16.mxu1 %v3775_v51  ;;  %v1798_v33 = vadd.f32 %v1766_v9, %v5571_v18  ;;  %v5767_v18 = vld [vmem:[%s6176_s3] ss:$0 sm:$0xff] }
 0x2bb   : > { %v5616_v19 = vpop.permute.xlu1 %1709  ;;  %v5618_v27 = vadd.f32 %v3429_v63, %v1127_v59  ;;  %v1571_v59 = vsel %vm1390_vm8, %v6483_v2, 0.0  ;;  %3578 = vmatpush3.bf16.msra.mxu1 %v3775_v51  ;;  %v3780_v51 = vld [vmem:[%s6177_s4 + $0x28] sm:$0xff]  }
 0x2bc   : > { %v1378_v56 = vadd.f32 %v3424_v25, %v1122_v55 }
 0x2bd   : > { %2296 = vperm.xlu1 %3762, %v5414_v29   ;;  %v3364_v29 = vsel %vm774_vm15, 1.0, %v3827_v49 }
 0x2be   : > { %v870_v4 = vadd.f32 %v3364_v29, %v3332_v16  ;;  %v6485_v16 = vld [vmem:[#allocation83_spill] sm:$0xff] }
 0x2c0   : > { %v993_v54 = vpop.permute.xlu1 %992 }
 0x2c1   : > { %3764 = vset.pattern.permute.xlu1 %v6238_v43  ;;  %v3396_v43 = vsel %vm1030_vm0, 1.0, %v3827_v49  ;;  %vm1033_vm12 = vcmp.eq.s32.totalorder %v4694_v21, %v993_v54  ;;  %vm773_vm0 = vcmp.eq.s32.totalorder %v4694_v21, %v6485_v16 }
 0x2c2   : > { %1548 = vperm.xlu1 %3764, %v5627_v31   ;;  %v1126_v41 = vadd.f32 %v3396_v43, %v870_v4  ;;  %v3399_v0 = vsel %vm1033_vm12, 1.0, %v3827_v49  ;;  %v2084_v43 = vpop.permute.xlu0 %2083  ;;  %v3776_v4 = vld [vmem:[%s6177_s4 + $0x8] sm:$0xff]  }
 0x2c3   : > { %v1129_v17 = vadd.f32 %v3399_v0, %v873_v1  ;;  %3579 = vmatprep.subr.bf16.mxu1 %v3776_v4 }
 0x2c4   : > { %v1891_v45 = vpop.permute.xlu1 %1890  ;;  %3580 = vmatpush3.bf16.msra.mxu1 %v3776_v4 }
 0x2c5   : > { %v1957_v37 = vsel %vm1808_vm6, %v1891_v45, 0.0  ;;  %v3363_v45 = vsel %vm773_vm0, 1.0, %v3827_v49 }
 0x2c6   : > { %3765 = vset.pattern.permute.xlu1 %v6267_v26 }
 0x2c7   : > { %2304 = vperm.xlu1 %3765, %v5435_v40   ;;  %v6476_v40 = vld [vmem:[#allocation105_spill] sm:$0xff] }
 0x2c8   : > { %v1768_v53 = vsel %vm1615_vm11, %v6476_v40, 0.0 }
 0x2c9   : > { %v1240_v57 = vpop.permute.xlu1 %1239 }
 0x2ca   : > { %vm1286_vm2 = vcmp.eq.s32.totalorder %v4694_v21, %v1240_v57 }
 0x2cb   : > { %v3428_v34 = vsel %vm1286_vm2, 1.0, %v3827_v49  ;;  %3766 = vset.pattern.permute.xlu1 %v6418_v15 }
 0x2cc   : > { %v1382_v7 = vadd.f32 %v3428_v34, %v1126_v41  ;;  %1729 = vperm.xlu1 %3766, %v5603_v20   ;;  %v6486_v41 = vld [vmem:[#allocation20_spill] sm:$0xff] }
 0x2cd   : > { %vm517_vm2 = vcmp.eq.s32.totalorder %v4694_v21, %v6486_v41 }
 0x2ce   : > { %v1607_v14 = vadd.f32 %v1575_v44, %v1382_v7  ;;  %v5644_v32 = vpop.permute.xlu1 %1898  ;;  %v2150_v7 = vsel %vm2001_vm9, %v2084_v43, 0.0  ;;  %v3331_v40 = vsel %vm517_vm2, 1.0, %v3827_v49 }
 0x2cf   : > { %v869_v47 = vadd.f32 %v3363_v45, %v3331_v40  ;;  %v1959_v0 = vsel %vm1808_vm6, %v5644_v32, 0.0  ;;  %v1767_v32 = vsel %vm1615_vm11, %v5616_v19, 0.0 }
 0x2d0   : > { %1737 = vperm.xlu1 %3766, %v5652_v11   ;;  %v1800_v15 = vadd.f32 %v1768_v53, %v1607_v14  ;;  %v3777_v14 = vld [vmem:[%s6177_s4 + $0x10] sm:$0xff]   ;;  %v6487_v53 = vld [vmem:[#allocation75_spill] sm:$0xff]  ;;  %v1991_v55 = vadd.f32 %v1959_v0, %v1798_v33 }
 0x2d1   : > { %vm1029_vm3 = vcmp.eq.s32.totalorder %v4694_v21, %v6487_v53  ;;  %3581 = vmatprep.subr.bf16.mxu1 %v3777_v14  ;;  %v3782_v53 = vld [vmem:[%s6177_s4 + $0x38] sm:$0xff]  }
 0x2d2   : > { %v5665_v52 = vpop.permute.xlu1 %1902  ;;  %v5667_v38 = vadd.f32 %v1961_v62, %v1800_v15  ;;  %3582 = vmatpush3.bf16.msra.mxu1 %v3777_v14  ;;  %v3395_v61 = vsel %vm1029_vm3, 1.0, %v3827_v49 }
 0x2d3   : > { %v1125_v42 = vadd.f32 %v3395_v61, %v869_v47  ;;  %3583 = vmatprep.subr.bf16.mxu1 %v3778_v30 }
 0x2d4   : > { %1741 = vperm.xlu1 %3766, %v5627_v31  }
 0x2d5   : > { %v1381_v13 = vadd.f32 %v3427_v39, %v1125_v42 }
 0x2d6   : > { %3584 = vmatpush3.bf16.msra.mxu1 %v3778_v30 }
 0x2d7   : > { %v1249_v10 = vpop.permute.xlu1 %1248 }
 0x2d8   : > { %vm1289_vm15 = vcmp.eq.s32.totalorder %v4694_v21, %v1249_v10  ;;  %3768 = vset.pattern.permute.xlu1 %v6423_v46  ;;  %v1603_v46 = vadd.f32 %v1571_v59, %v1378_v56 }
 0x2d9   : > { %v3431_v22 = vsel %vm1289_vm15, 1.0, %v3827_v49  ;;  %1926 = vperm.xlu1 %3768, %v3813_v35  }
 0x2da   : > { %v5685_v28 = vadd.f32 %v3431_v22, %v1129_v17  ;;  %v1796_v29 = vadd.f32 %v1764_v50, %v1603_v46  ;;  %v2092_v17 = vpop.permute.xlu0 %2091 }
 0x2db   : > { %v2088_v63 = vpop.permute.xlu1 %2087  ;;  %v2152_v22 = vsel %vm2001_vm9, %v2092_v17, 0.0 }
 0x2dc   : > { %v1989_v34 = vadd.f32 %v1957_v37, %v1796_v29  ;;  %v2184_v37 = vadd.f32 %v2152_v22, %v1991_v55 }
 0x2dd   : > { %1930 = vperm.xlu1 %3768, %v5652_v11  }
 0x2df   : > { %v5694_v54 = vpop.permute.xlu1 %2095 }
 0x2e1   : > { %3770 = vset.pattern.permute.xlu1 %v6250_v23  ;;  %v2151_v23 = vsel %vm2001_vm9, %v2088_v63, 0.0 }
 0x2e2   : > { %2115 = vperm.xlu1 %3770, %v5603_v20   ;;  %v2183_v44 = vadd.f32 %v2151_v23, %v5608_v3  ;;  %v2344_v3 = vsel %vm2194_vm1, %v6488_v6, 0.0 }
 0x2e4   : > { %v1519_v57 = vpop.permute.xlu1 %1518  ;;  %v2376_v8 = vadd.f32 %v2344_v3, %v2183_v44 }
 0x2e5   : > { %v1576_v20 = vsel %vm1390_vm8, %v1519_v57, 0.0 }
 0x2e6   : > { %v5718_v58 = vadd.f32 %v1576_v20, %v5618_v27  ;;  %2123 = vperm.xlu1 %3770, %v5652_v11   ;;  %v2182_v27 = vadd.f32 %v2150_v7, %v1989_v34 }
 0x2e9   : > { %v2277_v15 = vpop.permute.xlu1 %2276 }
 0x2ea   : > { %v2343_v24 = vsel %vm2194_vm1, %v2277_v15, 0.0  ;;  %2127 = vperm.xlu1 %3770, %v5627_v31   ;;  %v1574_v31 = vsel %vm1390_vm8, %v5579_v12, 0.0  ;;  %v3779_v12 = vld [vmem:[%s6177_s4 + $0x20] sm:$0xff]  }
 0x2eb   : > { %v2375_v62 = vadd.f32 %v2343_v24, %v2182_v27  ;;  %v1606_v25 = vadd.f32 %v1574_v31, %v1381_v13  ;;  %3585 = vmatprep.subr.bf16.mxu1 %v3779_v12 }
 0x2ec   : > { %3586 = vmatpush3.bf16.msra.mxu1 %v3779_v12 }
 0x2ed   : > { %v2397_v36 = vpack.c.bf16 %v2376_v8, %v2375_v62  ;;  %3587 = vmatprep.subr.bf16.mxu1 %v3780_v51 }
 0x2ee   : > { %3772 = vset.pattern.permute.xlu1 %v6267_v26  ;;  %v1524_v1 = vpop.permute.xlu1 %1523 }
 0x2ef   : > { %v1577_v10 = vsel %vm1390_vm8, %v1524_v1, 0.0  ;;  %2312 = vperm.xlu1 %3772, %v3813_v35   ;;  %3565 = vmatprep.mubr.msk.bf16.mxu1 %vm2426_vm4, %v2397_v36  ;;  %v1960_v35 = vsel %vm1808_vm6, %v5665_v52, 0.0  ;;  %v2153_v52 = vsel %vm2001_vm9, %v5694_v54, 0.0  ;;  %v6490_v54 = vld [vmem:[#allocation17_spill] sm:$0xff] }
 0x2f0   : > { %v5762_v26 = vadd.f32 %v1577_v10, %v5388_v48  ;;  %v1799_v48 = vadd.f32 %v1767_v32, %v1606_v25  ;;  %3588 = vmatpush3.bf16.msra.mxu1 %v3780_v51  ;;  %v2345_v34 = vsel %vm2194_vm1, %v6490_v54, 0.0  ;;  %v6491_v32 = vld [vmem:[#allocation21_spill] sm:$0xff] }
 0x2f1   : > { %v2377_v14 = vadd.f32 %v2345_v34, %v2184_v37  ;;  %v1964_v25 = vsel %vm1808_vm6, %v6491_v32, 0.0 }
 0x2f2   : > { %v1529_v19 = vpop.permute.xlu1 %1528  ;;  %v3547_v56 = vpop.f32.mrb[0].mxu0  ;;  %v1992_v16 = vadd.f32 %v1960_v35, %v1799_v48 }
 0x2f3   : > { %v1578_v63 = vsel %vm1390_vm8, %v1529_v19, 0.0  ;;  %v2518_v2 = vadd.f32 %v3547_v56, %v5767_v18  ;;  %2316 = vperm.xlu1 %3772, %v5652_v11   ;;  %v2509_v59 = vpop.f32.mrb[1].mxu0 }
 0x2f4   : > { %v1610_v46 = vadd.f32 %v1578_v63, %v5685_v28  ;;  %v2510_v5 = vadd.f32 %v5767_v18, %v2509_v59  ;;  %v3548_v50 = vpop.f32.mrb[2].mxu0  ;;  %v2185_v4 = vadd.f32 %v2153_v52, %v1992_v16  ;;  %v3781_v28 = vld [vmem:[%s6177_s4 + $0x30] sm:$0xff]   ;;  %v6492_v63 = vld [vmem:[#allocation89_spill] sm:$0xff] }
 0x2f5   : > { %v2521_v29 = vadd.f32 %v3548_v50, %v5767_v18  ;;  %v2512_v43 = vpop.f32.mrb[3].mxu0  ;;  %v2638_v23 = vmax.f32 %v2518_v2, 0.0  ;;  %3589 = vmatprep.subr.bf16.mxu1 %v3781_v28  ;;  %vm779_vm7 = vcmp.eq.s32.totalorder %v4694_v21, %v6492_v63  ;;  %v6493_v52 = vld [vmem:[#allocation25_spill] sm:$0xff] }
 0x2f6   : > { %v2513_v11 = vadd.f32 %v5767_v18, %v2512_v43  ;;  %v2636_v20 = vmax.f32 %v2510_v5, 0.0  ;;  %3590 = vmatpush3.bf16.msra.mxu1 %v3781_v28  ;;  %vm523_vm10 = vcmp.eq.s32.totalorder %v4694_v21, %v6493_v52  ;;  %v3369_v16 = vsel %vm779_vm7, 1.0, %v3827_v49 }
 0x2f7   : > { %v2639_v57 = vmax.f32 %v2521_v29, 0.0  ;;  %v2289_v41 = vpop.permute.xlu1 %2288  ;;  %3591 = vmatprep.subr.bf16.mxu1 %v3782_v53 }
 0x2f8   : > { %v2637_v45 = vmax.f32 %v2513_v11, 0.0  ;;  %v2346_v7 = vsel %vm2194_vm1, %v2289_v41, 0.0 }
 0x2f9   : > { %v5796_v44 = vpack.c.bf16 %v2639_v57, %v2638_v23  ;;  %v2378_v40 = vadd.f32 %v2346_v7, %v2185_v4  ;;  %v3337_v4 = vsel %vm523_vm10, 1.0, %v3827_v49 }
 0x2fa   : > { %v5801_v47 = vpack.c.bf16 %v2637_v45, %v2636_v20  ;;  %3592 = vmatpush3.bf16.msra.mxu1 %v3782_v53  ;;  %v875_v41 = vadd.f32 %v3369_v16, %v3337_v4  ;;  %v6495_v20 = vld [vmem:[#allocation42_spill] sm:$0xff]  ;;  %v6496_v45 = vld [vmem:[#allocation53_spill] sm:$0xff] }
 0x2fb   : > { %v2398_v27 = vpack.c.bf16 %v2378_v40, %v2377_v14  ;;  %vm524_vm14 = vcmp.eq.s32.totalorder %v4694_v21, %v6495_v20  ;;  %vm780_vm15 = vcmp.eq.s32.totalorder %v4694_v21, %v6496_v45  ;;  %v6497_v14 = vld [vmem:[#allocation135_spill] sm:$0xff] }
 0x2fc   : > { %v5803_v15 = vpop.permute.xlu1 %1717  ;;  %vm1036_vm0 = vcmp.eq.s32.totalorder %v4694_v21, %v6497_v14  ;;  %v3338_v53 = vsel %vm524_vm14, 1.0, %v3827_v49 }
 0x2fd   : > { %3566 = vmatmul.mubr.msk.bf16.gmra.mrb[4].mxu1 %vm2426_vm4, %v2398_v27  ;;  %v3370_v27 = vsel %vm780_vm15, 1.0, %v3827_v49 }
 0x2fe   : > { %v3551_v6 = vpop.f32.mrb[4].mxu0 }
 0x2ff   : > { %v2534_v3 = vadd.f32 %v3551_v6, %v5767_v18  ;;  %v2525_v24 = vpop.f32.mrb[5].mxu0  ;;  %v3402_v6 = vsel %vm1036_vm0, 1.0, %v3827_v49 }
 0x300   : > { %v2526_v8 = vadd.f32 %v5767_v18, %v2525_v24  ;;  %v3552_v62 = vpop.f32.mrb[6].mxu0 }
 0x301   : > { %v2537_v30 = vadd.f32 %v3552_v62, %v5767_v18  ;;  %v5809_v61 = vpop.permute.xlu1 %995  ;;  %v2528_v39 = vpop.f32.mrb[7].mxu0  ;;  %v2642_v36 = vmax.f32 %v2534_v3, 0.0  ;;  %v876_v3 = vadd.f32 %v3370_v27, %v3338_v53 }
 0x302   : > { %v2529_v42 = vadd.f32 %v5767_v18, %v2528_v39  ;;  %v2640_v9 = vmax.f32 %v2526_v8, 0.0  ;;  %vm1034_vm7 = vcmp.eq.s32.totalorder %v4694_v21, %v5809_v61 }
 0x303   : > { %v2643_v60 = vmax.f32 %v2537_v30, 0.0  ;;  %v1132_v8 = vadd.f32 %v3402_v6, %v876_v3  ;;  %v3400_v61 = vsel %vm1034_vm7, 1.0, %v3827_v49 }
 0x304   : > { %v2641_v31 = vmax.f32 %v2529_v42, 0.0 }
 0x305   : > { %v5812_v0 = vpack.c.bf16 %v2643_v60, %v2642_v36  ;;  %v1252_v36 = vpop.permute.xlu0 %1251 }
 0x306   : > { %v5814_v1 = vpack.c.bf16 %v2641_v31, %v2640_v9  ;;  %v5816_v13 = vpop.permute.xlu1 %1721  ;;  %vm1290_vm10 = vcmp.eq.s32.totalorder %v4694_v21, %v1252_v36 }
 0x307   : > { %v3432_v36 = vsel %vm1290_vm10, 1.0, %v3827_v49 }
 0x309   : > { %v2100_v31 = vpop.permute.xlu0 %2099 }
 0x30a   : > { %v1726_v33 = vpop.permute.xlu1 %1725 }
 0x30b   : > { %v1771_v10 = vsel %vm1615_vm11, %v1726_v33, 0.0  ;;  %v1769_v33 = vsel %vm1615_vm11, %v5803_v15, 0.0 }
 0x30c   : > { %v1803_v12 = vadd.f32 %v1771_v10, %v1610_v46  ;;  %v6494_v46 = vld [vmem:[#allocation134_spill] sm:$0xff]  ;;  %v1801_v32 = vadd.f32 %v1769_v33, %v5718_v58  ;;  %v1770_v58 = vsel %vm1615_vm11, %v5816_v13, 0.0 }
 0x30d   : > { %vm1035_vm12 = vcmp.eq.s32.totalorder %v4694_v21, %v6494_v46  ;;  %v1802_v16 = vadd.f32 %v1770_v58, %v5762_v26  ;;  %v6500_v33 = vld [vmem:[#allocation90_spill] sm:$0xff] }
 0x30e   : > { %v5823_v17 = vadd.f32 %v1964_v25, %v1803_v12  ;;  %v3555_v55 = vpop.f32.mrb[8].mxu0  ;;  %v3401_v23 = vsel %vm1035_vm12, 1.0, %v3827_v49  ;;  %v2112_v12 = vpop.permute.xlu0 %2111  ;;  %vm781_vm12 = vcmp.eq.s32.totalorder %v4694_v21, %v6500_v33 }
 0x30f   : > { %v2550_v22 = vadd.f32 %v3555_v55, %v5767_v18  ;;  %v5826_v35 = vpop.permute.xlu1 %1004  ;;  %v2541_v19 = vpop.f32.mrb[9].mxu0  ;;  %v1131_v54 = vadd.f32 %v3401_v23, %v875_v41  ;;  %v2154_v55 = vsel %vm2001_vm9, %v2100_v31, 0.0 }
 0x310   : > { %v2542_v56 = vadd.f32 %v5767_v18, %v2541_v19  ;;  %v3556_v48 = vpop.f32.mrb[10].mxu0  ;;  %vm1037_vm14 = vcmp.eq.s32.totalorder %v4694_v21, %v5826_v35 }
 0x311   : > { %v2553_v2 = vadd.f32 %v3556_v48, %v5767_v18  ;;  %v2544_v59 = vpop.f32.mrb[11].mxu0  ;;  %v2646_v5 = vmax.f32 %v2550_v22, 0.0  ;;  %v2186_v48 = vadd.f32 %v2154_v55, %v5667_v38 }
 0x312   : > { %v2545_v51 = vadd.f32 %v5767_v18, %v2544_v59  ;;  %v2644_v29 = vmax.f32 %v2542_v56, 0.0  ;;  %v6499_v59 = vld [vmem:[#allocation51_spill] sm:$0xff]  ;;  %v5885_v52 = vpop.permute.xlu0 %2119 }
 0x313   : > { %v2647_v50 = vmax.f32 %v2553_v2, 0.0  ;;  %v1911_v37 = vpop.permute.xlu1 %1910  ;;  %v6498_v2 = vld [vmem:[#allocation40_spill] sm:$0xff]  ;;  %vm778_vm5 = vcmp.eq.s32.totalorder %v4694_v21, %v6499_v59  ;;  %v2159_v33 = vsel %vm2001_vm9, %v5885_v52, 0.0 }
 0x314   : > { %v2645_v43 = vmax.f32 %v2545_v51, 0.0  ;;  %v1962_v10 = vsel %vm1808_vm6, %v1911_v37, 0.0  ;;  %vm522_vm3 = vcmp.eq.s32.totalorder %v4694_v21, %v6498_v2  ;;  %v3368_v37 = vsel %vm778_vm5, 1.0, %v3827_v49 }
 0x315   : > { %v5838_v11 = vpack.c.bf16 %v2647_v50, %v2646_v5  ;;  %v1994_v19 = vadd.f32 %v1962_v10, %v1801_v32  ;;  %v3336_v50 = vsel %vm522_vm3, 1.0, %v3827_v49  ;;  %v3403_v2 = vsel %vm1037_vm14, 1.0, %v3827_v49 }
 0x316   : > { %v5842_v57 = vpack.c.bf16 %v2645_v43, %v2644_v29  ;;  %v874_v45 = vadd.f32 %v3368_v37, %v3336_v50 }
 0x318   : > { %v1255_v28 = vpop.permute.xlu1 %1254  ;;  %v1130_v6 = vadd.f32 %v3400_v61, %v874_v45 }
 0x319   : > { %vm1291_vm13 = vcmp.eq.s32.totalorder %v4694_v21, %v1255_v28 }
 0x31a   : > { %v3433_v34 = vsel %vm1291_vm13, 1.0, %v3827_v49 }
 0x31b   : > { %v5850_v7 = vadd.f32 %v3433_v34, %v1131_v54  ;;  %v2301_v54 = vpop.permute.xlu0 %2300 }
 0x31c   : > { %v2349_v3 = vsel %vm2194_vm1, %v2301_v54, 0.0 }
 0x31d   : > { %v1915_v40 = vpop.permute.xlu1 %1914 }
 0x31e   : > { %v1963_v38 = vsel %vm1808_vm6, %v1915_v40, 0.0  ;;  %v2157_v40 = vsel %vm2001_vm9, %v2112_v12, 0.0 }
 0x31f   : > { %v1995_v28 = vadd.f32 %v1963_v38, %v1802_v16  ;;  %v2189_v31 = vadd.f32 %v2157_v40, %v5823_v17  ;;  %v1386_v17 = vadd.f32 %v3432_v36, %v1130_v6 }
 0x322   : > { %v1258_v24 = vpop.permute.xlu1 %1257 }
 0x323   : > { %vm1292_vm2 = vcmp.eq.s32.totalorder %v4694_v21, %v1258_v24 }
 0x324   : > { %v3434_v62 = vsel %vm1292_vm2, 1.0, %v3827_v49 }
 0x325   : > { %v5859_v30 = vadd.f32 %v3434_v62, %v1132_v8 }
 0x326   : > { %v5861_v39 = vpop.permute.xlu1 %1260 }
 0x327   : > { %vm1293_vm15 = vcmp.eq.s32.totalorder %v4694_v21, %v5861_v39 }
 0x32a   : > { %v2104_v42 = vpop.permute.xlu1 %2103 }
 0x32b   : > { %v2155_v22 = vsel %vm2001_vm9, %v2104_v42, 0.0 }
 0x32c   : > { %v2187_v15 = vadd.f32 %v2155_v22, %v1994_v19  ;;  %v6501_v19 = vld [vmem:[#allocation26_spill] sm:$0xff] }
 0x32d   : > { %vm525_vm13 = vcmp.eq.s32.totalorder %v4694_v21, %v6501_v19 }
 0x32e   : > { %v2108_v60 = vpop.permute.xlu1 %2107 }
 0x32f   : > { %v2156_v43 = vsel %vm2001_vm9, %v2108_v60, 0.0 }
 0x330   : > { %v2188_v53 = vadd.f32 %v2156_v43, %v1995_v28 }
 0x332   : > { %v2381_v32 = vadd.f32 %v2349_v3, %v2188_v53 }
 0x333   : > { %v1534_v9 = vpop.permute.xlu1 %1533 }
 0x338   : > { %v2293_v25 = vpop.permute.xlu1 %2292 }
 0x339   : > { %v2347_v56 = vsel %vm2194_vm1, %v2293_v25, 0.0  ;;  %v1579_v25 = vsel %vm1390_vm8, %v1534_v9, 0.0  ;;  %v3339_v9 = vsel %vm525_vm13, 1.0, %v3827_v49 }
 0x33a   : > { %v2379_v46 = vadd.f32 %v2347_v56, %v2186_v48  ;;  %v3371_v56 = vsel %vm781_vm12, 1.0, %v3827_v49 }
 0x33b   : > { %v877_v58 = vadd.f32 %v3371_v56, %v3339_v9 }
 0x33c   : > { %v2297_v63 = vpop.permute.xlu1 %2296 }
 0x33d   : > { %v2348_v51 = vsel %vm2194_vm1, %v2297_v63, 0.0  ;;  %v1133_v39 = vadd.f32 %v3403_v2, %v877_v58 }
 0x33e   : > { %v2380_v5 = vadd.f32 %v2348_v51, %v2187_v15  ;;  %v1611_v15 = vadd.f32 %v1579_v25, %v1386_v17  ;;  %v6502_v51 = vld [vmem:[#allocation27_spill] sm:$0xff] }
 0x340   : > { %v2399_v13 = vpack.c.bf16 %v2380_v5, %v2379_v46  ;;  %v3559_v29 = vpop.f32.mrb[12].mxu0  ;;  %v1965_v46 = vsel %vm1808_vm6, %v6502_v51, 0.0  ;;  %v3435_v5 = vsel %vm1293_vm15, 1.0, %v3827_v49 }
 0x341   : > { %v2566_v4 = vadd.f32 %v3559_v29, %v5767_v18  ;;  %v1549_v23 = vpop.permute.xlu1 %1548  ;;  %v2557_v41 = vpop.f32.mrb[13].mxu0  ;;  %v1389_v16 = vadd.f32 %v3435_v5, %v1133_v39 }
 0x342   : > { %v2558_v34 = vadd.f32 %v5767_v18, %v2557_v41  ;;  %v3560_v20 = vpop.f32.mrb[14].mxu0  ;;  %3569 = vmatprep.mubr.msk.bf16.mxu1 %vm2426_vm4, %v2399_v13  ;;  %v1582_v37 = vsel %vm1390_vm8, %v1549_v23, 0.0  ;;  %v6503_v41 = vld [vmem:[#allocation33_spill] sm:$0xff] }
 0x343   : > { %v2569_v26 = vadd.f32 %v3560_v20, %v5767_v18  ;;  %v2560_v14 = vpop.f32.mrb[15].mxu0  ;;  %v2650_v24 = vmax.f32 %v2566_v4, 0.0  ;;  %v1614_v13 = vadd.f32 %v1582_v37, %v1389_v16  ;;  %v1968_v61 = vsel %vm1808_vm6, %v6503_v41, 0.0  ;;  %v6504_v20 = vld [vmem:[#allocation63_spill] sm:$0xff] }
 0x344   : > { %v2561_v27 = vadd.f32 %v5767_v18, %v2560_v14  ;;  %v2648_v62 = vmax.f32 %v2558_v34, 0.0  ;;  %v1580_v45 = vsel %vm1390_vm8, %v6504_v20, 0.0  ;;  %v6505_v14 = vld [vmem:[#allocation106_spill] sm:$0xff] }
 0x345   : > { %v2651_v8 = vmax.f32 %v2569_v26, 0.0  ;;  %v1612_v23 = vadd.f32 %v1580_v45, %v5850_v7  ;;  %v1773_v40 = vsel %vm1615_vm11, %v6505_v14, 0.0 }
 0x346   : > { %v2649_v42 = vmax.f32 %v2561_v27, 0.0  ;;  %v2305_v60 = vpop.permute.xlu1 %2304 }
 0x347   : > { %v5911_v10 = vpack.c.bf16 %v2651_v8, %v2650_v24  ;;  %v2350_v12 = vsel %vm2194_vm1, %v2305_v60, 0.0  ;;  %v1805_v27 = vadd.f32 %v1773_v40, %v1612_v23  ;;  %v2309_v8 = vpop.permute.xlu0 %2308 }
 0x348   : > { %v5917_v55 = vpack.c.bf16 %v2649_v42, %v2648_v62  ;;  %v2382_v22 = vadd.f32 %v2350_v12, %v2189_v31  ;;  %v6506_v62 = vld [vmem:[#allocation65_spill] sm:$0xff]  ;;  %v2351_v12 = vsel %vm2194_vm1, %v2309_v8, 0.0 }
 0x349   : > { %v1581_v42 = vsel %vm1390_vm8, %v6506_v62, 0.0  ;;  %v3790_v8 = vld [vmem:[%s6179_s6 + $0x38] sm:$0xff]  }
 0x34a   : > { %v2400_v48 = vpack.c.bf16 %v2382_v22, %v2381_v32  ;;  %v1613_v60 = vadd.f32 %v1581_v42, %v5859_v30 }
 0x34b   : > { %v1730_v63 = vpop.permute.xlu1 %1729  ;;  %v2321_v22 = vpop.permute.xlu0 %2320 }
 0x34c   : > { %v1772_v59 = vsel %vm1615_vm11, %v1730_v63, 0.0  ;;  %3570 = vmatmul.mubr.msk.bf16.gmra.mrb[8].mxu1 %vm2426_vm4, %v2400_v48  ;;  %v2354_v9 = vsel %vm2194_vm1, %v2321_v22, 0.0 }
 0x34d   : > { %v1804_v35 = vadd.f32 %v1772_v59, %v1611_v15 }
 0x34f   : > { %v1738_v38 = vpop.permute.xlu1 %1737  ;;  %v1997_v50 = vadd.f32 %v1965_v46, %v1804_v35 }
 0x350   : > { %v1774_v7 = vsel %vm1615_vm11, %v1738_v38, 0.0 }
 0x351   : > { %v1806_v25 = vadd.f32 %v1774_v7, %v1613_v60 }
 0x353   : > { %v1742_v29 = vpop.permute.xlu1 %1741 }
 0x354   : > { %v1775_v43 = vsel %vm1615_vm11, %v1742_v29, 0.0 }
 0x355   : > { %v1807_v4 = vadd.f32 %v1775_v43, %v1614_v13 }
 0x357   : > { %v2000_v28 = vadd.f32 %v1968_v61, %v1807_v4 }
 0x358   : > { %v1927_v54 = vpop.permute.xlu1 %1926 }
 0x359   : > { %v1966_v53 = vsel %vm1808_vm6, %v1927_v54, 0.0 }
 0x35a   : > { %v1998_v24 = vadd.f32 %v1966_v53, %v1805_v27  ;;  %v3789_v53 = vld [vmem:[%s6179_s6 + $0x30] sm:$0xff]  }
 0x35c   : > { %v1931_v49 = vpop.permute.xlu1 %1930  ;;  %v2191_v17 = vadd.f32 %v2159_v33, %v1998_v24 }
 0x35d   : > { %v1967_v36 = vsel %vm1808_vm6, %v1931_v49, 0.0  ;;  %v3788_v49 = vld [vmem:[%s6179_s6 + $0x28] sm:$0xff]  }
 0x35e   : > { %v1999_v52 = vadd.f32 %v1967_v36, %v1806_v25 }
 0x361   : > { %v2116_v34 = vpop.permute.xlu1 %2115 }
 0x362   : > { %v2158_v6 = vsel %vm2001_vm9, %v2116_v34, 0.0 }
 0x363   : > { %v2190_v31 = vadd.f32 %v2158_v6, %v1997_v50 }
 0x365   : > { %v2124_v26 = vpop.permute.xlu1 %2123  ;;  %v2383_v48 = vadd.f32 %v2351_v12, %v2190_v31 }
 0x366   : > { %v2160_v30 = vsel %vm2001_vm9, %v2124_v26, 0.0 }
 0x367   : > { %v2192_v2 = vadd.f32 %v2160_v30, %v1999_v52 }
 0x369   : > { %v2128_v3 = vpop.permute.xlu1 %2127 }
 0x36a   : > { %v2161_v32 = vsel %vm2001_vm9, %v2128_v3, 0.0 }
 0x36b   : > { %v2193_v15 = vadd.f32 %v2161_v32, %v2000_v28 }
 0x36d   : > { %v2386_v51 = vadd.f32 %v2354_v9, %v2193_v15 }
 0x36e   : > { %v2313_v19 = vpop.permute.xlu1 %2312 }
 0x36f   : > { %v2352_v56 = vsel %vm2194_vm1, %v2313_v19, 0.0 }
 0x370   : > { %v2384_v63 = vadd.f32 %v2352_v56, %v2191_v17 }
 0x372   : > { %v2401_v59 = vpack.c.bf16 %v2384_v63, %v2383_v48  ;;  %v2317_v58 = vpop.permute.xlu1 %2316 }
 0x373   : > { %v2353_v35 = vsel %vm2194_vm1, %v2317_v58, 0.0  ;;  %vm3196_vm1 = vcmask 64512  }
 0x374   : > { %v2385_v46 = vadd.f32 %v2353_v35, %v2192_v2  ;;  %3573 = vmatprep.mubr.msk.bf16.mxu1 %vm2426_vm4, %v2401_v59 }
 0x376   : > { %v2402_v5 = vpack.c.bf16 %v2386_v51, %v2385_v46 }
 0x378   : > { %3574 = vmatmul.mubr.msk.bf16.gmra.mrb[12].mxu1 %vm2426_vm4, %v2402_v5  ;;  %v6029_v5 = vld [vmem:[%s6178_s5] ss:$0 sm:$0xff] }
 0x379   : > { %3593 = vmatprep.mubr.bf16.mxu1 %v5801_v47 }
 0x380   : > { %3594 = vmatmul.mubr.bf16.vlgmr.msra.gmra.mrb[16].mxu1 %v5796_v44 }
 0x381   : > { %3597 = vmatprep.mubr.bf16.mxu1 %v5814_v1 }
 0x385   : > { %v3563_v39 = vpop.f32.mrb[0].mxu1 }
 0x386   : > { %v2582_v38 = vadd.f32 %v3563_v39, %v5767_v18  ;;  %v2573_v50 = vpop.f32.mrb[1].mxu1 }
 0x387   : > { %v2574_v21 = vadd.f32 %v5767_v18, %v2573_v50  ;;  %v3564_v37 = vpop.f32.mrb[2].mxu1 }
 0x388   : > { %v2585_v16 = vadd.f32 %v3564_v37, %v5767_v18  ;;  %v2576_v13 = vpop.f32.mrb[3].mxu1  ;;  %3598 = vmatmul.mubr.bf16.gmra.mrb[20].mxu1 %v5812_v0  ;;  %v2654_v47 = vmax.f32 %v2582_v38, 0.0  ;;  %v3783_v0 = vld [vmem:[%s6179_s6] sm:$0xff]  }
 0x389   : > { %v2577_v29 = vadd.f32 %v5767_v18, %v2576_v13  ;;  %3601 = vmatprep.mubr.bf16.mxu1 %v5842_v57  ;;  %v2652_v43 = vmax.f32 %v2574_v21, 0.0  ;;  %v3784_v57 = vld [vmem:[%s6179_s6 + $0x8] sm:$0xff]   ;;  %3625 = vmatprep.subr.bf16.mxu0 %v3783_v0 }
 0x38a   : > { %v2655_v44 = vmax.f32 %v2585_v16, 0.0  ;;  %3626 = vmatpush3.bf16.msra.mxu0 %v3783_v0 }
 0x38b   : > { %v2653_v1 = vmax.f32 %v2577_v29, 0.0  ;;  %3627 = vmatprep.subr.bf16.mxu0 %v3784_v57 }
 0x38c   : > { %v2677_v4 = vpack.c.bf16 %v2655_v44, %v2654_v47 }
 0x38d   : > { %v2676_v41 = vpack.c.bf16 %v2653_v1, %v2652_v43 }
 0x38e   : > { %3628 = vmatpush3.bf16.msra.mxu0 %v3784_v57 }
 0x390   : > { %3602 = vmatmul.mubr.bf16.gmra.mrb[24].mxu1 %v5838_v11  ;;  %v3785_v11 = vld [vmem:[%s6179_s6 + $0x10] sm:$0xff]  }
 0x391   : > { %3605 = vmatprep.mubr.bf16.mxu1 %v5917_v55  ;;  %3629 = vmatprep.subr.bf16.mxu0 %v3785_v11  ;;  %v3787_v55 = vld [vmem:[%s6179_s6 + $0x20] sm:$0xff]  }
 0x392   : > { %3630 = vmatpush3.bf16.msra.mxu0 %v3785_v11 }
 0x398   : > { %3606 = vmatmul.mubr.bf16.gmra.mrb[28].mxu1 %v5911_v10  ;;  %v3786_v10 = vld [vmem:[%s6179_s6 + $0x18] sm:$0xff]  }
 0x399   : > { %3609 = vmatprep.mubr.bf16.mxu1 %v2676_v41  ;;  %3631 = vmatprep.subr.bf16.mxu0 %v3786_v10 }
 0x39a   : > { %3632 = vmatpush3.bf16.msra.mxu0 %v3786_v10 }
 0x39b   : > { %3633 = vmatprep.subr.bf16.mxu0 %v3787_v55 }
 0x39e   : > { %3634 = vmatpush3.bf16.msra.mxu0 %v3787_v55 }
 0x39f   : > { %3635 = vmatprep.subr.bf16.mxu0 %v3788_v49 }
 0x3a0   : > { %3610 = vmatmul.mubr.bf16.gmra.mrb[32].mxu1 %v2677_v4 }
 0x3a2   : > { %3636 = vmatpush3.bf16.msra.mxu0 %v3788_v49 }
 0x3a3   : > { %3637 = vmatprep.subr.bf16.mxu0 %v3789_v53 }
 0x3a6   : > { %3638 = vmatpush3.bf16.msra.mxu0 %v3789_v53 }
 0x3a7   : > { %3639 = vmatprep.subr.bf16.mxu0 %v3790_v8 }
 0x3aa   : > { %3640 = vmatpush3.bf16.msra.mxu0 %v3790_v8 }
 0x3d0   : > { %v3567_v61 = vpop.f32.mrb[4].mxu1 }
 0x3d1   : > { %v2598_v28 = vadd.f32 %v3567_v61, %v5767_v18  ;;  %v2589_v54 = vpop.f32.mrb[5].mxu1 }
 0x3d2   : > { %v2590_v34 = vadd.f32 %v5767_v18, %v2589_v54  ;;  %v3568_v20 = vpop.f32.mrb[6].mxu1 }
 0x3d3   : > { %v2601_v45 = vadd.f32 %v3568_v20, %v5767_v18  ;;  %v2592_v23 = vpop.f32.mrb[7].mxu1  ;;  %v2658_v14 = vmax.f32 %v2598_v28, 0.0 }
 0x3d4   : > { %v2593_v26 = vadd.f32 %v5767_v18, %v2592_v23  ;;  %v2656_v27 = vmax.f32 %v2590_v34, 0.0 }
 0x3d5   : > { %v2659_v40 = vmax.f32 %v2601_v45, 0.0 }
 0x3d6   : > { %v2657_v6 = vmax.f32 %v2593_v26, 0.0 }
 0x3d7   : > { %v2679_v3 = vpack.c.bf16 %v2659_v40, %v2658_v14 }
 0x3d8   : > { %v2678_v24 = vpack.c.bf16 %v2657_v6, %v2656_v27 }
 0x3da   : > { %3613 = vmatprep.mubr.bf16.mxu1 %v2678_v24 }
 0x3db   : > { %3614 = vmatmul.mubr.bf16.gmra.mrb[36].mxu1 %v2679_v3 }
 0x41f   : > { %v3571_v62 = vpop.f32.mrb[8].mxu1 }
 0x420   : > { %v2614_v42 = vadd.f32 %v3571_v62, %v5767_v18  ;;  %v2605_v7 = vpop.f32.mrb[9].mxu1 }
 0x421   : > { %v2606_v60 = vadd.f32 %v5767_v18, %v2605_v7  ;;  %v3572_v31 = vpop.f32.mrb[10].mxu1 }
 0x422   : > { %v2617_v33 = vadd.f32 %v3572_v31, %v5767_v18  ;;  %v2608_v36 = vpop.f32.mrb[11].mxu1  ;;  %v2662_v32 = vmax.f32 %v2614_v42, 0.0 }
 0x423   : > { %v2609_v12 = vadd.f32 %v5767_v18, %v2608_v36  ;;  %v2660_v22 = vmax.f32 %v2606_v60, 0.0 }
 0x424   : > { %v2663_v25 = vmax.f32 %v2617_v33, 0.0 }
 0x425   : > { %v2661_v19 = vmax.f32 %v2609_v12, 0.0 }
 0x426   : > { %v2681_v17 = vpack.c.bf16 %v2663_v25, %v2662_v32 }
 0x427   : > { %v2680_v30 = vpack.c.bf16 %v2661_v19, %v2660_v22 }
 0x429   : > { %3617 = vmatprep.mubr.bf16.mxu1 %v2680_v30 }
 0x42a   : > { %3618 = vmatmul.mubr.bf16.gmra.mrb[40].mxu1 %v2681_v17 }
 0x44b   : > { %v3575_v56 = vpop.f32.mrb[12].mxu1 }
 0x44c   : > { %v2630_v52 = vadd.f32 %v3575_v56, %v5767_v18  ;;  %v2621_v48 = vpop.f32.mrb[13].mxu1 }
 0x44d   : > { %v2622_v15 = vadd.f32 %v5767_v18, %v2621_v48  ;;  %v3576_v63 = vpop.f32.mrb[14].mxu1 }
 0x44e   : > { %v2633_v9 = vadd.f32 %v3576_v63, %v5767_v18  ;;  %v2624_v2 = vpop.f32.mrb[15].mxu1  ;;  %v2666_v58 = vmax.f32 %v2630_v52, 0.0 }
 0x44f   : > { %v2625_v59 = vadd.f32 %v5767_v18, %v2624_v2  ;;  %v2664_v51 = vmax.f32 %v2622_v15, 0.0 }
 0x450   : > { %v2667_v35 = vmax.f32 %v2633_v9, 0.0 }
 0x451   : > { %v2665_v46 = vmax.f32 %v2625_v59, 0.0 }
 0x452   : > { %v2683_v39 = vpack.c.bf16 %v2667_v35, %v2666_v58 }
 0x453   : > { %v2682_v38 = vpack.c.bf16 %v2665_v46, %v2664_v51  ;;  %v3595_v50 = vpop.f32.mrb[16].mxu1 }
 0x454   : > { %v2798_v21 = vadd.f32 %v3595_v50, %v6029_v5  ;;  %v2789_v37 = vpop.f32.mrb[17].mxu1 }
 0x455   : > { %v2790_v16 = vadd.f32 %v6029_v5, %v2789_v37  ;;  %v3596_v13 = vpop.f32.mrb[18].mxu1  ;;  %3621 = vmatprep.mubr.bf16.mxu1 %v2682_v38 }
 0x456   : > { %v2801_v18 = vadd.f32 %v3596_v13, %v6029_v5  ;;  %v2792_v29 = vpop.f32.mrb[19].mxu1  ;;  %3622 = vmatmul.mubr.bf16.gmra.mrb[44].mxu1 %v2683_v39  ;;  %v2918_v44 = vmax.f32 %v2798_v21, 0.0 }
 0x457   : > { %v2793_v47 = vadd.f32 %v6029_v5, %v2792_v29  ;;  %v2916_v1 = vmax.f32 %v2790_v16, 0.0 }
 0x458   : > { %v2919_v43 = vmax.f32 %v2801_v18, 0.0 }
 0x459   : > { %v2917_v4 = vmax.f32 %v2793_v47, 0.0 }
 0x45a   : > { %v2949_v41 = vpack.c.bf16 %v2919_v43, %v2918_v44 }
 0x45b   : > { %v2948_v0 = vpack.c.bf16 %v2917_v4, %v2916_v1  ;;  %v3599_v57 = vpop.f32.mrb[20].mxu1 }
 0x45c   : > { %v2814_v11 = vadd.f32 %v3599_v57, %v6029_v5  ;;  %v2805_v10 = vpop.f32.mrb[21].mxu1 }
 0x45d   : > { %v2806_v55 = vadd.f32 %v6029_v5, %v2805_v10  ;;  %v3600_v61 = vpop.f32.mrb[22].mxu1  ;;  %3641 = vmatprep.mubr.bf16.mxu0 %v2948_v0 }
 0x45e   : > { %v2817_v28 = vadd.f32 %v3600_v61, %v6029_v5  ;;  %v2808_v54 = vpop.f32.mrb[23].mxu1  ;;  %3642 = vmatmul.mubr.bf16.vlgmr.msra.gmra.mrb[16].mxu0 %v2949_v41  ;;  %v2922_v34 = vmax.f32 %v2814_v11, 0.0 }
 0x45f   : > { %v2809_v49 = vadd.f32 %v6029_v5, %v2808_v54  ;;  %v2920_v45 = vmax.f32 %v2806_v55, 0.0 }
 0x460   : > { %v2923_v20 = vmax.f32 %v2817_v28, 0.0 }
 0x461   : > { %v2921_v23 = vmax.f32 %v2809_v49, 0.0 }
 0x462   : > { %v2951_v26 = vpack.c.bf16 %v2923_v20, %v2922_v34 }
 0x463   : > { %v2950_v14 = vpack.c.bf16 %v2921_v23, %v2920_v45  ;;  %v3603_v40 = vpop.f32.mrb[24].mxu1 }
 0x464   : > { %v2830_v53 = vadd.f32 %v3603_v40, %v6029_v5  ;;  %v2821_v27 = vpop.f32.mrb[25].mxu1 }
 0x465   : > { %v2822_v6 = vadd.f32 %v6029_v5, %v2821_v27  ;;  %v3604_v3 = vpop.f32.mrb[26].mxu1  ;;  %3645 = vmatprep.mubr.bf16.mxu0 %v2950_v14 }
 0x466   : > { %v2833_v24 = vadd.f32 %v3604_v3, %v6029_v5  ;;  %v2824_v8 = vpop.f32.mrb[27].mxu1  ;;  %3646 = vmatmul.mubr.bf16.gmra.mrb[20].mxu0 %v2951_v26  ;;  %v2926_v42 = vmax.f32 %v2830_v53, 0.0 }
 0x467   : > { %v2825_v62 = vadd.f32 %v6029_v5, %v2824_v8  ;;  %v2924_v60 = vmax.f32 %v2822_v6, 0.0 }
 0x468   : > { %v2927_v7 = vmax.f32 %v2833_v24, 0.0 }
 0x469   : > { %v2925_v31 = vmax.f32 %v2825_v62, 0.0 }
 0x46a   : > { %v2953_v33 = vpack.c.bf16 %v2927_v7, %v2926_v42 }
 0x46b   : > { %v2952_v36 = vpack.c.bf16 %v2925_v31, %v2924_v60  ;;  %v3607_v12 = vpop.f32.mrb[28].mxu1 }
 0x46c   : > { %v2846_v32 = vadd.f32 %v3607_v12, %v6029_v5  ;;  %v2837_v25 = vpop.f32.mrb[29].mxu1 }
 0x46d   : > { %v2838_v22 = vadd.f32 %v6029_v5, %v2837_v25  ;;  %v3608_v19 = vpop.f32.mrb[30].mxu1  ;;  %3649 = vmatprep.mubr.bf16.mxu0 %v2952_v36 }
 0x46e   : > { %v2849_v17 = vadd.f32 %v3608_v19, %v6029_v5  ;;  %v2840_v30 = vpop.f32.mrb[31].mxu1  ;;  %3650 = vmatmul.mubr.bf16.gmra.mrb[24].mxu0 %v2953_v33  ;;  %v2930_v52 = vmax.f32 %v2846_v32, 0.0 }
 0x46f   : > { %v2841_v56 = vadd.f32 %v6029_v5, %v2840_v30  ;;  %v2928_v15 = vmax.f32 %v2838_v22, 0.0 }
 0x470   : > { %v2931_v48 = vmax.f32 %v2849_v17, 0.0  ;;  %v6066_v17 = vld [vmem:[%s6180_s7] ss:$0 sm:$0xff] }
 0x471   : > { %v2929_v63 = vmax.f32 %v2841_v56, 0.0 }
 0x472   : > { %v2955_v9 = vpack.c.bf16 %v2931_v48, %v2930_v52 }
 0x473   : > { %v2954_v2 = vpack.c.bf16 %v2929_v63, %v2928_v15  ;;  %v3611_v59 = vpop.f32.mrb[32].mxu1 }
 0x474   : > { %v2862_v58 = vadd.f32 %v3611_v59, %v6029_v5  ;;  %v2853_v35 = vpop.f32.mrb[33].mxu1 }
 0x475   : > { %v2854_v51 = vadd.f32 %v6029_v5, %v2853_v35  ;;  %v3612_v46 = vpop.f32.mrb[34].mxu1  ;;  %3653 = vmatprep.mubr.bf16.mxu0 %v2954_v2 }
 0x476   : > { %v2865_v39 = vadd.f32 %v3612_v46, %v6029_v5  ;;  %v2856_v38 = vpop.f32.mrb[35].mxu1  ;;  %3654 = vmatmul.mubr.bf16.gmra.mrb[28].mxu0 %v2955_v9  ;;  %v2934_v21 = vmax.f32 %v2862_v58, 0.0 }
 0x477   : > { %v2857_v50 = vadd.f32 %v6029_v5, %v2856_v38  ;;  %v2932_v16 = vmax.f32 %v2854_v51, 0.0 }
 0x478   : > { %v2935_v37 = vmax.f32 %v2865_v39, 0.0 }
 0x479   : > { %v2933_v13 = vmax.f32 %v2857_v50, 0.0 }
 0x47a   : > { %v2957_v18 = vpack.c.bf16 %v2935_v37, %v2934_v21 }
 0x47b   : > { %v2956_v29 = vpack.c.bf16 %v2933_v13, %v2932_v16 }
 0x47d   : > { %3657 = vmatprep.mubr.bf16.mxu0 %v2956_v29 }
 0x47e   : > { %3658 = vmatmul.mubr.bf16.gmra.mrb[32].mxu0 %v2957_v18 }
 0x4ae   : > { %v3615_v47 = vpop.f32.mrb[36].mxu1 }
 0x4af   : > { %v2878_v44 = vadd.f32 %v3615_v47, %v6029_v5  ;;  %v2869_v43 = vpop.f32.mrb[37].mxu1 }
 0x4b0   : > { %v2870_v1 = vadd.f32 %v6029_v5, %v2869_v43  ;;  %v3616_v4 = vpop.f32.mrb[38].mxu1 }
 0x4b1   : > { %v2881_v41 = vadd.f32 %v3616_v4, %v6029_v5  ;;  %v2872_v0 = vpop.f32.mrb[39].mxu1  ;;  %v2938_v11 = vmax.f32 %v2878_v44, 0.0 }
 0x4b2   : > { %v2873_v57 = vadd.f32 %v6029_v5, %v2872_v0  ;;  %v2936_v55 = vmax.f32 %v2870_v1, 0.0 }
 0x4b3   : > { %v2939_v10 = vmax.f32 %v2881_v41, 0.0 }
 0x4b4   : > { %v2937_v61 = vmax.f32 %v2873_v57, 0.0 }
 0x4b5   : > { %v2959_v28 = vpack.c.bf16 %v2939_v10, %v2938_v11 }
 0x4b6   : > { %v2958_v54 = vpack.c.bf16 %v2937_v61, %v2936_v55 }
 0x4b8   : > { %3661 = vmatprep.mubr.bf16.mxu0 %v2958_v54 }
 0x4b9   : > { %3662 = vmatmul.mubr.bf16.gmra.mrb[36].mxu0 %v2959_v28 }
 0x4fd   : > { %v3619_v49 = vpop.f32.mrb[40].mxu1 }
 0x4fe   : > { %v2894_v34 = vadd.f32 %v3619_v49, %v6029_v5  ;;  %v2885_v20 = vpop.f32.mrb[41].mxu1 }
 0x4ff   : > { %v2886_v45 = vadd.f32 %v6029_v5, %v2885_v20  ;;  %v3620_v23 = vpop.f32.mrb[42].mxu1 }
 0x500   : > { %v2897_v26 = vadd.f32 %v3620_v23, %v6029_v5  ;;  %v2888_v14 = vpop.f32.mrb[43].mxu1  ;;  %v2942_v53 = vmax.f32 %v2894_v34, 0.0 }
 0x501   : > { %v2889_v40 = vadd.f32 %v6029_v5, %v2888_v14  ;;  %v2940_v6 = vmax.f32 %v2886_v45, 0.0 }
 0x502   : > { %v2943_v27 = vmax.f32 %v2897_v26, 0.0 }
 0x503   : > { %v2941_v3 = vmax.f32 %v2889_v40, 0.0 }
 0x504   : > { %v2961_v24 = vpack.c.bf16 %v2943_v27, %v2942_v53 }
 0x505   : > { %v2960_v8 = vpack.c.bf16 %v2941_v3, %v2940_v6 }
 0x507   : > { %3665 = vmatprep.mubr.bf16.mxu0 %v2960_v8 }
 0x508   : > { %3666 = vmatmul.mubr.bf16.gmra.mrb[40].mxu0 %v2961_v24 }
 0x529   : > { %v3623_v62 = vpop.f32.mrb[44].mxu1 }
 0x52a   : > { %v2910_v42 = vadd.f32 %v3623_v62, %v6029_v5  ;;  %v2901_v7 = vpop.f32.mrb[45].mxu1 }
 0x52b   : > { %v2902_v60 = vadd.f32 %v6029_v5, %v2901_v7  ;;  %v3624_v31 = vpop.f32.mrb[46].mxu1 }
 0x52c   : > { %v2913_v33 = vadd.f32 %v3624_v31, %v6029_v5  ;;  %v2904_v36 = vpop.f32.mrb[47].mxu1  ;;  %v2946_v32 = vmax.f32 %v2910_v42, 0.0 }
 0x52d   : > { %v2905_v12 = vadd.f32 %v6029_v5, %v2904_v36  ;;  %v2944_v22 = vmax.f32 %v2902_v60, 0.0 }
 0x52e   : > { %v2947_v25 = vmax.f32 %v2913_v33, 0.0 }
 0x52f   : > { %v2945_v19 = vmax.f32 %v2905_v12, 0.0 }
 0x530   : > { %v2963_v30 = vpack.c.bf16 %v2947_v25, %v2946_v32 }
 0x531   : > { %v2962_v56 = vpack.c.bf16 %v2945_v19, %v2944_v22  ;;  %v3643_v5 = vpop.f32.mrb[16].mxu0 }
 0x532   : > { %v3078_v52 = vadd.f32 %v3643_v5, %v6066_v17  ;;  %v3069_v48 = vpop.f32.mrb[17].mxu0 }
 0x533   : > { %v3070_v15 = vadd.f32 %v6066_v17, %v3069_v48  ;;  %v3644_v63 = vpop.f32.mrb[18].mxu0  ;;  %3669 = vmatprep.mubr.bf16.mxu0 %v2962_v56 }
 0x534   : > { %3199 = vst.msk [vmem:[%s6072_s19 + $0x10] sm:$0xff] %vm3196_vm1, %v3078_v52  ;;  %v3081_v9 = vadd.f32 %v3644_v63, %v6066_v17  ;;  %v3072_v2 = vpop.f32.mrb[19].mxu0  ;;  %3670 = vmatmul.mubr.bf16.gmra.mrb[44].mxu0 %v2963_v30 }
 0x535   : > { %3197 = vst.msk [vmem:[%s6072_s19] sm:$0xff] %vm3196_vm1, %v3070_v15  ;;  %v3073_v59 = vadd.f32 %v6066_v17, %v3072_v2 }
 0x536   : > { %3200 = vst.msk [vmem:[%s6072_s19 + $0x18] sm:$0xff] %vm3196_vm1, %v3081_v9 }
 0x537   : > { %3198 = vst.msk [vmem:[%s6072_s19 + $0x8] sm:$0xff] %vm3196_vm1, %v3073_v59 }
 0x539   : > { %v3647_v58 = vpop.f32.mrb[20].mxu0 }
 0x53a   : > { %v3094_v35 = vadd.f32 %v3647_v58, %v6066_v17  ;;  %v3085_v51 = vpop.f32.mrb[21].mxu0 }
 0x53b   : > { %v3086_v46 = vadd.f32 %v6066_v17, %v3085_v51  ;;  %v3648_v39 = vpop.f32.mrb[22].mxu0 }
 0x53c   : > { %3203 = vst.msk [vmem:[%s6072_s19 + $0x30] sm:$0xff] %vm3196_vm1, %v3094_v35  ;;  %v3097_v38 = vadd.f32 %v3648_v39, %v6066_v17  ;;  %v3088_v50 = vpop.f32.mrb[23].mxu0 }
 0x53d   : > { %3201 = vst.msk [vmem:[%s6072_s19 + $0x20] sm:$0xff] %vm3196_vm1, %v3086_v46  ;;  %v3089_v21 = vadd.f32 %v6066_v17, %v3088_v50 }
 0x53e   : > { %3204 = vst.msk [vmem:[%s6072_s19 + $0x38] sm:$0xff] %vm3196_vm1, %v3097_v38 }
 0x53f   : > { %3202 = vst.msk [vmem:[%s6072_s19 + $0x28] sm:$0xff] %vm3196_vm1, %v3089_v21 }
 0x541   : > { %v3651_v37 = vpop.f32.mrb[24].mxu0 }
 0x542   : > { %v3110_v16 = vadd.f32 %v3651_v37, %v6066_v17  ;;  %v3101_v13 = vpop.f32.mrb[25].mxu0 }
 0x543   : > { %v3102_v18 = vadd.f32 %v6066_v17, %v3101_v13  ;;  %v3652_v29 = vpop.f32.mrb[26].mxu0 }
 0x544   : > { %3207 = vst.msk [vmem:[%s6072_s19 + $0x50] sm:$0xff] %vm3196_vm1, %v3110_v16  ;;  %v3113_v47 = vadd.f32 %v3652_v29, %v6066_v17  ;;  %v3104_v44 = vpop.f32.mrb[27].mxu0 }
 0x545   : > { %3205 = vst.msk [vmem:[%s6072_s19 + $0x40] sm:$0xff] %vm3196_vm1, %v3102_v18  ;;  %v3105_v43 = vadd.f32 %v6066_v17, %v3104_v44 }
 0x546   : > { %3208 = vst.msk [vmem:[%s6072_s19 + $0x58] sm:$0xff] %vm3196_vm1, %v3113_v47 }
 0x547   : > { %3206 = vst.msk [vmem:[%s6072_s19 + $0x48] sm:$0xff] %vm3196_vm1, %v3105_v43 }
 0x549   : > { %v3655_v1 = vpop.f32.mrb[28].mxu0 }
 0x54a   : > { %v3126_v4 = vadd.f32 %v3655_v1, %v6066_v17  ;;  %v3117_v41 = vpop.f32.mrb[29].mxu0 }
 0x54b   : > { %v3118_v0 = vadd.f32 %v6066_v17, %v3117_v41  ;;  %v3656_v57 = vpop.f32.mrb[30].mxu0 }
 0x54c   : > { %3211 = vst.msk [vmem:[%s6072_s19 + $0x70] sm:$0xff] %vm3196_vm1, %v3126_v4  ;;  %v3129_v11 = vadd.f32 %v3656_v57, %v6066_v17  ;;  %v3120_v10 = vpop.f32.mrb[31].mxu0 }
 0x54d   : > { %3209 = vst.msk [vmem:[%s6072_s19 + $0x60] sm:$0xff] %vm3196_vm1, %v3118_v0  ;;  %v3121_v55 = vadd.f32 %v6066_v17, %v3120_v10 }
 0x54e   : > { %3212 = vst.msk [vmem:[%s6072_s19 + $0x78] sm:$0xff] %vm3196_vm1, %v3129_v11 }
 0x54f   : > { %3210 = vst.msk [vmem:[%s6072_s19 + $0x68] sm:$0xff] %vm3196_vm1, %v3121_v55 }
 0x551   : > { %v3659_v61 = vpop.f32.mrb[32].mxu0 }
 0x552   : > { %v3142_v28 = vadd.f32 %v3659_v61, %v6066_v17  ;;  %v3133_v54 = vpop.f32.mrb[33].mxu0 }
 0x553   : > { %v3134_v49 = vadd.f32 %v6066_v17, %v3133_v54  ;;  %v3660_v34 = vpop.f32.mrb[34].mxu0 }
 0x554   : > { %3215 = vst.msk [vmem:[%s6072_s19 + $0x90] sm:$0xff] %vm3196_vm1, %v3142_v28  ;;  %v3145_v20 = vadd.f32 %v3660_v34, %v6066_v17  ;;  %v3136_v45 = vpop.f32.mrb[35].mxu0 }
 0x555   : > { %3213 = vst.msk [vmem:[%s6072_s19 + $0x80] sm:$0xff] %vm3196_vm1, %v3134_v49  ;;  %v3137_v23 = vadd.f32 %v6066_v17, %v3136_v45 }
 0x556   : > { %3216 = vst.msk [vmem:[%s6072_s19 + $0x98] sm:$0xff] %vm3196_vm1, %v3145_v20 }
 0x557   : > { %3214 = vst.msk [vmem:[%s6072_s19 + $0x88] sm:$0xff] %vm3196_vm1, %v3137_v23 }
 0x58c   : > { %v3663_v26 = vpop.f32.mrb[36].mxu0 }
 0x58d   : > { %v3158_v14 = vadd.f32 %v3663_v26, %v6066_v17  ;;  %v3149_v40 = vpop.f32.mrb[37].mxu0 }
 0x58e   : > { %v3150_v53 = vadd.f32 %v6066_v17, %v3149_v40  ;;  %v3664_v27 = vpop.f32.mrb[38].mxu0 }
 0x58f   : > { %3219 = vst.msk [vmem:[%s6072_s19 + $0xb0] sm:$0xff] %vm3196_vm1, %v3158_v14  ;;  %v3161_v6 = vadd.f32 %v3664_v27, %v6066_v17  ;;  %v3152_v3 = vpop.f32.mrb[39].mxu0 }
 0x590   : > { %3217 = vst.msk [vmem:[%s6072_s19 + $0xa0] sm:$0xff] %vm3196_vm1, %v3150_v53  ;;  %v3153_v24 = vadd.f32 %v6066_v17, %v3152_v3 }
 0x591   : > { %3220 = vst.msk [vmem:[%s6072_s19 + $0xb8] sm:$0xff] %vm3196_vm1, %v3161_v6 }
 0x592   : > { %3218 = vst.msk [vmem:[%s6072_s19 + $0xa8] sm:$0xff] %vm3196_vm1, %v3153_v24 }
 0x5db   : > { %v3667_v8 = vpop.f32.mrb[40].mxu0 }
 0x5dc   : > { %v3174_v62 = vadd.f32 %v3667_v8, %v6066_v17  ;;  %v3165_v42 = vpop.f32.mrb[41].mxu0 }
 0x5dd   : > { %v3166_v7 = vadd.f32 %v6066_v17, %v3165_v42  ;;  %v3668_v60 = vpop.f32.mrb[42].mxu0 }
 0x5de   : > { %3223 = vst.msk [vmem:[%s6072_s19 + $0xd0] sm:$0xff] %vm3196_vm1, %v3174_v62  ;;  %v3177_v31 = vadd.f32 %v3668_v60, %v6066_v17  ;;  %v3168_v33 = vpop.f32.mrb[43].mxu0 }
 0x5df   : > { %3221 = vst.msk [vmem:[%s6072_s19 + $0xc0] sm:$0xff] %vm3196_vm1, %v3166_v7  ;;  %v3169_v36 = vadd.f32 %v6066_v17, %v3168_v33 }
 0x5e0   : > { %3224 = vst.msk [vmem:[%s6072_s19 + $0xd8] sm:$0xff] %vm3196_vm1, %v3177_v31 }
 0x5e1   : > { %3222 = vst.msk [vmem:[%s6072_s19 + $0xc8] sm:$0xff] %vm3196_vm1, %v3169_v36 }
 0x607   : > { %v3671_v12 = vpop.f32.mrb[44].mxu0 }
 0x608   : > { %v3190_v32 = vadd.f32 %v3671_v12, %v6066_v17  ;;  %v3181_v25 = vpop.f32.mrb[45].mxu0 }
 0x609   : > { %v3182_v22 = vadd.f32 %v6066_v17, %v3181_v25  ;;  %v3672_v19 = vpop.f32.mrb[46].mxu0 }
 0x60a   : > { %3227 = vst.msk [vmem:[%s6072_s19 + $0xf0] sm:$0xff] %vm3196_vm1, %v3190_v32  ;;  %v3193_v30 = vadd.f32 %v3672_v19, %v6066_v17  ;;  %v3184_v56 = vpop.f32.mrb[47].mxu0 }
 0x60b   : > { %3225 = vst.msk [vmem:[%s6072_s19 + $0xe0] sm:$0xff] %vm3196_vm1, %v3182_v22  ;;  %v3185_v5 = vadd.f32 %v6066_v17, %v3184_v56 }
 0x60c   : > { %3228 = vst.msk [vmem:[%s6072_s19 + $0xf8] sm:$0xff] %vm3196_vm1, %v3193_v30 }
 0x60d   : > { %3226 = vst.msk [vmem:[%s6072_s19 + $0xe8] sm:$0xff] %vm3196_vm1, %v3185_v5 }
 0x60e PF: > { %s18_s27 = sadd.s32 1, %s3820_s27  }
 0x60f   : > { %p15_p4 = scmp.ge.s32.totalorder %s18_s27, 4  }
 0x611   :  { %17 = sbr.rel (!%p15_p4) target bundleno = 1 (0x1), region = 85 }

</bundles_post_ra>
